<compile_context>
chip_gen: v7x
topology: tpu7x:2x2x1
jax: 0.10.0
libtpu: 0.0.40
codegen_flags: <defaults>
</compile_context>

<pallas_src>
import jax
import jax.numpy as jnp
from jax import lax
from jax.experimental import pallas as pl
from jax.experimental.pallas import tpu as pltpu

# ----------------------------- synthetic config -----------------------------
C, H, W = 3, 64, 64             # per-patch image shape (NCHW)
PATCH = 16
GRID = H // PATCH               # 4 -> backbone token grid
D_BACKBONE = 32                 # backbone hidden size
HIDDEN_STRIDE = 2
HS2 = HIDDEN_STRIDE * HIDDEN_STRIDE                      # 4 fold sub-blocks
HEAD_IN = D_BACKBONE * HS2                               # 128
NUM_INDICATOR_IDS = 5           # len(IMAGE_INDICATOR_IDS)
HEAD_DIM = 128                  # vocab_size - 5
VT_VOCAB = HEAD_DIM + NUM_INDICATOR_IDS                  # 133 (visual vocab)
LLM_HIDDEN = 64                 # config.hidden_size
LLM_VOCAB = 256
IMAGE_PAD_TOKEN_ID = 7          # gemma2 entry of IMAGE_PAD_TOKEN_ID_MAP
T_PER_PATCH = (GRID // HIDDEN_STRIDE) ** 2               # 4 visual tokens / patch
K_IM2COL = C * PATCH * PATCH                             # 768
K_FUSED = HS2 * K_IM2COL                                 # 3072 fused contraction
OUT_LANES = T_PER_PATCH * LLM_HIDDEN                     # 256 lane-dense output
LN_EPS = 1e-5

BLOCK_IMAGES = 32               # patch-images per grid step  -> M = 128 rows
BLOCK_M = BLOCK_IMAGES * T_PER_PATCH                      # 128


# --------------------------------- kernel -----------------------------------
def _make_visual_tokenizer_kernel(block_images):
    def kernel(rows_ref, w_ref, g_ref, b_ref, vte_ref, o_ref):
        """Fused: (fold+patch-embed+head) matmul -> LayerNorm -> softmax -> vte.

        rows_ref : [BLOCK_M, K_FUSED] bf16   im2col rows, token-major within the
                                             block, contraction ordered (fold, k)
        w_ref    : [K_FUSED, HEAD_DIM] bf16  precomputed w_pe (x) w_head fold fusion
        g_ref/b_ref : [1, HEAD_DIM] f32      LayerNorm affine
        vte_ref  : [HEAD_DIM, LLM_HIDDEN] bf16  vte_weight[:HEAD_DIM]
        o_ref    : [BLOCK_IMAGES, T*LLM_HIDDEN] f32  lane-dense output block
        """
        # One wide MXU matmul replaces the per-fold-sub-block matmul sum.
        logits = jnp.dot(rows_ref[...], w_ref[...],
                         preferred_element_type=jnp.float32)     # [128, 128] f32

        # LayerNorm (f32 math; v5e has no bf16 VPU/EUP)
        mean = jnp.mean(logits, axis=-1, keepdims=True)
        var = jnp.mean(jnp.square(logits - mean), axis=-1, keepdims=True)
        ln = (logits - mean) * lax.rsqrt(var + LN_EPS) * g_ref[...] + b_ref[...]

        # tokenize_function == 'softmax' (exact reciprocal: probs sum to 1)
        m = jnp.max(ln, axis=-1, keepdims=True)
        e = jnp.exp(ln - m)
        probs = e * pl.reciprocal(jnp.sum(e, axis=-1, keepdims=True), approx=False)

        # VisualEmbedding on float tokens.  The reference zero-pads probs to
        # VT_VOCAB AFTER the softmax, so probs @ vte_weight[:HEAD_DIM] is exact.
        emb = jnp.dot(probs.astype(jnp.bfloat16), vte_ref[...],
                      preferred_element_type=jnp.float32)        # [128, 64] f32

        # Rows are token-major (row = t*B + b): pack token t of every image
        # into lane group [t*64, (t+1)*64) -> single [32, 256] unmasked store.
        o_ref[...] = jnp.concatenate(
            [emb[t * block_images:(t + 1) * block_images, :]
             for t in range(T_PER_PATCH)], axis=-1)
    return kernel


# ------------------------------- wrapper ------------------------------------
def _im2col_rows_fused(px_bf16, block_images):
    """[N_pad, C, H, W] bf16 -> [nb*BLOCK_M, K_FUSED] rows in the kernel's order.

    Row (block i, r = t*B + b) is the fused contraction vector of patch-image
    i*B+b, visual token t, ordered (fold_sub_block, c, ph, pw) so it matches
    w_fused row ordering."""
    n = px_bf16.shape[0]
    nb = n // block_images
    hs = HIDDEN_STRIDE
    tg = GRID // hs
    assert GRID % hs == 0
    # TODO(synk): the hidden_stride padding branch (grid not divisible by
    #             hidden_stride) of VisualTokenizer.encode is not needed here.
    x = px_bf16.reshape(nb, block_images, C, tg, hs, PATCH, tg, hs, PATCH)
    #            dims:  blk  b             c  th  i   ph     tw  j   pw
    x = x.transpose(0, 3, 6, 1, 4, 7, 2, 5, 8)   # blk, th, tw, b, i, j, c, ph, pw
    return x.reshape(nb * T_PER_PATCH * block_images, K_FUSED)


def visual_tokenizer_vte_forward(pixel_values, params, block_images=BLOCK_IMAGES):
    """Fused VisualTokenizer.forward + vte matmul: [N,C,H,W] -> [N,T,LLM_HIDDEN]."""
    n = pixel_values.shape[0]
    nb = -(-n // block_images)
    n_pad = nb * block_images

    # cast to bf16 BEFORE the im2col transpose (halve wrapper HBM traffic)
    px = pixel_values.astype(jnp.bfloat16)
    if n_pad != n:
        px = jnp.pad(px, ((0, n_pad - n), (0, 0), (0, 0), (0, 0)))
    rows = _im2col_rows_fused(px, block_images)          # [nb*BLOCK_M, K_FUSED]

    w_fused = params["w_fused"]
    gamma, beta = params["ln_gamma"], params["ln_beta"]
    vte_vis = params["vte_weight_vis"]

    m_total = n_pad * T_PER_PATCH
    flops = (2 * m_total * K_FUSED * HEAD_DIM
             + 2 * m_total * HEAD_DIM * LLM_HIDDEN)
    transcendentals = m_total * (HEAD_DIM + 2)
    bytes_accessed = (rows.size * 2 + w_fused.size * 2 + vte_vis.size * 2
                      + (gamma.size + beta.size) * 4 + n_pad * OUT_LANES * 4)

    block_m = block_images * T_PER_PATCH
    out = pl.pallas_call(
        _make_visual_tokenizer_kernel(block_images),
        out_shape=jax.ShapeDtypeStruct((n_pad, OUT_LANES), jnp.float32),
        grid=(nb,),
        in_specs=[
            pl.BlockSpec((block_m, K_FUSED), lambda i: (i, 0)),
            pl.BlockSpec((K_FUSED, HEAD_DIM), lambda i: (0, 0)),
            pl.BlockSpec((1, HEAD_DIM), lambda i: (0, 0)),
            pl.BlockSpec((1, HEAD_DIM), lambda i: (0, 0)),
            pl.BlockSpec((HEAD_DIM, LLM_HIDDEN), lambda i: (0, 0)),
        ],
        out_specs=pl.BlockSpec((block_images, OUT_LANES), lambda i: (i, 0)),
        compiler_params=pltpu.CompilerParams(
            dimension_semantics=("parallel",),
            vmem_limit_bytes=32 * 1024 * 1024),
        cost_estimate=pl.CostEstimate(flops=flops,
                                      transcendentals=transcendentals,
                                      bytes_accessed=bytes_accessed),
    )(rows, w_fused, gamma, beta, vte_vis)

    # out[img, t*H:(t+1)*H] is visual token t of patch-image img
    return out[:n].reshape(n, T_PER_PATCH, LLM_HIDDEN)


# ------------------------------- model pieces -------------------------------
def vte_lookup(ids, vte_weight):
    """VisualEmbedding.forward for integer ids (embedding lookup)."""
    return vte_weight[ids]


def process_image_input(flat_pixel_values, indicator_tokens, patches_per_image,
                        params):
    """Ovis._process_image_input with a single gather instead of per-row cats."""
    indicator_per_image = [x + 1 if x > 1 else x + 2 for x in patches_per_image]

    # TODO(synk): AIMv2 / SigLIP transformer encoder layers (external modules)
    #             are not reproduced; the backbone is its patch embedding only.
    visual_embeds = visual_tokenizer_vte_forward(flat_pixel_values, params)
    total_p, t, hdim = visual_embeds.shape

    indicator_embeds = vte_lookup(indicator_tokens, params["vte_weight"])
    total_i = indicator_embeds.shape[0]

    combined = jnp.concatenate(
        [indicator_embeds, visual_embeds.reshape(total_p * t, hdim)], axis=0)

    # Static interleave order: [ind_0, vis_0(0..T-1), ind_1, vis_1, ..., ind_rest]
    order, sizes = [], []
    ind_off, vis_off = 0, 0
    for n_patch, n_ind in zip(patches_per_image, indicator_per_image):
        img_order = []
        for i in range(n_patch):
            img_order.append(ind_off + i)
            img_order.extend(total_i + (vis_off + i) * t + j for j in range(t))
        img_order.extend(range(ind_off + n_patch, ind_off + n_ind))
        order.extend(img_order)
        sizes.append(len(img_order))
        ind_off += n_ind
        vis_off += n_patch

    gathered = jnp.take(combined, jnp.asarray(order, dtype=jnp.int32), axis=0)

    outs, off = [], 0
    for s in sizes:
        outs.append(lax.slice_in_dim(gathered, off, off + s, axis=0))
        off += s
    return tuple(outs)


def get_input_embeddings(input_ids, vision_embeddings, llm_embed_weight):
    """llm.get_input_embeddings + merge_multimodal_embeddings at pad tokens."""
    text_embeds = llm_embed_weight[input_ids]                # [S, LLM_HIDDEN]
    if not vision_embeddings:
        return text_embeds
    mm_flat = jnp.concatenate(vision_embeddings, axis=0)     # [n_mm, LLM_HIDDEN]
    mask = input_ids == IMAGE_PAD_TOKEN_ID
    idx = jnp.clip(jnp.cumsum(mask) - 1, 0, mm_flat.shape[0] - 1)
    return jnp.where(mask[:, None], mm_flat[idx], text_embeds)


def ovis_forward(input_ids, pixel_values, indicator_tokens, patches_per_image,
                 params):
    vision_embeddings = process_image_input(
        pixel_values, indicator_tokens, patches_per_image, params)
    inputs_embeds = get_input_embeddings(
        input_ids, vision_embeddings, params["llm_embed_weight"])
    # TODO(synk): the language-model backbone (self.llm) is an external vLLM
    #             registered model; its transformer forward is not reproduced.
    return inputs_embeds


# ------------------------------ params setup ---------------------------------
def build_params(key):
    k_pe, k_head, k_g, k_b, k_vte, k_llm = jax.random.split(key, 6)
    w_pe = 0.02 * jax.random.normal(k_pe, (K_IM2COL, D_BACKBONE), jnp.float32)
    w_head = 0.02 * jax.random.normal(k_head, (HEAD_IN, HEAD_DIM), jnp.float32)
    vte_weight = 0.02 * jax.random.normal(k_vte, (VT_VOCAB, LLM_HIDDEN),
                                          jnp.float32)
    # Fold the hidden_stride space-to-depth + head linear into one fused weight:
    #   logits = sum_b (rows_b @ w_pe) @ w_head[b*D:(b+1)*D] == rows_wide @ w_fused
    w_head_r = w_head.reshape(HS2, D_BACKBONE, HEAD_DIM)
    w_fused = jnp.einsum("kd,bdh->bkh", w_pe, w_head_r).reshape(K_FUSED, HEAD_DIM)
    return {
        "w_fused": w_fused.astype(jnp.bfloat16),
        "ln_gamma": 1.0 + 0.05 * jax.random.normal(k_g, (1, HEAD_DIM),
                                                   jnp.float32),
        "ln_beta": 0.05 * jax.random.normal(k_b, (1, HEAD_DIM), jnp.float32),
        "vte_weight": vte_weight,                             # int lookup path
        "vte_weight_vis": vte_weight[:HEAD_DIM].astype(jnp.bfloat16),
        "llm_embed_weight": 0.02 * jax.random.normal(
            k_llm, (LLM_VOCAB, LLM_HIDDEN), jnp.float32),
    }


# ---------------------------------- main -------------------------------------
if __name__ == "__main__":
    key = jax.random.PRNGKey(0)
    k_params, k_px, k_ids = jax.random.split(key, 3)
    params = build_params(k_params)

    # two images, 64 patch-images total -> grid = 2 blocks of 32 (both TCs busy)
    patches_per_image = [40, 24]
    num_patches = sum(patches_per_image)
    pixel_values = jax.random.normal(k_px, (num_patches, C, H, W), jnp.float32)

    indicator_per_image = [x + 1 if x > 1 else x + 2 for x in patches_per_image]
    indicator_tokens = jnp.concatenate([
        jnp.array([VT_VOCAB - 1 - (i % NUM_INDICATOR_IDS) for i in range(k)],
                  dtype=jnp.int32)
        for k in indicator_per_image])

    # text sequence with exactly the right number of <image_pad> slots
    n_mm = sum(p * T_PER_PATCH + k
               for p, k in zip(patches_per_image, indicator_per_image))
    seq_len = n_mm + 16
    input_ids = jax.random.randint(k_ids, (seq_len,), 10, LLM_VOCAB, jnp.int32)
    input_ids = input_ids.at[jnp.arange(2, 2 + n_mm)].set(IMAGE_PAD_TOKEN_ID)

    out = ovis_forward(input_ids, pixel_values, indicator_tokens,
                       patches_per_image, params)
    jax.block_until_ready(out)
    assert out.shape == (seq_len, LLM_HIDDEN)
    print("KERNEL_OK")
</pallas_src>

<mosaic_0001>
module attributes {stable_mosaic.version = 11 : i64} {
  func.func @kernel(%arg0: i32, %arg1: memref<128x3072xbf16, #tpu.memory_space<vmem>>, %arg2: memref<3072x128xbf16, #tpu.memory_space<vmem>>, %arg3: memref<1x128xf32, #tpu.memory_space<vmem>>, %arg4: memref<1x128xf32, #tpu.memory_space<vmem>>, %arg5: memref<128x64xbf16, #tpu.memory_space<vmem>>, %arg6: memref<32x256xf32, #tpu.memory_space<vmem>>) attributes {dimension_semantics = [#tpu.dimension_semantics<parallel>], iteration_bounds = array<i64: 2>, scalar_prefetch = 0 : i64, scratch_operands = 0 : i64, tpu.core_type = #tpu.core_type<tc>, window_params = [{transform_indices = @transform_0, window_bounds = array<i64: 128, 3072>}, {pipeline_mode = #tpu.pipeline_mode<synchronous>, transform_indices = @transform_1, window_bounds = array<i64: 3072, 128>}, {pipeline_mode = #tpu.pipeline_mode<synchronous>, transform_indices = @transform_2, window_bounds = array<i64: 1, 128>}, {pipeline_mode = #tpu.pipeline_mode<synchronous>, transform_indices = @transform_3, window_bounds = array<i64: 1, 128>}, {pipeline_mode = #tpu.pipeline_mode<synchronous>, transform_indices = @transform_4, window_bounds = array<i64: 128, 64>}, {transform_indices = @transform_5, window_bounds = array<i64: 32, 256>}]} {
    %c0 = arith.constant 0 : index
    %c0_0 = arith.constant 0 : index
    %0 = vector.load %arg1[%c0, %c0_0] : memref<128x3072xbf16, #tpu.memory_space<vmem>>, vector<128x3072xbf16>
    %c0_1 = arith.constant 0 : index
    %c0_2 = arith.constant 0 : index
    %1 = vector.load %arg2[%c0_1, %c0_2] : memref<3072x128xbf16, #tpu.memory_space<vmem>>, vector<3072x128xbf16>
    %cst = arith.constant dense<0.000000e+00> : vector<128x128xf32>
    %2 = tpu.matmul %0, %1, %cst {dimension_numbers = #tpu.dot_dimension_numbers<[1], [0], [0], [1], [0, 0, 1, 1], [], []>} : vector<128x3072xbf16>, vector<3072x128xbf16>, vector<128x128xf32> -> vector<128x128xf32>
    %cst_3 = arith.constant dense<0.000000e+00> : vector<128xf32>
    %3 = vector.multi_reduction <add>, %2, %cst_3 [1] : vector<128x128xf32> to vector<128xf32>
    %4 = vector.shape_cast %3 : vector<128xf32> to vector<128x1xf32>
    %cst_4 = arith.constant 1.280000e+02 : f32
    %5 = vector.broadcast %cst_4 : f32 to vector<128x1xf32>
    %6 = arith.divf %4, %5 : vector<128x1xf32>
    %7 = vector.broadcast %6 : vector<128x1xf32> to vector<128x128xf32>
    %8 = arith.subf %2, %7 : vector<128x128xf32>
    %9 = arith.mulf %8, %8 : vector<128x128xf32>
    %cst_5 = arith.constant dense<0.000000e+00> : vector<128xf32>
    %10 = vector.multi_reduction <add>, %9, %cst_5 [1] : vector<128x128xf32> to vector<128xf32>
    %11 = vector.shape_cast %10 : vector<128xf32> to vector<128x1xf32>
    %cst_6 = arith.constant 1.280000e+02 : f32
    %12 = vector.broadcast %cst_6 : f32 to vector<128x1xf32>
    %13 = arith.divf %11, %12 : vector<128x1xf32>
    %14 = vector.broadcast %6 : vector<128x1xf32> to vector<128x128xf32>
    %15 = arith.subf %2, %14 : vector<128x128xf32>
    %cst_7 = arith.constant 9.99999974E-6 : f32
    %16 = vector.broadcast %cst_7 : f32 to vector<128x1xf32>
    %17 = arith.addf %13, %16 : vector<128x1xf32>
    %18 = math.rsqrt %17 : vector<128x1xf32>
    %19 = vector.broadcast %18 : vector<128x1xf32> to vector<128x128xf32>
    %20 = arith.mulf %15, %19 : vector<128x128xf32>
    %c0_8 = arith.constant 0 : index
    %c0_9 = arith.constant 0 : index
    %21 = vector.load %arg3[%c0_8, %c0_9] : memref<1x128xf32, #tpu.memory_space<vmem>>, vector<1x128xf32>
    %22 = vector.broadcast %21 : vector<1x128xf32> to vector<128x128xf32>
    %23 = arith.mulf %20, %22 : vector<128x128xf32>
    %c0_10 = arith.constant 0 : index
    %c0_11 = arith.constant 0 : index
    %24 = vector.load %arg4[%c0_10, %c0_11] : memref<1x128xf32, #tpu.memory_space<vmem>>, vector<1x128xf32>
    %25 = vector.broadcast %24 : vector<1x128xf32> to vector<128x128xf32>
    %26 = arith.addf %23, %25 : vector<128x128xf32>
    %cst_12 = arith.constant dense<0xFF800000> : vector<128xf32>
    %27 = vector.multi_reduction <maximumf>, %26, %cst_12 [1] : vector<128x128xf32> to vector<128xf32>
    %28 = vector.shape_cast %27 : vector<128xf32> to vector<128x1xf32>
    %29 = vector.broadcast %28 : vector<128x1xf32> to vector<128x128xf32>
    %30 = arith.subf %26, %29 : vector<128x128xf32>
    %31 = math.exp %30 : vector<128x128xf32>
    %cst_13 = arith.constant dense<0.000000e+00> : vector<128xf32>
    %32 = vector.multi_reduction <add>, %31, %cst_13 [1] : vector<128x128xf32> to vector<128xf32>
    %33 = vector.shape_cast %32 : vector<128xf32> to vector<128x1xf32>
    %34 = tpu.reciprocal %33 : vector<128x1xf32> -> vector<128x1xf32>
    %35 = vector.broadcast %34 : vector<128x1xf32> to vector<128x128xf32>
    %36 = arith.mulf %31, %35 : vector<128x128xf32>
    %37 = arith.truncf %36 : vector<128x128xf32> to vector<128x128xbf16>
    %c0_14 = arith.constant 0 : index
    %c0_15 = arith.constant 0 : index
    %38 = vector.load %arg5[%c0_14, %c0_15] : memref<128x64xbf16, #tpu.memory_space<vmem>>, vector<128x64xbf16>
    %cst_16 = arith.constant dense<0.000000e+00> : vector<128x64xf32>
    %39 = tpu.matmul %37, %38, %cst_16 {dimension_numbers = #tpu.dot_dimension_numbers<[1], [0], [0], [1], [0, 0, 1, 1], [], []>} : vector<128x128xbf16>, vector<128x64xbf16>, vector<128x64xf32> -> vector<128x64xf32>
    %40 = vector.extract_strided_slice %39 {offsets = [0, 0], sizes = [32, 64], strides = [1, 1]} : vector<128x64xf32> to vector<32x64xf32>
    %41 = vector.extract_strided_slice %39 {offsets = [32, 0], sizes = [32, 64], strides = [1, 1]} : vector<128x64xf32> to vector<32x64xf32>
    %42 = vector.extract_strided_slice %39 {offsets = [64, 0], sizes = [32, 64], strides = [1, 1]} : vector<128x64xf32> to vector<32x64xf32>
    %43 = vector.extract_strided_slice %39 {offsets = [96, 0], sizes = [32, 64], strides = [1, 1]} : vector<128x64xf32> to vector<32x64xf32>
    %44 = tpu.concatenate %40, %41, %42, %43 in 1 : vector<32x64xf32>, vector<32x64xf32>, vector<32x64xf32>, vector<32x64xf32> -> vector<32x256xf32>
    %c0_17 = arith.constant 0 : index
    %c0_18 = arith.constant 0 : index
    %45 = vector.load %arg6[%c0_17, %c0_18] : memref<32x256xf32, #tpu.memory_space<vmem>>, vector<32x256xf32>
    tpu.vector_store %arg6[%c0_17, %c0_18], %44 {strides = array<i32>} : memref<32x256xf32, #tpu.memory_space<vmem>>, vector<32x256xf32>,
    return
  }
  func.func @transform_0(%arg0: i32) -> (i32, i32) {
    %c0_i32 = arith.constant 0 : i32
    %c0_i32_0 = arith.constant 0 : i32
    return %arg0, %c0_i32 : i32, i32
  }
  func.func @transform_1(%arg0: i32) -> (i32, i32) {
    %c0_i32 = arith.constant 0 : i32
    %c0_i32_0 = arith.constant 0 : i32
    %c0_i32_1 = arith.constant 0 : i32
    return %c0_i32, %c0_i32_0 : i32, i32
  }
  func.func @transform_2(%arg0: i32) -> (i32, i32) {
    %c0_i32 = arith.constant 0 : i32
    %c0_i32_0 = arith.constant 0 : i32
    %c0_i32_1 = arith.constant 0 : i32
    return %c0_i32, %c0_i32_0 : i32, i32
  }
  func.func @transform_3(%arg0: i32) -> (i32, i32) {
    %c0_i32 = arith.constant 0 : i32
    %c0_i32_0 = arith.constant 0 : i32
    %c0_i32_1 = arith.constant 0 : i32
    return %c0_i32, %c0_i32_0 : i32, i32
  }
  func.func @transform_4(%arg0: i32) -> (i32, i32) {
    %c0_i32 = arith.constant 0 : i32
    %c0_i32_0 = arith.constant 0 : i32
    %c0_i32_1 = arith.constant 0 : i32
    return %c0_i32, %c0_i32_0 : i32, i32
  }
  func.func @transform_5(%arg0: i32) -> (i32, i32) {
    %c0_i32 = arith.constant 0 : i32
    %c0_i32_0 = arith.constant 0 : i32
    return %arg0, %c0_i32 : i32, i32
  }
}

</mosaic_0001>

<bundles_post_ra>
// kernel: tpu_custom_call.1
= control target key start
LH: loop header
LB: loop body
LE: loop exit
PB: predicated region body
PF: predicated region fallthrough
CT: control target
= control target key end

     0   :  { %10 = vsyncpa [#allocation3], 0  ;;  %s7835_s0 = inlined_call_operand.hbm [shape: bf16[256,3072], index: 0, kind: input, shape index: {}]   ;;  %s7836_s1 = inlined_call_operand.hbm [shape: bf16[3072,128], index: 1, kind: input, shape index: {}]   ;;  %s7837_s2 = inlined_call_operand.hbm [shape: f32[1,128], index: 2, kind: input, shape index: {}]   ;;  %s7838_s3 = inlined_call_operand.hbm [shape: f32[1,128], index: 3, kind: input, shape index: {}]   ;;  %s7839_s4 = inlined_call_operand.vmem [shape: bf16[128,64], index: 4, kind: input, shape index: {}]   ;;  %s7840_s5 = inlined_call_operand.hbm [shape: f32[64,256], index: 5, kind: output, shape index: {}]  }
   0x1   :  { %12 = vsyncpa [#allocation3 + $0x1], 0 }
   0x2   :  { %13 = vsyncpa [#allocation6], 0 }
   0x3   :  { %14 = vsyncpa [#allocation9], 0 }
   0x4   :  { %15 = vsyncpa [#allocation4], 0 }
   0x5   :  { %17 = vsyncpa [#allocation4 + $0x1], 0  ;;  %s6704_s18 = smov 0   ;;  %s6706_s19 = smov 0  }
   0x6   :  { %s6708_s20 = smov 0   ;;  %s6710_s21 = smov 0  }
   0x7 LB: > { %s6725_s22 = sadd.s32 4294967295, %s6660_s21   ;;  %s4841_s23 = sadd.s32 4294967294, %s6660_s21   ;;  %s6660_s21 = sphi %s6710_s21, %s7863_s21   ;;  %s6656_s20 = sphi %s6708_s20, %s7862_s20   ;;  %s6652_s19 = sphi %s6706_s19, %s7861_s19   ;;  %s6648_s18 = sphi %s6704_s18, %s7860_s18  }
   0x8   : > { %p43_p0 = scmp.ne.s32.totalorder %s6652_s19, %s6648_s18  ;;  %p7841_p1 = scmp.eq.s32.totalorder %s6725_s22, 0 }
   0x9   : > { %p157_p3 = scmp.eq.s32.totalorder %s4841_s23, 1  ;;  %p4842_p5 = scmp.ge.s32.totalorder %s6660_s21, 1 }
   0xa   : > { %p6734_p4 = por %p7841_p1, %p43_p0  ;;  %p164_p7 = scmp.lt.s32.totalorder %s6660_s21, 3 }
   0xb   : > { %p6739_p6 = por %p157_p3, %p43_p0  ;;  %s6662_s27 = smov [#allocation5]  }
   0xc   : > { %s7844_s24 = scalar_select %p6734_p4, 1, 0 }
   0xd   : > { %s7845_s25 = scalar_select %p6739_p6, 1, 0 }
   0xe   : > { %p6744_p8 = pnand %p4842_p5, %p164_p7  ;;  %s176_s28 = sshll.u32 %s6662_s27, 4  ;;  %s6748_s28 = int_to_ptr.vmem [resolvable:$true] %s176_s28 }
   0xf   : > { %s6663_s30 = smov [#allocation7]   ;;  %s6664_s7 = smov [#allocation8]  }
  0x10   : > { %s7846_s26 = scalar_select %p6744_p8, 1, 0 }
  0x11   : > { %p6108_p9 = pneg %p6744_p8  ;;  %s190_s6 = sshll.u32 %s6663_s30, 4  ;;  %s6759_s6 = int_to_ptr.vmem [resolvable:$true] %s190_s6 }
  0x12   : > { %s6761_s8 = sshll.u32 %s6664_s7, 4  ;;  %s6472_s11 = scalar_lea.hbm %s7836_s1, 24576  ;;  %s202_s8 = int_to_ptr.vmem [resolvable:$true] %s6761_s8 }
  0x13   : > { %p6755_p11 = pnand %p6108_p9, %p7841_p1  ;;  %p6473_p12 = scmp.ne.s32.totalorder %s7836_s1, %s6472_s11 }
  0x14   : > { %p6479_p5 = scmp.lt.u32.totalorder %s6472_s11, %s7836_s1 }
  0x15   : > { %p6771_p13 = pneg %p6755_p11 }
  0x17   : > { %p6475_p0 = pnand %p6771_p13, %p6473_p12 }
  0x19   : > { %p6476_p3 = pneg %p6475_p0 }
  0x1b   : > { %p6481_p7 = pnand %p6479_p5, %p6476_p3 }
  0x1d   : > { %6484 = shalt.err (!%p6481_p7)
}
  0x1e   : > { %s6485_s17 = scalar_lea.vmem %s6748_s28, 24576  ;;  %p6493_p2 = scmp.lt.s32.totalorder %s6748_s28, %s6748_s28 }
  0x1f   : > { %p6486_p9 = scmp.ne.s32.totalorder %s6748_s28, %s6485_s17  ;;  %p6494_p6 = scmp.lt.s32.totalorder %s6485_s17, %s6485_s17 }
  0x21   : > { %p6488_p10 = pnand %p6486_p9, %p6771_p13  ;;  %p6495_p12 = por %p6494_p6, %p6493_p2 }
  0x23   : > { %p6489_p1 = pneg %p6488_p10 }
  0x25   : > { %p6496_p0 = pnand %p6495_p12, %p6489_p1 }
  0x27   : > { %6499 = shalt.err (!%p6496_p0)
}
  0x28   : > { %s6665_s23 = smov 64   ;;  %s6666_s27 = smov 4  }
  0x29   : > { %6111 = dma.hbm_to_vmem [thread:$0]  (!%p6755_p11), %s7836_s1, 24576, %s6748_s28, [#allocation6], %s6665_s23, %s6665_s23, %s6666_s27  }
  0x2a   : > { %s6500_s11 = scalar_lea.hbm %s7837_s2, 16 }
  0x2b   : > { %p6501_p2 = scmp.ne.s32.totalorder %s7837_s2, %s6500_s11  ;;  %p6507_p10 = scmp.lt.u32.totalorder %s6500_s11, %s7837_s2 }
  0x2d   : > { %p6503_p1 = pnand %p6501_p2, %p6771_p13 }
  0x2f   : > { %p6504_p6 = pneg %p6503_p1 }
  0x31   : > { %p6509_p3 = pnand %p6507_p10, %p6504_p6 }
  0x33   : > { %6512 = shalt.err (!%p6509_p3)
}
  0x34   : > { %s6513_s28 = scalar_lea.vmem %s6759_s6, 16  ;;  %s6520_s17 = scalar_lea.vmem %s6759_s6, 32 }
  0x35   : > { %p6514_p5 = scmp.ne.s32.totalorder %s6759_s6, %s6513_s28  ;;  %p6521_p12 = scmp.lt.s32.totalorder %s6759_s6, %s6759_s6 }
  0x36   : > { %p6522_p0 = scmp.lt.s32.totalorder %s6520_s17, %s6513_s28 }
  0x37   : > { %p6516_p7 = pnand %p6514_p5, %p6771_p13 }
  0x38   : > { %p6523_p2 = por %p6522_p0, %p6521_p12 }
  0x39   : > { %p6517_p9 = pneg %p6516_p7 }
  0x3b   : > { %p6524_p1 = pnand %p6523_p2, %p6517_p9 }
  0x3d   : > { %6527 = shalt.err (!%p6524_p1)
}
  0x3e   : > { %6114 = dma.hbm_to_vmem [thread:$0]  (!%p6755_p11), %s7837_s2, 16, %s6759_s6, [#allocation6]  }
  0x3f   : > { %s6528_s9 = scalar_lea.hbm %s7838_s3, 16 }
  0x40   : > { %p6529_p6 = scmp.ne.s32.totalorder %s7838_s3, %s6528_s9  ;;  %p6535_p5 = scmp.lt.u32.totalorder %s6528_s9, %s7838_s3 }
  0x42   : > { %p6531_p10 = pnand %p6529_p6, %p6771_p13 }
  0x44   : > { %p6532_p3 = pneg %p6531_p10 }
  0x46   : > { %p6537_p7 = pnand %p6535_p5, %p6532_p3 }
  0x48   : > { %6540 = shalt.err (!%p6537_p7)
}
  0x49   : > { %s6541_s15 = scalar_lea.vmem %s202_s8, 16  ;;  %s6548_s6 = scalar_lea.vmem %s202_s8, 32 }
  0x4a   : > { %p6542_p9 = scmp.ne.s32.totalorder %s202_s8, %s6541_s15  ;;  %p6549_p2 = scmp.lt.s32.totalorder %s202_s8, %s202_s8 }
  0x4b   : > { %p6550_p1 = scmp.lt.s32.totalorder %s6548_s6, %s6541_s15 }
  0x4c   : > { %p6544_p12 = pnand %p6542_p9, %p6771_p13 }
  0x4d   : > { %p6551_p4 = por %p6550_p1, %p6549_p2 }
  0x4e   : > { %p6545_p0 = pneg %p6544_p12 }
  0x50   : > { %p6552_p8 = pnand %p6551_p4, %p6545_p0 }
  0x52   : > { %6555 = shalt.err (!%p6552_p8)
}
  0x53   : > { %6117 = dma.hbm_to_vmem [thread:$0]  (!%p6755_p11), %s7838_s3, 16, %s202_s8, [#allocation9]  }
  0x54   : > { %s6836_s14 = sadd.s32 1, %s6660_s21   ;;  %s30_s29 = sadd.s32 1, %s6656_s20 }
  0x55   : > { %s27_s17 = ssub.s32 %s6660_s21, %s6836_s14  ;;  %p37_p8 = scmp.ne.s32.totalorder %s6656_s20, %s6652_s19 }
  0x56   : > { %p28_p4 = scmp.eq.s32.totalorder %s27_s17, 0  ;;  %p38_p13 = scmp.eq.s32.totalorder %s6660_s21, 0 }
  0x57   : > { %p6129_p6 = scmp.lt.s32.totalorder %s6660_s21, 2  ;;  %p7849_p3 = scmp.eq.s32.totalorder %s6725_s22, 1 }
  0x58   : > { %s6846_s23 = scalar_select %p28_p4, %s6656_s20, %s30_s29  }
  0x59   : > { %p39_p10 = por %p38_p13, %p37_p8  ;;  %p6850_p5 = por %p7849_p3, %p37_p8 }
  0x5a   : > { %s215_s30 = sand.u32 1, %s6656_s20   ;;  %s6090_s7 = smul.u32 24576, %s6660_s21 }
  0x5b   : > { %s6089_s8 = smul.u32 1536, %s215_s30  ;;  %p6861_p11 = pnand %p6129_p6, %p39_p10 }
  0x5c   : > { %s6859_s11 = scalar_lea.hbm %s7835_s0, %s6090_s7  ;;  %s6867_s6 = scalar_lea.sflag [#allocation3], %s215_s30 }
  0x5d   : > { %s219_s13 = scalar_lea.vmem [#allocation2], %s6089_s8  ;;  %s6556_s16 = scalar_lea.hbm %s6859_s11, 24576 }
  0x5e   : > { %s227_s15 = sshll.u32 %s219_s13, 4  ;;  %p6557_p7 = scmp.ne.s32.totalorder %s6859_s11, %s6556_s16  ;;  %s6865_s15 = int_to_ptr.vmem [resolvable:$true] %s227_s15 }
  0x5f   : > { %p6558_p9 = pneg %p6861_p11  ;;  %s6561_s29 = scalar_lea.hbm %s7835_s0, 49152 }
  0x60   : > { %p6562_p2 = scmp.lt.u32.totalorder %s6859_s11, %s7835_s0  ;;  %p6563_p1 = scmp.lt.u32.totalorder %s6561_s29, %s6556_s16 }
  0x61   : > { %p6559_p12 = pnand %p6558_p9, %p6557_p7  ;;  %p6565_p8 = scmp.lt.u32.totalorder %s6556_s16, %s6859_s11 }
  0x62   : > { %p6564_p4 = por %p6563_p1, %p6562_p2 }
  0x63   : > { %p6560_p0 = pneg %p6559_p12 }
  0x64   : > { %p6566_p13 = por %p6565_p8, %p6564_p4 }
  0x66   : > { %p6567_p6 = pnand %p6566_p13, %p6560_p0 }
  0x68   : > { %6570 = shalt.err (!%p6567_p6)
}
  0x69   : > { %s6571_s30 = scalar_lea.vmem %s6865_s15, 24576  ;;  %s6667_s8 = smov [#allocation2]  }
  0x6a   : > { %p6572_p10 = scmp.ne.s32.totalorder %s6865_s15, %s6571_s30  ;;  %s6576_s10 = sshll.u32 %s6667_s8, 4  ;;  %s6577_s10 = int_to_ptr.vmem [resolvable:$false] %s6576_s10 }
  0x6b   : > { %s6578_s13 = scalar_lea.vmem %s6577_s10, 49152  ;;  %p6579_p12 = scmp.lt.s32.totalorder %s6865_s15, %s6577_s10 }
  0x6c   : > { %p6574_p3 = pnand %p6572_p10, %p6558_p9  ;;  %p6580_p2 = scmp.lt.s32.totalorder %s6578_s13, %s6571_s30 }
  0x6e   : > { %p6575_p7 = pneg %p6574_p3  ;;  %p6581_p1 = por %p6580_p2, %p6579_p12 }
  0x70   : > { %p6582_p4 = pnand %p6581_p1, %p6575_p7 }
  0x72   : > { %6585 = shalt.err (!%p6582_p4)
}
  0x73   : > { %s6668_s16 = smov 1536   ;;  %s6669_s28 = smov 96  }
  0x74   : > { %6121 = dma.hbm_to_vmem [thread:$0]  (!%p6861_p11), %s6859_s11, 24576, %s6865_s15, %s6867_s6, %s6668_s16, %s6668_s16, %s6669_s28  }
  0x75   : > { %p7852_p9 = scmp.ne.s32.totalorder %s7846_s26, 0 }
  0x76   : > { %s6898_s17 = sand.u32 (!%p7852_p9), 1, %s6652_s19   ;;  %p7853_p0 = scmp.ne.s32.totalorder (!%p7852_p9), %s7844_s24, 0 }
  0x77   : > { %239 = sbr.rel (%p7852_p9) target bundleno = 1740 (0x6cc), region = 40  ;;  %s242_s7 = scalar_lea.sflag (!%p7852_p9), [#allocation3], %s6898_s17 }
  0x78   : > { %s6091_s29 = smul.u32 (!%p7852_p9), 1536, %s6898_s17 }
  0x7a   : > { %s6902_s9 = scalar_lea.vmem (!%p7852_p9), [#allocation2], %s6091_s29 }
  0x7e   : > { %6631 = dma.done.wait (%p7853_p0), %s242_s7, 24576  }
  0x7f   : > { %6633 = vsyncadd (%p7853_p0), %s242_s7, 4294942720  ;;  %p7854_p11 = scmp.eq.s32.totalorder %s6725_s22, 0 }
  0x81   : > { %6635 = dma.done.wait (%p7854_p11), [#allocation6], 24592   ;;  %p7855_p8 = pmov %p7854_p11 }
  0x83   : > { %6637 = vsyncadd (%p7855_p8), [#allocation6], 4294942704  ;;  %p7856_p13 = pmov %p7855_p8 }
  0x84   : > { %p7857_p6 = pmov %p7855_p8 }
  0x85   : > { %6639 = dma.done.wait (%p7856_p13), [#allocation9], 16  }
  0x86   : > { %6641 = vsyncadd (%p7857_p6), [#allocation9], 4294967280  ;;  %v6176_v0 = vld [vmem:[#allocation5 + $0x40] sm:$0xff]   ;;  %v6180_v4 = vld [vmem:[#allocation5 + $0x48] sm:$0xff]   ;;  %s6670_s26 = smov 64   ;;  %s4854_s11 = sshll.u32 %s6898_s17, 6 }
  0x87   : > { %v6177_v1 = vld [vmem:[#allocation5 + $0xc0] sm:$0xff]   ;;  %5257 = vmatprep.subr.bf16.mxu0 %v6176_v0  ;;  %v6181_v5 = vld [vmem:[#allocation5 + $0xc8] sm:$0xff]   ;;  %v6184_v8 = vld [vmem:[#allocation5 + $0x50] sm:$0xff]   ;;  %vm4707_vm0 = vcmask 523264   ;;  %s283_s12 = scalar_lea.vmem [#allocation10], %s4854_s11  ;;  %s5256_s6 = sshll.u32 %s6725_s22, 10 }
  0x88   : > { %v6178_v2 = vld [vmem:[#allocation5] sm:$0xff]   ;;  %5321 = vmatprep.subr.bf16.mxu1 %v6177_v1  ;;  %v6182_v6 = vld [vmem:[#allocation5 + $0x8] sm:$0xff]   ;;  %v6185_v9 = vld [vmem:[#allocation5 + $0xd0] sm:$0xff]   ;;  %s4739_s15 = sshll.u32 %s283_s12, 4  ;;  %s7790_s10 = scalar_lea.hbm %s7840_s5, %s5256_s6  ;;  %s7784_s15 = int_to_ptr.vmem [resolvable:$true] %s4739_s15 }
  0x89   : > { %v6179_v3 = vld [vmem:[#allocation5 + $0x80] sm:$0xff]   ;;  %5258 = vmatpush3.bf16.msra.mxu0 %v6178_v2  ;;  %v6183_v7 = vld [vmem:[#allocation5 + $0x88] sm:$0xff]   ;;  %v6186_v10 = vld [vmem:[#allocation5 + $0x10] sm:$0xff]   ;;  %s4725_s22 = scalar_lea.sflag [#allocation4], %s6898_s17  ;;  %s6586_s13 = scalar_lea.vmem %s7784_s15, 1024 }
  0x8a   : > { %5322 = vmatpush3.bf16.msra.mxu1 %v6179_v3  ;;  %5259 = vmatprep.subr.bf16.mxu0 %v6180_v4  ;;  %v6187_v11 = vld [vmem:[#allocation5 + $0x90] sm:$0xff]   ;;  %v6188_v12 = vld [vmem:[#allocation5 + $0x58] sm:$0xff]   ;;  %v6192_v16 = vld [vmem:[#allocation5 + $0x60] sm:$0xff]   ;;  %p6587_p10 = scmp.ne.s32.totalorder %s7784_s15, %s6586_s13  ;;  %s6671_s16 = smov [#allocation10]  }
  0x8b   : > { %5323 = vmatprep.subr.bf16.mxu1 %v6181_v5  ;;  %v6189_v13 = vld [vmem:[#allocation5 + $0xd8] sm:$0xff]   ;;  %v6193_v17 = vld [vmem:[#allocation5 + $0xe0] sm:$0xff]   ;;  %v6196_v20 = vld [vmem:[#allocation5 + $0x68] sm:$0xff]   ;;  %s6590_s28 = sshll.u32 %s6671_s16, 4  ;;  %s6591_s28 = int_to_ptr.vmem [resolvable:$false] %s6590_s28 }
  0x8c   : > { %v6190_v14 = vld [vmem:[#allocation5 + $0x18] sm:$0xff]   ;;  %v6194_v18 = vld [vmem:[#allocation5 + $0x20] sm:$0xff]   ;;  %v6197_v21 = vld [vmem:[#allocation5 + $0xe8] sm:$0xff]   ;;  %p6588_p3 = pnand %p6587_p10, %p6850_p5  ;;  %s6592_s29 = scalar_lea.vmem %s6591_s28, 2048 }
  0x8d   : > { %5260 = vmatpush3.bf16.msra.mxu0 %v6182_v6  ;;  %v6191_v15 = vld [vmem:[#allocation5 + $0x98] sm:$0xff]   ;;  %v6195_v19 = vld [vmem:[#allocation5 + $0xa0] sm:$0xff]   ;;  %v6198_v22 = vld [vmem:[#allocation5 + $0x28] sm:$0xff]   ;;  %p6593_p12 = scmp.lt.s32.totalorder %s7784_s15, %s6591_s28  ;;  %p6594_p2 = scmp.lt.s32.totalorder %s6592_s29, %s6586_s13 }
  0x8e   : > { %5324 = vmatpush3.bf16.msra.mxu1 %v6183_v7  ;;  %5261 = vmatprep.subr.bf16.mxu0 %v6184_v8  ;;  %v6199_v23 = vld [vmem:[#allocation5 + $0xa8] sm:$0xff]   ;;  %v6200_v24 = vld [vmem:[#allocation5 + $0x70] sm:$0xff]   ;;  %v6204_v28 = vld [vmem:[#allocation5 + $0x78] sm:$0xff]   ;;  %p6589_p7 = pneg %p6588_p3 }
  0x8f   : > { %5325 = vmatprep.subr.bf16.mxu1 %v6185_v9  ;;  %v6201_v25 = vld [vmem:[#allocation5 + $0xf0] sm:$0xff]   ;;  %v6205_v29 = vld [vmem:[#allocation5 + $0xf8] sm:$0xff]   ;;  %v287_v32 = vld [vmem:[%s6902_s9] sm:$0xff]  ;;  %p6595_p1 = por %p6594_p2, %p6593_p12 }
  0x90   : > { %v6202_v26 = vld [vmem:[#allocation5 + $0x30] sm:$0xff]   ;;  %v6206_v30 = vld [vmem:[#allocation5 + $0x38] sm:$0xff]   ;;  %v299_v33 = vld [vmem:[%s6902_s9 + $0x60] sm:$0xff] }
  0x91   : > { %5262 = vmatpush3.bf16.msra.mxu0 %v6186_v10  ;;  %v6203_v27 = vld [vmem:[#allocation5 + $0xb0] sm:$0xff]   ;;  %v6207_v31 = vld [vmem:[#allocation5 + $0xb8] sm:$0xff]   ;;  %v288_v34 = vld [vmem:[%s6902_s9 + $0x8] sm:$0xff]  ;;  %v4855_v35 = vcombine.low %v287_v32, %v299_v33  ;;  %v4856_v36 = vcombine.high %v287_v32, %v299_v33  ;;  %p6596_p4 = pnand %p6595_p1, %p6589_p7 }
  0x92   : > { %5326 = vmatpush3.bf16.msra.mxu1 %v6187_v11  ;;  %5263 = vmatprep.subr.bf16.mxu0 %v6188_v12  ;;  %v300_v37 = vld [vmem:[%s6902_s9 + $0x68] sm:$0xff]  ;;  %v6208_v40 = vld [vmem:[#allocation5 + $0x140] sm:$0xff]   ;;  %v6216_v62 = vld [vmem:[#allocation5 + $0x150] sm:$0xff]  }
  0x93   : > { %5327 = vmatprep.subr.bf16.mxu1 %v6189_v13  ;;  %v4857_v38 = vcombine.low %v288_v34, %v300_v37  ;;  %v4858_v39 = vcombine.high %v288_v34, %v300_v37  ;;  %3007 = vmatprep.mubr.bf16.mxu0 %v4856_v36  ;;  %v6209_v41 = vld [vmem:[#allocation5 + $0x100] sm:$0xff]   ;;  %v312_v47 = vld [vmem:[%s6902_s9 + $0xc8] sm:$0xff]  ;;  %v6217_v63 = vld [vmem:[#allocation5 + $0x110] sm:$0xff]  }
  0x94   : > { %v6210_v42 = vld [vmem:[#allocation5 + $0x1c0] sm:$0xff]   ;;  %v324_v48 = vld [vmem:[%s6902_s9 + $0x128] sm:$0xff]  ;;  %v6218_v0 = vld [vmem:[#allocation5 + $0x1d0] sm:$0xff]  }
  0x95   : > { %5264 = vmatpush3.bf16.msra.mxu0 %v6190_v14  ;;  %3104 = vmatprep.mubr.bf16.mxu1 %v4858_v39  ;;  %v6211_v43 = vld [vmem:[#allocation5 + $0x180] sm:$0xff]   ;;  %v4882_v49 = vcombine.high %v312_v47, %v324_v48  ;;  %v6212_v50 = vld [vmem:[#allocation5 + $0x148] sm:$0xff]   ;;  %v4881_v53 = vcombine.low %v312_v47, %v324_v48  ;;  %v6219_v1 = vld [vmem:[#allocation5 + $0x190] sm:$0xff]  }
  0x96   : > { %5328 = vmatpush3.bf16.msra.mxu1 %v6191_v15  ;;  %5265 = vmatprep.subr.bf16.mxu0 %v6192_v16  ;;  %v311_v44 = vld [vmem:[%s6902_s9 + $0xc0] sm:$0xff]  ;;  %v6213_v52 = vld [vmem:[#allocation5 + $0x108] sm:$0xff]   ;;  %v6220_v10 = vld [vmem:[#allocation5 + $0x158] sm:$0xff]  }
  0x97   : > { %5329 = vmatprep.subr.bf16.mxu1 %v6193_v17  ;;  %v323_v45 = vld [vmem:[%s6902_s9 + $0x120] sm:$0xff]  ;;  %v6214_v54 = vld [vmem:[#allocation5 + $0x1c8] sm:$0xff]   ;;  %v6221_v11 = vld [vmem:[#allocation5 + $0x118] sm:$0xff]  }
  0x98   : > { %v4880_v46 = vcombine.high %v311_v44, %v323_v45  ;;  %v4879_v51 = vcombine.low %v311_v44, %v323_v45  ;;  %v6215_v55 = vld [vmem:[#allocation5 + $0x188] sm:$0xff]   ;;  %v335_v56 = vld [vmem:[%s6902_s9 + $0x180] sm:$0xff]  ;;  %v6222_v12 = vld [vmem:[#allocation5 + $0x1d8] sm:$0xff]  }
  0x99   : > { %5266 = vmatpush3.bf16.msra.mxu0 %v6194_v18  ;;  %v347_v57 = vld [vmem:[%s6902_s9 + $0x1e0] sm:$0xff]  ;;  %v336_v58 = vld [vmem:[%s6902_s9 + $0x188] sm:$0xff]  ;;  %v6223_v13 = vld [vmem:[#allocation5 + $0x198] sm:$0xff]  }
  0x9a   : > { %5330 = vmatpush3.bf16.msra.mxu1 %v6195_v19  ;;  %5267 = vmatprep.subr.bf16.mxu0 %v6196_v20  ;;  %v348_v59 = vld [vmem:[%s6902_s9 + $0x1e8] sm:$0xff]  ;;  %v4904_v60 = vcombine.high %v335_v56, %v347_v57  ;;  %v4903_v2 = vcombine.low %v335_v56, %v347_v57  ;;  %v359_v3 = vld [vmem:[%s6902_s9 + $0x240] sm:$0xff]  ;;  %v6233_v39 = vld [vmem:[#allocation5 + $0x130] sm:$0xff]  }
  0x9b   : > { %5331 = vmatprep.subr.bf16.mxu1 %v6197_v21  ;;  %v4906_v61 = vcombine.high %v336_v58, %v348_v59  ;;  %v371_v4 = vld [vmem:[%s6902_s9 + $0x2a0] sm:$0xff]  ;;  %v360_v5 = vld [vmem:[%s6902_s9 + $0x248] sm:$0xff]  ;;  %v4905_v6 = vcombine.low %v336_v58, %v348_v59  ;;  %v6237_v48 = vld [vmem:[#allocation5 + $0x138] sm:$0xff]  }
  0x9c   : > { %v4928_v7 = vcombine.high %v359_v3, %v371_v4  ;;  %v372_v8 = vld [vmem:[%s6902_s9 + $0x2a8] sm:$0xff]  ;;  %v383_v14 = vld [vmem:[%s6902_s9 + $0x300] sm:$0xff]  ;;  %v4927_v19 = vcombine.low %v359_v3, %v371_v4  ;;  %v302_v3 = vld [vmem:[%s6902_s9 + $0x78] sm:$0xff] }
  0x9d   : > { %5268 = vmatpush3.bf16.msra.mxu0 %v6198_v22  ;;  %v4930_v9 = vcombine.high %v360_v5, %v372_v8  ;;  %v395_v15 = vld [vmem:[%s6902_s9 + $0x360] sm:$0xff]  ;;  %v384_v16 = vld [vmem:[%s6902_s9 + $0x308] sm:$0xff]  ;;  %v4929_v21 = vcombine.low %v360_v5, %v372_v8  ;;  %v313_v8 = vld [vmem:[%s6902_s9 + $0xd0] sm:$0xff] }
  0x9e   : > { %5332 = vmatpush3.bf16.msra.mxu1 %v6199_v23  ;;  %5269 = vmatprep.subr.bf16.mxu0 %v6200_v24  ;;  %v396_v17 = vld [vmem:[%s6902_s9 + $0x368] sm:$0xff]  ;;  %v6224_v18 = vld [vmem:[#allocation5 + $0x160] sm:$0xff]   ;;  %v4952_v22 = vcombine.high %v383_v14, %v395_v15  ;;  %v4951_v34 = vcombine.low %v383_v14, %v395_v15 }
  0x9f   : > { %5333 = vmatprep.subr.bf16.mxu1 %v6201_v25  ;;  %v6225_v20 = vld [vmem:[#allocation5 + $0x120] sm:$0xff]   ;;  %v4954_v24 = vcombine.high %v384_v16, %v396_v17  ;;  %v6230_v32 = vld [vmem:[#allocation5 + $0x1e8] sm:$0xff]  }
  0xa0   : > { %v6226_v23 = vld [vmem:[#allocation5 + $0x1e0] sm:$0xff]   ;;  %v6231_v33 = vld [vmem:[#allocation5 + $0x1a8] sm:$0xff]  }
  0xa1   : > { %5270 = vmatpush3.bf16.msra.mxu0 %v6202_v26  ;;  %v6227_v25 = vld [vmem:[#allocation5 + $0x1a0] sm:$0xff]   ;;  %v432_v44 = vld [vmem:[%s6902_s9 + $0x488] sm:$0xff] }
  0xa2   : > { %5334 = vmatpush3.bf16.msra.mxu1 %v6203_v27  ;;  %5271 = vmatprep.subr.bf16.mxu0 %v6204_v28  ;;  %v407_v26 = vld [vmem:[%s6902_s9 + $0x3c0] sm:$0xff]  ;;  %v6228_v28 = vld [vmem:[#allocation5 + $0x168] sm:$0xff]  }
  0xa3   : > { %5335 = vmatprep.subr.bf16.mxu1 %v6205_v29  ;;  %v419_v27 = vld [vmem:[%s6902_s9 + $0x420] sm:$0xff]  ;;  %v408_v29 = vld [vmem:[%s6902_s9 + $0x3c8] sm:$0xff] }
  0xa4   : > { %v4976_v36 = vcombine.high %v407_v26, %v419_v27  ;;  %v444_v45 = vld [vmem:[%s6902_s9 + $0x4e8] sm:$0xff]  ;;  %v4975_v47 = vcombine.low %v407_v26, %v419_v27  ;;  %v6240_v56 = vld [vmem:[#allocation5 + $0x240] sm:$0xff]   ;;  %v6248_v26 = vld [vmem:[#allocation5 + $0x250] sm:$0xff]  }
  0xa5   : > { %5272 = vmatpush3.bf16.msra.mxu0 %v6206_v30  ;;  %v420_v30 = vld [vmem:[%s6902_s9 + $0x428] sm:$0xff]  ;;  %v6242_v58 = vld [vmem:[#allocation5 + $0x2c0] sm:$0xff]   ;;  %v6250_v27 = vld [vmem:[#allocation5 + $0x2d0] sm:$0xff]  }
  0xa6   : > { %5336 = vmatpush3.bf16.msra.mxu1 %v6207_v31  ;;  %5385 = vmatprep.subr.bf16.mxu0 %v6208_v40  ;;  %v6229_v31 = vld [vmem:[#allocation5 + $0x128] sm:$0xff]   ;;  %v4978_v37 = vcombine.high %v408_v29, %v420_v30  ;;  %v6234_v40 = vld [vmem:[#allocation5 + $0x1f0] sm:$0xff]   ;;  %v6243_v15 = vld [vmem:[#allocation5 + $0x280] sm:$0xff]  }
  0xa7   : > { %5449 = vmatprep.subr.bf16.mxu1 %v6210_v42  ;;  %v443_v42 = vld [vmem:[%s6902_s9 + $0x4e0] sm:$0xff]  ;;  %v456_v57 = vld [vmem:[%s6902_s9 + $0x548] sm:$0xff] }
  0xa8   : > { %3008 = vmatmul.mubr.bf16.vlgmr.msra.gmra.mrb[0].mxu0 %v4855_v35  ;;  %v4953_v35 = vcombine.low %v384_v16, %v396_v17  ;;  %v468_v59 = vld [vmem:[%s6902_s9 + $0x5a8] sm:$0xff] }
  0xa9   : > { %3105 = vmatmul.mubr.bf16.vlgmr.msra.gmra.mrb[0].mxu1 %v4857_v38  ;;  %5386 = vmatpush3.bf16.msra.mxu0 %v6209_v41  ;;  %v6232_v38 = vld [vmem:[#allocation5 + $0x170] sm:$0xff]   ;;  %v431_v41 = vld [vmem:[%s6902_s9 + $0x480] sm:$0xff]  ;;  %v5025_v5 = vcombine.low %v456_v57, %v468_v59  ;;  %v6244_v17 = vld [vmem:[#allocation5 + $0x248] sm:$0xff]  }
  0xaa   : > { %5450 = vmatpush3.bf16.msra.mxu1 %v6211_v43  ;;  %3015 = vmatprep.mubr.bf16.mxu0 %v4880_v46  ;;  %v6235_v43 = vld [vmem:[#allocation5 + $0x1b0] sm:$0xff]   ;;  %v6236_v46 = vld [vmem:[#allocation5 + $0x178] sm:$0xff]  }
  0xab   : > { %3112 = vmatprep.mubr.bf16.mxu1 %v4882_v49  ;;  %5387 = vmatprep.subr.bf16.mxu0 %v6212_v50  ;;  %v4977_v49 = vcombine.low %v408_v29, %v420_v30  ;;  %v5000_v50 = vcombine.high %v431_v41, %v443_v42 }
  0xac   : > { %5451 = vmatprep.subr.bf16.mxu1 %v6214_v54  ;;  %v455_v54 = vld [vmem:[%s6902_s9 + $0x540] sm:$0xff] }
  0xad   : > { %5388 = vmatpush3.bf16.msra.mxu0 %v6213_v52  ;;  %v5002_v52 = vcombine.high %v432_v44, %v444_v45 }
  0xae   : > { %5452 = vmatpush3.bf16.msra.mxu1 %v6215_v55  ;;  %5389 = vmatprep.subr.bf16.mxu0 %v6216_v62  ;;  %v467_v55 = vld [vmem:[%s6902_s9 + $0x5a0] sm:$0xff] }
  0xaf   : > { %5453 = vmatprep.subr.bf16.mxu1 %v6218_v0  ;;  %v5024_v62 = vcombine.high %v455_v54, %v467_v55  ;;  %v289_v0 = vld [vmem:[%s6902_s9 + $0x10] sm:$0xff]  ;;  %v5023_v4 = vcombine.low %v455_v54, %v467_v55  ;;  %v386_v54 = vld [vmem:[%s6902_s9 + $0x318] sm:$0xff] }
  0xb0   : > { %3016 = vmatmul.mubr.bf16.gmra.mrb[4].mxu0 %v4879_v51  ;;  %v6238_v51 = vld [vmem:[#allocation5 + $0x1f8] sm:$0xff]  }
  0xb1   : > { %3113 = vmatmul.mubr.bf16.gmra.mrb[4].mxu1 %v4881_v53  ;;  %3023 = vmatprep.mubr.bf16.mxu0 %v4904_v60  ;;  %v6239_v53 = vld [vmem:[#allocation5 + $0x1b8] sm:$0xff]   ;;  %v4999_v60 = vcombine.low %v431_v41, %v443_v42  ;;  %v6256_v42 = vld [vmem:[#allocation5 + $0x260] sm:$0xff]  }
  0xb2   : > { %3120 = vmatprep.mubr.bf16.mxu1 %v4906_v61  ;;  %5390 = vmatpush3.bf16.msra.mxu0 %v6217_v63  ;;  %v5001_v61 = vcombine.low %v432_v44, %v444_v45  ;;  %v5026_v63 = vcombine.high %v456_v57, %v468_v59  ;;  %v6255_v41 = vld [vmem:[#allocation5 + $0x298] sm:$0xff]   ;;  %v6258_v44 = vld [vmem:[#allocation5 + $0x2e0] sm:$0xff]   ;;  %v6263_v57 = vld [vmem:[#allocation5 + $0x2a8] sm:$0xff]  }
  0xb3   : > { %5454 = vmatpush3.bf16.msra.mxu1 %v6219_v1  ;;  %5391 = vmatprep.subr.bf16.mxu0 %v6220_v10  ;;  %v301_v1 = vld [vmem:[%s6902_s9 + $0x70] sm:$0xff]  ;;  %v398_v55 = vld [vmem:[%s6902_s9 + $0x378] sm:$0xff] }
  0xb4   : > { %5455 = vmatprep.subr.bf16.mxu1 %v6222_v12  ;;  %v4859_v10 = vcombine.low %v289_v0, %v301_v1  ;;  %v314_v12 = vld [vmem:[%s6902_s9 + $0xd8] sm:$0xff] }
  0xb6   : > { %5392 = vmatpush3.bf16.msra.mxu0 %v6221_v11  ;;  %v6241_v11 = vld [vmem:[#allocation5 + $0x200] sm:$0xff]  }
  0xb7   : > { %5456 = vmatpush3.bf16.msra.mxu1 %v6223_v13  ;;  %5393 = vmatprep.subr.bf16.mxu0 %v6224_v18  ;;  %v326_v13 = vld [vmem:[%s6902_s9 + $0x138] sm:$0xff] }
  0xb8   : > { %3024 = vmatmul.mubr.bf16.gmra.mrb[8].mxu0 %v4903_v2  ;;  %5457 = vmatprep.subr.bf16.mxu1 %v6226_v23  ;;  %v290_v2 = vld [vmem:[%s6902_s9 + $0x18] sm:$0xff]  ;;  %v4886_v18 = vcombine.high %v314_v12, %v326_v13  ;;  %v349_v23 = vld [vmem:[%s6902_s9 + $0x1f0] sm:$0xff]  ;;  %v4885_v29 = vcombine.low %v314_v12, %v326_v13  ;;  %v6274_v12 = vld [vmem:[#allocation5 + $0x3c0] sm:$0xff]   ;;  %v4957_v13 = vcombine.low %v386_v54, %v398_v55 }
  0xb9   : > { %3121 = vmatmul.mubr.bf16.gmra.mrb[8].mxu1 %v4905_v6  ;;  %3031 = vmatprep.mubr.bf16.mxu0 %v4928_v7  ;;  %v4860_v6 = vcombine.high %v289_v0, %v301_v1  ;;  %v4862_v7 = vcombine.high %v290_v2, %v302_v3  ;;  %v4861_v14 = vcombine.low %v290_v2, %v302_v3  ;;  %v6265_v0 = vld [vmem:[#allocation5 + $0x230] sm:$0xff]   ;;  %v6268_v2 = vld [vmem:[#allocation5 + $0x278] sm:$0xff]  }
  0xba   : > { %3128 = vmatprep.mubr.bf16.mxu1 %v4930_v9  ;;  %5394 = vmatpush3.bf16.msra.mxu0 %v6225_v20  ;;  %v325_v9 = vld [vmem:[%s6902_s9 + $0x130] sm:$0xff]  ;;  %v6246_v20 = vld [vmem:[#allocation5 + $0x2c8] sm:$0xff]  }
  0xbb   : > { %5458 = vmatpush3.bf16.msra.mxu1 %v6227_v25  ;;  %5395 = vmatprep.subr.bf16.mxu0 %v6228_v28  ;;  %v4884_v16 = vcombine.high %v313_v8, %v325_v9  ;;  %v350_v25 = vld [vmem:[%s6902_s9 + $0x1f8] sm:$0xff]  ;;  %v4883_v28 = vcombine.low %v313_v8, %v325_v9  ;;  %v6267_v1 = vld [vmem:[#allocation5 + $0x2b0] sm:$0xff]  }
  0xbc   : > { %5459 = vmatprep.subr.bf16.mxu1 %v6230_v32  ;;  %v6249_v32 = vld [vmem:[#allocation5 + $0x210] sm:$0xff]   ;;  %v6269_v8 = vld [vmem:[#allocation5 + $0x238] sm:$0xff]  }
  0xbd   : > { %v409_v3 = vld [vmem:[%s6902_s9 + $0x3d0] sm:$0xff]  ;;  %v6271_v9 = vld [vmem:[#allocation5 + $0x2b8] sm:$0xff]  }
  0xbe   : > { %5396 = vmatpush3.bf16.msra.mxu0 %v6229_v31 }
  0xbf   : > { %5460 = vmatpush3.bf16.msra.mxu1 %v6231_v33  ;;  %5397 = vmatprep.subr.bf16.mxu0 %v6232_v38  ;;  %v6251_v33 = vld [vmem:[#allocation5 + $0x290] sm:$0xff]   ;;  %v362_v38 = vld [vmem:[%s6902_s9 + $0x258] sm:$0xff] }
  0xc0   : > { %3032 = vmatmul.mubr.bf16.gmra.mrb[12].mxu0 %v4927_v19  ;;  %5461 = vmatprep.subr.bf16.mxu1 %v6234_v40  ;;  %v6245_v19 = vld [vmem:[#allocation5 + $0x208] sm:$0xff]   ;;  %v6253_v40 = vld [vmem:[#allocation5 + $0x218] sm:$0xff]  }
  0xc1   : > { %3129 = vmatmul.mubr.bf16.gmra.mrb[12].mxu1 %v4929_v21  ;;  %3039 = vmatprep.mubr.bf16.mxu0 %v4952_v22  ;;  %v6247_v21 = vld [vmem:[#allocation5 + $0x288] sm:$0xff]   ;;  %v337_v22 = vld [vmem:[%s6902_s9 + $0x190] sm:$0xff] }
  0xc2   : > { %3136 = vmatprep.mubr.bf16.mxu1 %v4954_v24  ;;  %5398 = vmatpush3.bf16.msra.mxu0 %v6233_v39  ;;  %v338_v24 = vld [vmem:[%s6902_s9 + $0x198] sm:$0xff]  ;;  %v4908_v30 = vcombine.high %v337_v22, %v349_v23 }
  0xc3   : > { %5462 = vmatpush3.bf16.msra.mxu1 %v6235_v43  ;;  %5399 = vmatprep.subr.bf16.mxu0 %v6236_v46  ;;  %v4910_v31 = vcombine.high %v338_v24, %v350_v25  ;;  %v374_v39 = vld [vmem:[%s6902_s9 + $0x2b8] sm:$0xff]  ;;  %v4907_v43 = vcombine.low %v337_v22, %v349_v23  ;;  %v4909_v45 = vcombine.low %v338_v24, %v350_v25  ;;  %v457_v24 = vld [vmem:[%s6902_s9 + $0x550] sm:$0xff] }
  0xc4   : > { %5463 = vmatprep.subr.bf16.mxu1 %v6238_v51  ;;  %v385_v51 = vld [vmem:[%s6902_s9 + $0x310] sm:$0xff] }
  0xc5   : > { %v469_v25 = vld [vmem:[%s6902_s9 + $0x5b0] sm:$0xff] }
  0xc6   : > { %5400 = vmatpush3.bf16.msra.mxu0 %v6237_v48  ;;  %v4934_v48 = vcombine.high %v362_v38, %v374_v39 }
  0xc7   : > { %5464 = vmatpush3.bf16.msra.mxu1 %v6239_v53  ;;  %5513 = vmatprep.subr.bf16.mxu0 %v6240_v56  ;;  %v397_v53 = vld [vmem:[%s6902_s9 + $0x370] sm:$0xff]  ;;  %v6261_v56 = vld [vmem:[#allocation5 + $0x228] sm:$0xff]  }
  0xc8   : > { %3040 = vmatmul.mubr.bf16.gmra.mrb[16].mxu0 %v4951_v34  ;;  %5577 = vmatprep.subr.bf16.mxu1 %v6242_v58  ;;  %v6252_v34 = vld [vmem:[#allocation5 + $0x258] sm:$0xff]   ;;  %v6264_v58 = vld [vmem:[#allocation5 + $0x270] sm:$0xff]  }
  0xc9   : > { %3137 = vmatmul.mubr.bf16.gmra.mrb[16].mxu1 %v4953_v35  ;;  %3047 = vmatprep.mubr.bf16.mxu0 %v4976_v36  ;;  %v361_v35 = vld [vmem:[%s6902_s9 + $0x250] sm:$0xff] }
  0xca   : > { %3144 = vmatprep.mubr.bf16.mxu1 %v4978_v37  ;;  %v373_v36 = vld [vmem:[%s6902_s9 + $0x2b0] sm:$0xff]  ;;  %v6254_v37 = vld [vmem:[#allocation5 + $0x2d8] sm:$0xff]  }
  0xcb   : > { %v4932_v46 = vcombine.high %v361_v35, %v373_v36  ;;  %v4931_v59 = vcombine.low %v361_v35, %v373_v36  ;;  %v304_v35 = vld [vmem:[%s6902_s9 + $0x88] sm:$0xff]  ;;  %v5027_v36 = vcombine.low %v457_v24, %v469_v25 }
  0xd0   : > { %3048 = vmatmul.mubr.bf16.gmra.mrb[20].mxu0 %v4975_v47  ;;  %v6257_v47 = vld [vmem:[#allocation5 + $0x220] sm:$0xff]  }
  0xd1   : > { %3145 = vmatmul.mubr.bf16.gmra.mrb[20].mxu1 %v4977_v49  ;;  %3055 = vmatprep.mubr.bf16.mxu0 %v5000_v50  ;;  %v6259_v49 = vld [vmem:[#allocation5 + $0x2a0] sm:$0xff]   ;;  %v6260_v50 = vld [vmem:[#allocation5 + $0x268] sm:$0xff]  }
  0xd2   : > { %3152 = vmatprep.mubr.bf16.mxu1 %v5002_v52  ;;  %v6262_v52 = vld [vmem:[#allocation5 + $0x2e8] sm:$0xff]  }
  0xd8   : > { %3056 = vmatmul.mubr.bf16.gmra.mrb[24].mxu0 %v4999_v60  ;;  %v6266_v60 = vld [vmem:[#allocation5 + $0x2f0] sm:$0xff]  }
  0xd9   : > { %3153 = vmatmul.mubr.bf16.gmra.mrb[24].mxu1 %v5001_v61  ;;  %3063 = vmatprep.mubr.bf16.mxu0 %v5024_v62  ;;  %v4933_v61 = vcombine.low %v362_v38, %v374_v39  ;;  %v4956_v62 = vcombine.high %v385_v51, %v397_v53 }
  0xda   : > { %3160 = vmatprep.mubr.bf16.mxu1 %v5026_v63  ;;  %v4958_v63 = vcombine.high %v386_v54, %v398_v55  ;;  %v339_v54 = vld [vmem:[%s6902_s9 + $0x1a0] sm:$0xff] }
  0xdb   : > { %v351_v55 = vld [vmem:[%s6902_s9 + $0x200] sm:$0xff] }
  0xe0   : > { %3064 = vmatmul.mubr.bf16.gmra.mrb[28].mxu0 %v5023_v4  ;;  %v421_v4 = vld [vmem:[%s6902_s9 + $0x430] sm:$0xff] }
  0xe1   : > { %3161 = vmatmul.mubr.bf16.gmra.mrb[28].mxu1 %v5025_v5  ;;  %3201 = vmatprep.mubr.bf16.mxu0 %v4860_v6  ;;  %v6270_v5 = vld [vmem:[#allocation5 + $0x2f8] sm:$0xff]  }
  0xe2   : > { %3298 = vmatprep.mubr.bf16.mxu1 %v4862_v7  ;;  %v410_v6 = vld [vmem:[%s6902_s9 + $0x3d8] sm:$0xff] }
  0xe3   : > { %v422_v7 = vld [vmem:[%s6902_s9 + $0x438] sm:$0xff] }
  0xe8   : > { %3202 = vmatmul.mubr.bf16.vlgmr.msra.gmra.mrb[32].mxu0 %v4859_v10  ;;  %v6272_v10 = vld [vmem:[#allocation5 + $0x340] sm:$0xff]  }
  0xe9   : > { %3299 = vmatmul.mubr.bf16.vlgmr.msra.gmra.mrb[32].mxu1 %v4861_v14  ;;  %5514 = vmatpush3.bf16.msra.mxu0 %v6241_v11  ;;  %v4955_v11 = vcombine.low %v385_v51, %v397_v53  ;;  %v4980_v14 = vcombine.high %v409_v3, %v421_v4  ;;  %v6277_v51 = vld [vmem:[#allocation5 + $0x308] sm:$0xff]  }
  0xea   : > { %5578 = vmatpush3.bf16.msra.mxu1 %v6243_v15  ;;  %3209 = vmatprep.mubr.bf16.mxu0 %v4884_v16  ;;  %v4982_v15 = vcombine.high %v410_v6, %v422_v7  ;;  %v433_v16 = vld [vmem:[%s6902_s9 + $0x490] sm:$0xff]  ;;  %v6279_v53 = vld [vmem:[#allocation5 + $0x388] sm:$0xff]  }
  0xeb   : > { %3306 = vmatprep.mubr.bf16.mxu1 %v4886_v18  ;;  %5515 = vmatprep.subr.bf16.mxu0 %v6244_v17  ;;  %v445_v17 = vld [vmem:[%s6902_s9 + $0x4f0] sm:$0xff]  ;;  %v434_v18 = vld [vmem:[%s6902_s9 + $0x498] sm:$0xff] }
  0xec   : > { %5579 = vmatprep.subr.bf16.mxu1 %v6246_v20  ;;  %v4979_v20 = vcombine.low %v409_v3, %v421_v4  ;;  %v5004_v22 = vcombine.high %v433_v16, %v445_v17  ;;  %v363_v3 = vld [vmem:[%s6902_s9 + $0x260] sm:$0xff] }
  0xed   : > { %5516 = vmatpush3.bf16.msra.mxu0 %v6245_v19  ;;  %v446_v19 = vld [vmem:[%s6902_s9 + $0x4f8] sm:$0xff]  ;;  %v375_v4 = vld [vmem:[%s6902_s9 + $0x2c0] sm:$0xff] }
  0xee   : > { %5580 = vmatpush3.bf16.msra.mxu1 %v6247_v21  ;;  %5517 = vmatprep.subr.bf16.mxu0 %v6248_v26  ;;  %v4981_v21 = vcombine.low %v410_v6, %v422_v7  ;;  %v5006_v23 = vcombine.high %v434_v18, %v446_v19  ;;  %v458_v26 = vld [vmem:[%s6902_s9 + $0x558] sm:$0xff]  ;;  %v364_v6 = vld [vmem:[%s6902_s9 + $0x268] sm:$0xff] }
  0xef   : > { %5581 = vmatprep.subr.bf16.mxu1 %v6250_v27  ;;  %v470_v27 = vld [vmem:[%s6902_s9 + $0x5b8] sm:$0xff]  ;;  %v376_v7 = vld [vmem:[%s6902_s9 + $0x2c8] sm:$0xff] }
  0xf0   : > { %3210 = vmatmul.mubr.bf16.gmra.mrb[36].mxu0 %v4883_v28  ;;  %v5003_v28 = vcombine.low %v433_v16, %v445_v17  ;;  %v4938_v16 = vcombine.high %v364_v6, %v376_v7  ;;  %v6291_v17 = vld [vmem:[#allocation5 + $0x3a0] sm:$0xff]  }
  0xf1   : > { %3307 = vmatmul.mubr.bf16.gmra.mrb[36].mxu1 %v4885_v29  ;;  %3217 = vmatprep.mubr.bf16.mxu0 %v4908_v30  ;;  %v5005_v29 = vcombine.low %v434_v18, %v446_v19  ;;  %v5028_v30 = vcombine.high %v457_v24, %v469_v25  ;;  %v6292_v18 = vld [vmem:[#allocation5 + $0x368] sm:$0xff]   ;;  %v387_v19 = vld [vmem:[%s6902_s9 + $0x320] sm:$0xff] }
  0xf2   : > { %3314 = vmatprep.mubr.bf16.mxu1 %v4910_v31  ;;  %5518 = vmatpush3.bf16.msra.mxu0 %v6249_v32  ;;  %v5030_v31 = vcombine.high %v458_v26, %v470_v27  ;;  %v291_v32 = vld [vmem:[%s6902_s9 + $0x20] sm:$0xff]  ;;  %v6293_v24 = vld [vmem:[#allocation5 + $0x328] sm:$0xff]  }
  0xf3   : > { %5582 = vmatpush3.bf16.msra.mxu1 %v6251_v33  ;;  %5519 = vmatprep.subr.bf16.mxu0 %v6252_v34  ;;  %v303_v33 = vld [vmem:[%s6902_s9 + $0x80] sm:$0xff]  ;;  %v292_v34 = vld [vmem:[%s6902_s9 + $0x28] sm:$0xff] }
  0xf4   : > { %5583 = vmatprep.subr.bf16.mxu1 %v6254_v37  ;;  %v5029_v37 = vcombine.low %v458_v26, %v470_v27  ;;  %v4864_v38 = vcombine.high %v291_v32, %v303_v33  ;;  %v4866_v39 = vcombine.high %v292_v34, %v304_v35  ;;  %v6295_v25 = vld [vmem:[#allocation5 + $0x3a8] sm:$0xff]   ;;  %v6296_v26 = vld [vmem:[#allocation5 + $0x370] sm:$0xff]   ;;  %v4935_v27 = vcombine.low %v363_v3, %v375_v4 }
  0xf6   : > { %5520 = vmatpush3.bf16.msra.mxu0 %v6253_v40  ;;  %v315_v40 = vld [vmem:[%s6902_s9 + $0xe0] sm:$0xff] }
  0xf7   : > { %5584 = vmatpush3.bf16.msra.mxu1 %v6255_v41  ;;  %5521 = vmatprep.subr.bf16.mxu0 %v6256_v42  ;;  %v327_v41 = vld [vmem:[%s6902_s9 + $0x140] sm:$0xff]  ;;  %v4863_v42 = vcombine.low %v291_v32, %v303_v33  ;;  %v6297_v32 = vld [vmem:[#allocation5 + $0x330] sm:$0xff]  }
  0xf8   : > { %3218 = vmatmul.mubr.bf16.gmra.mrb[40].mxu0 %v4907_v43  ;;  %5585 = vmatprep.subr.bf16.mxu1 %v6258_v44  ;;  %v6273_v43 = vld [vmem:[#allocation5 + $0x300] sm:$0xff]   ;;  %v316_v44 = vld [vmem:[%s6902_s9 + $0xe8] sm:$0xff]  ;;  %v6299_v33 = vld [vmem:[#allocation5 + $0x3b0] sm:$0xff]  }
  0xf9   : > { %3315 = vmatmul.mubr.bf16.gmra.mrb[40].mxu1 %v4909_v45  ;;  %3225 = vmatprep.mubr.bf16.mxu0 %v4932_v46  ;;  %v328_v45 = vld [vmem:[%s6902_s9 + $0x148] sm:$0xff]  ;;  %v4865_v46 = vcombine.low %v292_v34, %v304_v35  ;;  %v6300_v34 = vld [vmem:[#allocation5 + $0x378] sm:$0xff]   ;;  %v411_v35 = vld [vmem:[%s6902_s9 + $0x3e0] sm:$0xff] }
  0xfa   : > { %3322 = vmatprep.mubr.bf16.mxu1 %v4934_v48  ;;  %5522 = vmatpush3.bf16.msra.mxu0 %v6257_v47  ;;  %v6275_v47 = vld [vmem:[#allocation5 + $0x380] sm:$0xff]   ;;  %v4888_v48 = vcombine.high %v315_v40, %v327_v41 }
  0xfb   : > { %5586 = vmatpush3.bf16.msra.mxu1 %v6259_v49  ;;  %5523 = vmatprep.subr.bf16.mxu0 %v6260_v50  ;;  %v6276_v49 = vld [vmem:[#allocation5 + $0x348] sm:$0xff]   ;;  %v4890_v50 = vcombine.high %v316_v44, %v328_v45 }
  0xfc   : > { %5587 = vmatprep.subr.bf16.mxu1 %v6262_v52  ;;  %v6278_v52 = vld [vmem:[#allocation5 + $0x3c8] sm:$0xff]  }
  0xfe   : > { %5524 = vmatpush3.bf16.msra.mxu0 %v6261_v56  ;;  %v340_v56 = vld [vmem:[%s6902_s9 + $0x1a8] sm:$0xff] }
  0xff   : > { %5588 = vmatpush3.bf16.msra.mxu1 %v6263_v57  ;;  %5525 = vmatprep.subr.bf16.mxu0 %v6264_v58  ;;  %v352_v57 = vld [vmem:[%s6902_s9 + $0x208] sm:$0xff]  ;;  %v6280_v58 = vld [vmem:[#allocation5 + $0x350] sm:$0xff]  }
 0x100   : > { %3226 = vmatmul.mubr.bf16.gmra.mrb[44].mxu0 %v4931_v59  ;;  %5589 = vmatprep.subr.bf16.mxu1 %v6266_v60  ;;  %v6282_v59 = vld [vmem:[#allocation5 + $0x3d0] sm:$0xff]   ;;  %v4887_v60 = vcombine.low %v315_v40, %v327_v41  ;;  %v6301_v40 = vld [vmem:[#allocation5 + $0x338] sm:$0xff]  }
 0x101   : > { %3323 = vmatmul.mubr.bf16.gmra.mrb[44].mxu1 %v4933_v61  ;;  %3233 = vmatprep.mubr.bf16.mxu0 %v4956_v62  ;;  %v4889_v61 = vcombine.low %v316_v44, %v328_v45  ;;  %v4912_v62 = vcombine.high %v339_v54, %v351_v55  ;;  %v6303_v41 = vld [vmem:[#allocation5 + $0x3b8] sm:$0xff]   ;;  %v6306_v44 = vld [vmem:[#allocation5 + $0x4c0] sm:$0xff]  }
 0x102   : > { %3330 = vmatprep.mubr.bf16.mxu1 %v4958_v63  ;;  %5526 = vmatpush3.bf16.msra.mxu0 %v6265_v0  ;;  %v4914_v63 = vcombine.high %v340_v56, %v352_v57  ;;  %v6281_v0 = vld [vmem:[#allocation5 + $0x310] sm:$0xff]  }
 0x103   : > { %5590 = vmatpush3.bf16.msra.mxu1 %v6267_v1  ;;  %5527 = vmatprep.subr.bf16.mxu0 %v6268_v2  ;;  %v6283_v1 = vld [vmem:[#allocation5 + $0x390] sm:$0xff]   ;;  %v6284_v2 = vld [vmem:[#allocation5 + $0x358] sm:$0xff]  }
 0x104   : > { %5591 = vmatprep.subr.bf16.mxu1 %v6270_v5  ;;  %v6286_v5 = vld [vmem:[#allocation5 + $0x3d8] sm:$0xff]  }
 0x106   : > { %5528 = vmatpush3.bf16.msra.mxu0 %v6269_v8  ;;  %v6285_v8 = vld [vmem:[#allocation5 + $0x318] sm:$0xff]  }
 0x107   : > { %5592 = vmatpush3.bf16.msra.mxu1 %v6271_v9  ;;  %5641 = vmatprep.subr.bf16.mxu0 %v6272_v10  ;;  %v6287_v9 = vld [vmem:[#allocation5 + $0x398] sm:$0xff]   ;;  %v6288_v10 = vld [vmem:[#allocation5 + $0x360] sm:$0xff]  }
 0x108   : > { %3234 = vmatmul.mubr.bf16.gmra.mrb[48].mxu0 %v4955_v11  ;;  %5705 = vmatprep.subr.bf16.mxu1 %v6274_v12  ;;  %v4911_v11 = vcombine.low %v339_v54, %v351_v55  ;;  %v6290_v12 = vld [vmem:[#allocation5 + $0x3e0] sm:$0xff]  }
 0x109   : > { %3331 = vmatmul.mubr.bf16.gmra.mrb[48].mxu1 %v4957_v13  ;;  %3241 = vmatprep.mubr.bf16.mxu0 %v4980_v14  ;;  %v4913_v13 = vcombine.low %v340_v56, %v352_v57  ;;  %v4936_v14 = vcombine.high %v363_v3, %v375_v4  ;;  %v459_v56 = vld [vmem:[%s6902_s9 + $0x560] sm:$0xff]  ;;  %v306_v3 = vld [vmem:[%s6902_s9 + $0x98] sm:$0xff] }
 0x10a   : > { %3338 = vmatprep.mubr.bf16.mxu1 %v4982_v15  ;;  %v6289_v15 = vld [vmem:[#allocation5 + $0x320] sm:$0xff]  }
 0x10b   : > { %v471_v57 = vld [vmem:[%s6902_s9 + $0x5c0] sm:$0xff] }
 0x10c   : > { %v5031_v4 = vcombine.low %v459_v56, %v471_v57 }
 0x110   : > { %3242 = vmatmul.mubr.bf16.gmra.mrb[52].mxu0 %v4979_v20  ;;  %v6294_v20 = vld [vmem:[#allocation5 + $0x3e8] sm:$0xff]  }
 0x111   : > { %3339 = vmatmul.mubr.bf16.gmra.mrb[52].mxu1 %v4981_v21  ;;  %3249 = vmatprep.mubr.bf16.mxu0 %v5004_v22  ;;  %v399_v21 = vld [vmem:[%s6902_s9 + $0x380] sm:$0xff]  ;;  %v388_v22 = vld [vmem:[%s6902_s9 + $0x328] sm:$0xff] }
 0x112   : > { %3346 = vmatprep.mubr.bf16.mxu1 %v5006_v23  ;;  %v400_v23 = vld [vmem:[%s6902_s9 + $0x388] sm:$0xff] }
 0x113   : > { %v4961_v45 = vcombine.low %v388_v22, %v400_v23 }
 0x118   : > { %3250 = vmatmul.mubr.bf16.gmra.mrb[56].mxu0 %v5003_v28  ;;  %v6298_v28 = vld [vmem:[#allocation5 + $0x3f0] sm:$0xff]  }
 0x119   : > { %3347 = vmatmul.mubr.bf16.gmra.mrb[56].mxu1 %v5005_v29  ;;  %3257 = vmatprep.mubr.bf16.mxu0 %v5028_v30  ;;  %v4937_v29 = vcombine.low %v364_v6, %v376_v7  ;;  %v4960_v30 = vcombine.high %v387_v19, %v399_v21 }
 0x11a   : > { %3354 = vmatprep.mubr.bf16.mxu1 %v5030_v31  ;;  %v4962_v31 = vcombine.high %v388_v22, %v400_v23  ;;  %v341_v22 = vld [vmem:[%s6902_s9 + $0x1b0] sm:$0xff] }
 0x11b   : > { %v353_v23 = vld [vmem:[%s6902_s9 + $0x210] sm:$0xff] }
 0x120   : > { %3258 = vmatmul.mubr.bf16.gmra.mrb[60].mxu0 %v5027_v36  ;;  %v423_v36 = vld [vmem:[%s6902_s9 + $0x440] sm:$0xff] }
 0x121   : > { %3355 = vmatmul.mubr.bf16.gmra.mrb[60].mxu1 %v5029_v37  ;;  %3395 = vmatprep.mubr.bf16.mxu0 %v4864_v38  ;;  %v6302_v37 = vld [vmem:[#allocation5 + $0x3f8] sm:$0xff]   ;;  %v412_v38 = vld [vmem:[%s6902_s9 + $0x3e8] sm:$0xff] }
 0x122   : > { %3492 = vmatprep.mubr.bf16.mxu1 %v4866_v39  ;;  %v424_v39 = vld [vmem:[%s6902_s9 + $0x448] sm:$0xff] }
 0x128   : > { %3396 = vmatmul.mubr.bf16.vlgmr.msra.gmra.mrb[64].mxu0 %v4863_v42  ;;  %v6304_v42 = vld [vmem:[#allocation5 + $0x440] sm:$0xff]  }
 0x129   : > { %3493 = vmatmul.mubr.bf16.vlgmr.msra.gmra.mrb[64].mxu1 %v4865_v46  ;;  %5642 = vmatpush3.bf16.msra.mxu0 %v6273_v43  ;;  %v4959_v43 = vcombine.low %v387_v19, %v399_v21  ;;  %v4984_v46 = vcombine.high %v411_v35, %v423_v36  ;;  %v6309_v19 = vld [vmem:[#allocation5 + $0x408] sm:$0xff]  }
 0x12a   : > { %5706 = vmatpush3.bf16.msra.mxu1 %v6275_v47  ;;  %3403 = vmatprep.mubr.bf16.mxu0 %v4888_v48  ;;  %v4986_v47 = vcombine.high %v412_v38, %v424_v39  ;;  %v435_v48 = vld [vmem:[%s6902_s9 + $0x4a0] sm:$0xff]  ;;  %v6311_v21 = vld [vmem:[#allocation5 + $0x488] sm:$0xff]  }
 0x12b   : > { %3500 = vmatprep.mubr.bf16.mxu1 %v4890_v50  ;;  %5643 = vmatprep.subr.bf16.mxu0 %v6276_v49  ;;  %v447_v49 = vld [vmem:[%s6902_s9 + $0x500] sm:$0xff]  ;;  %v436_v50 = vld [vmem:[%s6902_s9 + $0x4a8] sm:$0xff] }
 0x12c   : > { %5707 = vmatprep.subr.bf16.mxu1 %v6278_v52  ;;  %v4983_v52 = vcombine.low %v411_v35, %v423_v36  ;;  %v5008_v54 = vcombine.high %v435_v48, %v447_v49  ;;  %v7025_v35 = vld [vmem:[%s6902_s9 + $0x270] sm:$0xff] }
 0x12d   : > { %5644 = vmatpush3.bf16.msra.mxu0 %v6277_v51  ;;  %v448_v51 = vld [vmem:[%s6902_s9 + $0x508] sm:$0xff]  ;;  %v7028_v36 = vld [vmem:[%s6902_s9 + $0x2d0] sm:$0xff] }
 0x12e   : > { %5708 = vmatpush3.bf16.msra.mxu1 %v6279_v53  ;;  %5645 = vmatprep.subr.bf16.mxu0 %v6280_v58  ;;  %v4985_v53 = vcombine.low %v412_v38, %v424_v39  ;;  %v5010_v55 = vcombine.high %v436_v50, %v448_v51  ;;  %v460_v58 = vld [vmem:[%s6902_s9 + $0x568] sm:$0xff]  ;;  %v7031_v38 = vld [vmem:[%s6902_s9 + $0x278] sm:$0xff] }
 0x12f   : > { %5709 = vmatprep.subr.bf16.mxu1 %v6282_v59  ;;  %v472_v59 = vld [vmem:[%s6902_s9 + $0x5c8] sm:$0xff]  ;;  %v7034_v39 = vld [vmem:[%s6902_s9 + $0x2d8] sm:$0xff] }
 0x130   : > { %3404 = vmatmul.mubr.bf16.gmra.mrb[68].mxu0 %v4887_v60  ;;  %v5007_v60 = vcombine.low %v435_v48, %v447_v49  ;;  %v4942_v48 = vcombine.high %v7031_v38, %v7034_v39  ;;  %v6323_v49 = vld [vmem:[#allocation5 + $0x4a0] sm:$0xff]  }
 0x131   : > { %3501 = vmatmul.mubr.bf16.gmra.mrb[68].mxu1 %v4889_v61  ;;  %3411 = vmatprep.mubr.bf16.mxu0 %v4912_v62  ;;  %v5009_v61 = vcombine.low %v436_v50, %v448_v51  ;;  %v5032_v62 = vcombine.high %v459_v56, %v471_v57  ;;  %v6324_v50 = vld [vmem:[#allocation5 + $0x468] sm:$0xff]   ;;  %v7050_v57 = vld [vmem:[%s6902_s9 + $0x398] sm:$0xff] }
 0x132   : > { %3508 = vmatprep.mubr.bf16.mxu1 %v4914_v63  ;;  %5646 = vmatpush3.bf16.msra.mxu0 %v6281_v0  ;;  %v5034_v63 = vcombine.high %v460_v58, %v472_v59  ;;  %v293_v0 = vld [vmem:[%s6902_s9 + $0x30] sm:$0xff]  ;;  %v6326_v51 = vld [vmem:[#allocation5 + $0x4e8] sm:$0xff]  }
 0x133   : > { %5710 = vmatpush3.bf16.msra.mxu1 %v6283_v1  ;;  %5647 = vmatprep.subr.bf16.mxu0 %v6284_v2  ;;  %v305_v1 = vld [vmem:[%s6902_s9 + $0x90] sm:$0xff]  ;;  %v294_v2 = vld [vmem:[%s6902_s9 + $0x38] sm:$0xff] }
 0x134   : > { %5711 = vmatprep.subr.bf16.mxu1 %v6286_v5  ;;  %v5033_v5 = vcombine.low %v460_v58, %v472_v59  ;;  %v4868_v6 = vcombine.high %v293_v0, %v305_v1  ;;  %v4870_v7 = vcombine.high %v294_v2, %v306_v3  ;;  %v6327_v58 = vld [vmem:[#allocation5 + $0x4a8] sm:$0xff]   ;;  %v6328_v59 = vld [vmem:[#allocation5 + $0x470] sm:$0xff]  }
 0x136   : > { %5648 = vmatpush3.bf16.msra.mxu0 %v6285_v8  ;;  %v317_v8 = vld [vmem:[%s6902_s9 + $0xf0] sm:$0xff] }
 0x137   : > { %5712 = vmatpush3.bf16.msra.mxu1 %v6287_v9  ;;  %5649 = vmatprep.subr.bf16.mxu0 %v6288_v10  ;;  %v329_v9 = vld [vmem:[%s6902_s9 + $0x150] sm:$0xff]  ;;  %v4867_v10 = vcombine.low %v293_v0, %v305_v1 }
 0x138   : > { %3412 = vmatmul.mubr.bf16.gmra.mrb[72].mxu0 %v4911_v11  ;;  %5713 = vmatprep.subr.bf16.mxu1 %v6290_v12  ;;  %v6305_v11 = vld [vmem:[#allocation5 + $0x400] sm:$0xff]   ;;  %v318_v12 = vld [vmem:[%s6902_s9 + $0xf8] sm:$0xff] }
 0x139   : > { %3509 = vmatmul.mubr.bf16.gmra.mrb[72].mxu1 %v4913_v13  ;;  %3419 = vmatprep.mubr.bf16.mxu0 %v4936_v14  ;;  %v330_v13 = vld [vmem:[%s6902_s9 + $0x158] sm:$0xff]  ;;  %v4869_v14 = vcombine.low %v294_v2, %v306_v3  ;;  %v4941_v3 = vcombine.low %v7031_v38, %v7034_v39 }
 0x13a   : > { %3516 = vmatprep.mubr.bf16.mxu1 %v4938_v16  ;;  %5650 = vmatpush3.bf16.msra.mxu0 %v6289_v15  ;;  %v6307_v15 = vld [vmem:[#allocation5 + $0x480] sm:$0xff]   ;;  %v4892_v16 = vcombine.high %v317_v8, %v329_v9 }
 0x13b   : > { %5714 = vmatpush3.bf16.msra.mxu1 %v6291_v17  ;;  %5651 = vmatprep.subr.bf16.mxu0 %v6292_v18  ;;  %v6308_v17 = vld [vmem:[#allocation5 + $0x448] sm:$0xff]   ;;  %v4894_v18 = vcombine.high %v318_v12, %v330_v13 }
 0x13c   : > { %5715 = vmatprep.subr.bf16.mxu1 %v6294_v20  ;;  %v6310_v20 = vld [vmem:[#allocation5 + $0x4c8] sm:$0xff]  }
 0x13e   : > { %5652 = vmatpush3.bf16.msra.mxu0 %v6293_v24  ;;  %v342_v24 = vld [vmem:[%s6902_s9 + $0x1b8] sm:$0xff] }
 0x13f   : > { %5716 = vmatpush3.bf16.msra.mxu1 %v6295_v25  ;;  %5653 = vmatprep.subr.bf16.mxu0 %v6296_v26  ;;  %v354_v25 = vld [vmem:[%s6902_s9 + $0x218] sm:$0xff]  ;;  %v6312_v26 = vld [vmem:[#allocation5 + $0x450] sm:$0xff]  }
 0x140   : > { %3420 = vmatmul.mubr.bf16.gmra.mrb[76].mxu0 %v4935_v27  ;;  %5717 = vmatprep.subr.bf16.mxu1 %v6298_v28  ;;  %v6314_v27 = vld [vmem:[#allocation5 + $0x4d0] sm:$0xff]   ;;  %v4891_v28 = vcombine.low %v317_v8, %v329_v9 }
 0x141   : > { %3517 = vmatmul.mubr.bf16.gmra.mrb[76].mxu1 %v4937_v29  ;;  %3427 = vmatprep.mubr.bf16.mxu0 %v4960_v30  ;;  %v4893_v29 = vcombine.low %v318_v12, %v330_v13  ;;  %v4916_v30 = vcombine.high %v341_v22, %v353_v23 }
 0x142   : > { %3524 = vmatprep.mubr.bf16.mxu1 %v4962_v31  ;;  %5654 = vmatpush3.bf16.msra.mxu0 %v6297_v32  ;;  %v4918_v31 = vcombine.high %v342_v24, %v354_v25  ;;  %v6313_v32 = vld [vmem:[#allocation5 + $0x410] sm:$0xff]  }
 0x143   : > { %5718 = vmatpush3.bf16.msra.mxu1 %v6299_v33  ;;  %5655 = vmatprep.subr.bf16.mxu0 %v6300_v34  ;;  %v6315_v33 = vld [vmem:[#allocation5 + $0x490] sm:$0xff]   ;;  %v6316_v34 = vld [vmem:[#allocation5 + $0x458] sm:$0xff]  }
 0x144   : > { %5719 = vmatprep.subr.bf16.mxu1 %v6302_v37  ;;  %v6318_v37 = vld [vmem:[#allocation5 + $0x4d8] sm:$0xff]  }
 0x146   : > { %5656 = vmatpush3.bf16.msra.mxu0 %v6301_v40  ;;  %v6317_v40 = vld [vmem:[#allocation5 + $0x418] sm:$0xff]  }
 0x147   : > { %5720 = vmatpush3.bf16.msra.mxu1 %v6303_v41  ;;  %5769 = vmatprep.subr.bf16.mxu0 %v6304_v42  ;;  %v6319_v41 = vld [vmem:[#allocation5 + $0x498] sm:$0xff]   ;;  %v6320_v42 = vld [vmem:[#allocation5 + $0x460] sm:$0xff]  }
 0x148   : > { %3428 = vmatmul.mubr.bf16.gmra.mrb[80].mxu0 %v4959_v43  ;;  %5833 = vmatprep.subr.bf16.mxu1 %v6306_v44  ;;  %v4915_v43 = vcombine.low %v341_v22, %v353_v23  ;;  %v6322_v44 = vld [vmem:[#allocation5 + $0x4e0] sm:$0xff]   ;;  %v6335_v22 = vld [vmem:[#allocation5 + $0x4b8] sm:$0xff]  }
 0x149   : > { %3525 = vmatmul.mubr.bf16.gmra.mrb[80].mxu1 %v4961_v45  ;;  %3435 = vmatprep.mubr.bf16.mxu0 %v4984_v46  ;;  %v4917_v45 = vcombine.low %v342_v24, %v354_v25  ;;  %v4940_v46 = vcombine.high %v7025_v35, %v7028_v36  ;;  %v6336_v23 = vld [vmem:[#allocation5 + $0x540] sm:$0xff]  }
 0x14a   : > { %3532 = vmatprep.mubr.bf16.mxu1 %v4986_v47  ;;  %v6321_v47 = vld [vmem:[#allocation5 + $0x420] sm:$0xff]  }
 0x150   : > { %3436 = vmatmul.mubr.bf16.gmra.mrb[84].mxu0 %v4983_v52  ;;  %v7041_v52 = vld [vmem:[%s6902_s9 + $0x330] sm:$0xff] }
 0x151   : > { %3533 = vmatmul.mubr.bf16.gmra.mrb[84].mxu1 %v4985_v53  ;;  %3443 = vmatprep.mubr.bf16.mxu0 %v5008_v54  ;;  %v7044_v53 = vld [vmem:[%s6902_s9 + $0x390] sm:$0xff]  ;;  %v7047_v54 = vld [vmem:[%s6902_s9 + $0x338] sm:$0xff] }
 0x152   : > { %3540 = vmatprep.mubr.bf16.mxu1 %v5010_v55  ;;  %v6325_v55 = vld [vmem:[#allocation5 + $0x428] sm:$0xff]   ;;  %v4966_v9 = vcombine.high %v7047_v54, %v7050_v57 }
 0x158   : > { %3444 = vmatmul.mubr.bf16.gmra.mrb[88].mxu0 %v5007_v60 }
 0x159   : > { %3541 = vmatmul.mubr.bf16.gmra.mrb[88].mxu1 %v5009_v61  ;;  %3451 = vmatprep.mubr.bf16.mxu0 %v5032_v62  ;;  %v4939_v62 = vcombine.low %v7025_v35, %v7028_v36 }
 0x15a   : > { %3548 = vmatprep.mubr.bf16.mxu1 %v5034_v63  ;;  %v6330_v63 = vld [vmem:[#allocation5 + $0x4f0] sm:$0xff]  }
 0x160   : > { %3452 = vmatmul.mubr.bf16.gmra.mrb[92].mxu0 %v5031_v4  ;;  %v4964_v4 = vcombine.high %v7041_v52, %v7044_v53 }
 0x161   : > { %3549 = vmatmul.mubr.bf16.gmra.mrb[92].mxu1 %v5033_v5  ;;  %3589 = vmatprep.mubr.bf16.mxu0 %v4868_v6  ;;  %v6329_v5 = vld [vmem:[#allocation5 + $0x430] sm:$0xff]  }
 0x162   : > { %3686 = vmatprep.mubr.bf16.mxu1 %v4870_v7 }
 0x168   : > { %3590 = vmatmul.mubr.bf16.vlgmr.msra.gmra.mrb[96].mxu0 %v4867_v10  ;;  %v6331_v10 = vld [vmem:[#allocation5 + $0x4b0] sm:$0xff]  }
 0x169   : > { %3687 = vmatmul.mubr.bf16.vlgmr.msra.gmra.mrb[96].mxu1 %v4869_v14  ;;  %5770 = vmatpush3.bf16.msra.mxu0 %v6305_v11  ;;  %v6332_v11 = vld [vmem:[#allocation5 + $0x478] sm:$0xff]  }
 0x16a   : > { %5834 = vmatpush3.bf16.msra.mxu1 %v6307_v15  ;;  %3597 = vmatprep.mubr.bf16.mxu0 %v4892_v16  ;;  %v6334_v14 = vld [vmem:[#allocation5 + $0x4f8] sm:$0xff]  }
 0x16b   : > { %3694 = vmatprep.mubr.bf16.mxu1 %v4894_v18  ;;  %5771 = vmatprep.subr.bf16.mxu0 %v6308_v17  ;;  %v7063_v17 = vld [vmem:[%s6902_s9 + $0x3f0] sm:$0xff] }
 0x16c   : > { %5835 = vmatprep.subr.bf16.mxu1 %v6310_v20  ;;  %v7066_v18 = vld [vmem:[%s6902_s9 + $0x450] sm:$0xff]  ;;  %v414_v20 = vld [vmem:[%s6902_s9 + $0x3f8] sm:$0xff] }
 0x16d   : > { %5772 = vmatpush3.bf16.msra.mxu0 %v6309_v19  ;;  %v6333_v19 = vld [vmem:[#allocation5 + $0x438] sm:$0xff]  }
 0x16e   : > { %5836 = vmatpush3.bf16.msra.mxu1 %v6311_v21  ;;  %5773 = vmatprep.subr.bf16.mxu0 %v6312_v26  ;;  %v426_v21 = vld [vmem:[%s6902_s9 + $0x458] sm:$0xff]  ;;  %v6338_v26 = vld [vmem:[#allocation5 + $0x5c0] sm:$0xff]  }
 0x16f   : > { %5837 = vmatprep.subr.bf16.mxu1 %v6314_v27  ;;  %v4990_v38 = vcombine.high %v414_v20, %v426_v21 }
 0x170   : > { %3598 = vmatmul.mubr.bf16.gmra.mrb[100].mxu0 %v4891_v28 }
 0x171   : > { %3695 = vmatmul.mubr.bf16.gmra.mrb[100].mxu1 %v4893_v29  ;;  %3605 = vmatprep.mubr.bf16.mxu0 %v4916_v30  ;;  %v4963_v29 = vcombine.low %v7041_v52, %v7044_v53 }
 0x172   : > { %3702 = vmatprep.mubr.bf16.mxu1 %v4918_v31  ;;  %5774 = vmatpush3.bf16.msra.mxu0 %v6313_v32 }
 0x173   : > { %5838 = vmatpush3.bf16.msra.mxu1 %v6315_v33  ;;  %5775 = vmatprep.subr.bf16.mxu0 %v6316_v34  ;;  %v4965_v33 = vcombine.low %v7047_v54, %v7050_v57  ;;  %v4988_v34 = vcombine.high %v7063_v17, %v7066_v18 }
 0x174   : > { %5839 = vmatprep.subr.bf16.mxu1 %v6318_v37 }
 0x176   : > { %5776 = vmatpush3.bf16.msra.mxu0 %v6317_v40 }
 0x177   : > { %5840 = vmatpush3.bf16.msra.mxu1 %v6319_v41  ;;  %5777 = vmatprep.subr.bf16.mxu0 %v6320_v42 }
 0x178   : > { %3606 = vmatmul.mubr.bf16.gmra.mrb[104].mxu0 %v4915_v43  ;;  %5841 = vmatprep.subr.bf16.mxu1 %v6322_v44  ;;  %v437_v44 = vld [vmem:[%s6902_s9 + $0x4b0] sm:$0xff] }
 0x179   : > { %3703 = vmatmul.mubr.bf16.gmra.mrb[104].mxu1 %v4917_v45  ;;  %3613 = vmatprep.mubr.bf16.mxu0 %v4940_v46  ;;  %v449_v45 = vld [vmem:[%s6902_s9 + $0x510] sm:$0xff] }
 0x17a   : > { %3710 = vmatprep.mubr.bf16.mxu1 %v4942_v48  ;;  %5778 = vmatpush3.bf16.msra.mxu0 %v6321_v47  ;;  %v438_v47 = vld [vmem:[%s6902_s9 + $0x4b8] sm:$0xff] }
 0x17b   : > { %v5273_v56 = vpop.f32.mrb[0].mxu0  ;;  %5842 = vmatpush3.bf16.msra.mxu1 %v6323_v49  ;;  %5779 = vmatprep.subr.bf16.mxu0 %v6324_v50  ;;  %v450_v48 = vld [vmem:[%s6902_s9 + $0x518] sm:$0xff] }
 0x17c   : > { %v5337_v60 = vpop.f32.mrb[0].mxu1  ;;  %v5274_v61 = vpop.f32.mrb[1].mxu0  ;;  %5843 = vmatprep.subr.bf16.mxu1 %v6326_v51  ;;  %v4987_v51 = vcombine.low %v7063_v17, %v7066_v18 }
 0x17d   : > { %v5275_v0 = vadd.f32 %v5274_v61, %v5273_v56  ;;  %v5338_v1 = vpop.f32.mrb[1].mxu1  ;;  %v5276_v2 = vpop.f32.mrb[2].mxu0  ;;  %v5012_v56 = vcombine.high %v437_v44, %v449_v45 }
 0x17e   : > { %v5339_v6 = vadd.f32 %v5338_v1, %v5337_v60  ;;  %v5340_v7 = vpop.f32.mrb[2].mxu1  ;;  %v5277_v8 = vpop.f32.mrb[3].mxu0  ;;  %5780 = vmatpush3.bf16.msra.mxu0 %v6325_v55  ;;  %v4989_v55 = vcombine.low %v414_v20, %v426_v21  ;;  %v5014_v60 = vcombine.high %v438_v47, %v450_v48 }
 0x17f   : > { %v5278_v12 = vadd.f32 %v5277_v8, %v5276_v2  ;;  %v5341_v13 = vpop.f32.mrb[3].mxu1  ;;  %5844 = vmatpush3.bf16.msra.mxu1 %v6327_v58  ;;  %5781 = vmatprep.subr.bf16.mxu0 %v6328_v59  ;;  %v461_v2 = vld [vmem:[%s6902_s9 + $0x570] sm:$0xff] }
 0x180   : > { %v7060_v15 = vadd.f32 %v5339_v6, %v5275_v0  ;;  %v5342_v16 = vadd.f32 %v5341_v13, %v5340_v7  ;;  %3614 = vmatmul.mubr.bf16.gmra.mrb[108].mxu0 %v4939_v62  ;;  %5845 = vmatprep.subr.bf16.mxu1 %v6330_v63  ;;  %v474_v6 = vld [vmem:[%s6902_s9 + $0x5d8] sm:$0xff]  ;;  %v5013_v13 = vcombine.low %v438_v47, %v450_v48 }
 0x181   : > { %3711 = vmatmul.mubr.bf16.gmra.mrb[108].mxu1 %v4941_v3  ;;  %3621 = vmatprep.mubr.bf16.mxu0 %v4964_v4  ;;  %v473_v3 = vld [vmem:[%s6902_s9 + $0x5d0] sm:$0xff] }
 0x182   : > { %v7070_v24 = vadd.f32 %v5342_v16, %v5278_v12  ;;  %3718 = vmatprep.mubr.bf16.mxu1 %v4966_v9  ;;  %5782 = vmatpush3.bf16.msra.mxu0 %v6329_v5  ;;  %v462_v5 = vld [vmem:[%s6902_s9 + $0x578] sm:$0xff]  ;;  %v5011_v9 = vcombine.low %v437_v44, %v449_v45 }
 0x183   : > { %v5279_v25 = vpop.f32.mrb[4].mxu0  ;;  %5846 = vmatpush3.bf16.msra.mxu1 %v6331_v10  ;;  %5783 = vmatprep.subr.bf16.mxu0 %v6332_v11 }
 0x184   : > { %v5343_v27 = vpop.f32.mrb[4].mxu1  ;;  %v5280_v28 = vpop.f32.mrb[5].mxu0  ;;  %5847 = vmatprep.subr.bf16.mxu1 %v6334_v14  ;;  %v5036_v14 = vcombine.high %v461_v2, %v473_v3 }
 0x185   : > { %v5281_v30 = vadd.f32 %v5280_v28, %v5279_v25  ;;  %v5344_v31 = vpop.f32.mrb[5].mxu1  ;;  %v5282_v32 = vpop.f32.mrb[6].mxu0 }
 0x186   : > { %v5345_v35 = vadd.f32 %v5344_v31, %v5343_v27  ;;  %v5346_v36 = vpop.f32.mrb[6].mxu1  ;;  %v5283_v37 = vpop.f32.mrb[7].mxu0  ;;  %5784 = vmatpush3.bf16.msra.mxu0 %v6333_v19  ;;  %v5038_v19 = vcombine.high %v462_v5, %v474_v6  ;;  %v307_v27 = vld [vmem:[%s6902_s9 + $0xa0] sm:$0xff] }
 0x187   : > { %v5284_v39 = vadd.f32 %v5283_v37, %v5282_v32  ;;  %v5347_v40 = vpop.f32.mrb[7].mxu1  ;;  %5848 = vmatpush3.bf16.msra.mxu1 %v6335_v22  ;;  %5897 = vmatprep.subr.bf16.mxu0 %v6336_v23  ;;  %v5037_v37 = vcombine.low %v462_v5, %v474_v6 }
 0x188   : > { %v7078_v41 = vadd.f32 %v5345_v35, %v5281_v30  ;;  %v5348_v42 = vadd.f32 %v5347_v40, %v5346_v36  ;;  %3622 = vmatmul.mubr.bf16.gmra.mrb[112].mxu0 %v4963_v29  ;;  %5961 = vmatprep.subr.bf16.mxu1 %v6338_v26  ;;  %v295_v26 = vld [vmem:[%s6902_s9 + $0x40] sm:$0xff]  ;;  %v296_v29 = vld [vmem:[%s6902_s9 + $0x48] sm:$0xff] }
 0x189   : > { %3719 = vmatmul.mubr.bf16.gmra.mrb[112].mxu1 %v4965_v33  ;;  %3629 = vmatprep.mubr.bf16.mxu0 %v4988_v34  ;;  %v308_v30 = vld [vmem:[%s6902_s9 + $0xa8] sm:$0xff]  ;;  %v5035_v33 = vcombine.low %v461_v2, %v473_v3 }
 0x18a   : > { %v7080_v43 = vadd.f32 %v5348_v42, %v5284_v39  ;;  %3726 = vmatprep.mubr.bf16.mxu1 %v4990_v38  ;;  %v4872_v38 = vcombine.high %v295_v26, %v307_v27  ;;  %v4874_v44 = vcombine.high %v296_v29, %v308_v30 }
 0x18b   : > { %v5285_v46 = vpop.f32.mrb[8].mxu0 }
 0x18c   : > { %v5349_v49 = vpop.f32.mrb[8].mxu1  ;;  %v5286_v50 = vpop.f32.mrb[9].mxu0 }
 0x18d   : > { %v5287_v52 = vadd.f32 %v5286_v50, %v5285_v46  ;;  %v5350_v53 = vpop.f32.mrb[9].mxu1  ;;  %v5288_v54 = vpop.f32.mrb[10].mxu0 }
 0x18e   : > { %v5351_v57 = vadd.f32 %v5350_v53, %v5349_v49  ;;  %v5352_v58 = vpop.f32.mrb[10].mxu1  ;;  %v5289_v59 = vpop.f32.mrb[11].mxu0 }
 0x18f   : > { %v5290_v61 = vadd.f32 %v5289_v59, %v5288_v54  ;;  %v5353_v62 = vpop.f32.mrb[11].mxu1 }
 0x190   : > { %v7088_v63 = vadd.f32 %v5351_v57, %v5287_v52  ;;  %v5354_v0 = vadd.f32 %v5353_v62, %v5352_v58  ;;  %3630 = vmatmul.mubr.bf16.gmra.mrb[116].mxu0 %v4987_v51  ;;  %v7109_v51 = vld [vmem:[%s6902_s9 + $0x100] sm:$0xff]  ;;  %v332_v57 = vld [vmem:[%s6902_s9 + $0x168] sm:$0xff] }
 0x191   : > { %3727 = vmatmul.mubr.bf16.gmra.mrb[116].mxu1 %v4989_v55  ;;  %3637 = vmatprep.mubr.bf16.mxu0 %v5012_v56  ;;  %v7112_v52 = vld [vmem:[%s6902_s9 + $0x160] sm:$0xff]  ;;  %v4871_v55 = vcombine.low %v295_v26, %v307_v27  ;;  %v320_v56 = vld [vmem:[%s6902_s9 + $0x108] sm:$0xff]  ;;  %v6346_v26 = vld [vmem:[#allocation5 + $0x5d0] sm:$0xff]  }
 0x192   : > { %v7090_v1 = vadd.f32 %v5354_v0, %v5290_v61  ;;  %3734 = vmatprep.mubr.bf16.mxu1 %v5014_v60  ;;  %v4873_v61 = vcombine.low %v296_v29, %v308_v30  ;;  %v6337_v62 = vld [vmem:[#allocation5 + $0x500] sm:$0xff]   ;;  %v4896_v5 = vcombine.high %v7109_v51, %v7112_v52  ;;  %v4895_v29 = vcombine.low %v7109_v51, %v7112_v52 }
 0x193   : > { %v5291_v4 = vpop.f32.mrb[12].mxu0  ;;  %v7143_v51 = vld [vmem:[%s6902_s9 + $0x280] sm:$0xff] }
 0x194   : > { %v5355_v7 = vpop.f32.mrb[12].mxu1  ;;  %v5292_v8 = vpop.f32.mrb[13].mxu0 }
 0x195   : > { %v5293_v10 = vadd.f32 %v5292_v8, %v5291_v4  ;;  %v5356_v11 = vpop.f32.mrb[13].mxu1  ;;  %v5294_v12 = vpop.f32.mrb[14].mxu0  ;;  %v6339_v4 = vld [vmem:[#allocation5 + $0x580] sm:$0xff]   ;;  %v4898_v8 = vcombine.high %v320_v56, %v332_v57 }
 0x196   : > { %v5357_v16 = vadd.f32 %v5356_v11, %v5355_v7  ;;  %v5358_v17 = vpop.f32.mrb[14].mxu1  ;;  %v5295_v18 = vpop.f32.mrb[15].mxu0 }
 0x197   : > { %v5296_v20 = vadd.f32 %v5295_v18, %v5294_v12  ;;  %v5359_v21 = vpop.f32.mrb[15].mxu1  ;;  %v6342_v12 = vld [vmem:[#allocation5 + $0x5c8] sm:$0xff]   ;;  %v7126_v18 = vld [vmem:[%s6902_s9 + $0x220] sm:$0xff] }
 0x198   : > { %v7096_v22 = vadd.f32 %v5357_v16, %v5293_v10  ;;  %v5360_v23 = vadd.f32 %v5359_v21, %v5358_v17  ;;  %3638 = vmatmul.mubr.bf16.gmra.mrb[120].mxu0 %v5011_v9  ;;  %v6340_v9 = vld [vmem:[#allocation5 + $0x548] sm:$0xff]   ;;  %v7123_v17 = vld [vmem:[%s6902_s9 + $0x1c0] sm:$0xff] }
 0x199   : > { %3735 = vmatmul.mubr.bf16.gmra.mrb[120].mxu1 %v5013_v13  ;;  %3645 = vmatprep.mubr.bf16.mxu0 %v5036_v14  ;;  %v6341_v13 = vld [vmem:[#allocation5 + $0x508] sm:$0xff]  }
 0x19a   : > { %v7098_v25 = vadd.f32 %v5360_v23, %v5296_v20  ;;  %3742 = vmatprep.mubr.bf16.mxu1 %v5038_v19  ;;  %v6343_v14 = vld [vmem:[#allocation5 + $0x588] sm:$0xff]   ;;  %v6344_v19 = vld [vmem:[#allocation5 + $0x550] sm:$0xff]  }
 0x19b   : > { %v5297_v28 = vpop.f32.mrb[16].mxu0  ;;  %v7129_v21 = vld [vmem:[%s6902_s9 + $0x1c8] sm:$0xff] }
 0x19c   : > { %v5361_v31 = vpop.f32.mrb[16].mxu1  ;;  %v5298_v32 = vpop.f32.mrb[17].mxu0  ;;  %v7132_v23 = vld [vmem:[%s6902_s9 + $0x228] sm:$0xff] }
 0x19d   : > { %v5299_v34 = vadd.f32 %v5298_v32, %v5297_v28  ;;  %v5362_v35 = vpop.f32.mrb[17].mxu1  ;;  %v5300_v36 = vpop.f32.mrb[18].mxu0 }
 0x19e   : > { %v5363_v39 = vadd.f32 %v5362_v35, %v5361_v31  ;;  %v5364_v40 = vpop.f32.mrb[18].mxu1  ;;  %v5301_v42 = vpop.f32.mrb[19].mxu0 }
 0x19f   : > { %v5302_v45 = vadd.f32 %v5301_v42, %v5300_v36  ;;  %v5365_v46 = vpop.f32.mrb[19].mxu1 }
 0x1a0   : > { %v7104_v47 = vadd.f32 %v5363_v39, %v5299_v34  ;;  %v5366_v48 = vadd.f32 %v5365_v46, %v5364_v40  ;;  %3646 = vmatmul.mubr.bf16.gmra.mrb[124].mxu0 %v5035_v33  ;;  %v4897_v33 = vcombine.low %v320_v56, %v332_v57  ;;  %v4920_v34 = vcombine.high %v7123_v17, %v7126_v18  ;;  %v6345_v39 = vld [vmem:[#allocation5 + $0x510] sm:$0xff]   ;;  %v7154_v57 = vld [vmem:[%s6902_s9 + $0x2e8] sm:$0xff] }
 0x1a1   : > { %3743 = vmatmul.mubr.bf16.gmra.mrb[124].mxu1 %v5037_v37  ;;  %3783 = vmatprep.mubr.bf16.mxu0 %v4872_v38  ;;  %v4922_v38 = vcombine.high %v7129_v21, %v7132_v23 }
 0x1a2   : > { %v7106_v49 = vadd.f32 %v5366_v48, %v5302_v45  ;;  %3880 = vmatprep.mubr.bf16.mxu1 %v4874_v44  ;;  %v6347_v44 = vld [vmem:[#allocation5 + $0x590] sm:$0xff]   ;;  %v6348_v45 = vld [vmem:[#allocation5 + $0x558] sm:$0xff]  }
 0x1a3   : > { %v5303_v50 = vpop.f32.mrb[20].mxu0 }
 0x1a4   : > { %v5367_v53 = vpop.f32.mrb[20].mxu1  ;;  %v5304_v54 = vpop.f32.mrb[21].mxu0 }
 0x1a5   : > { %v5305_v58 = vadd.f32 %v5304_v54, %v5303_v50  ;;  %v5368_v59 = vpop.f32.mrb[21].mxu1  ;;  %v5306_v60 = vpop.f32.mrb[22].mxu0  ;;  %v6350_v50 = vld [vmem:[#allocation5 + $0x5d8] sm:$0xff]   ;;  %v7151_v54 = vld [vmem:[%s6902_s9 + $0x288] sm:$0xff] }
 0x1a6   : > { %v5369_v0 = vadd.f32 %v5368_v59, %v5367_v53  ;;  %v5370_v2 = vpop.f32.mrb[22].mxu1  ;;  %v5307_v3 = vpop.f32.mrb[23].mxu0  ;;  %v7148_v53 = vld [vmem:[%s6902_s9 + $0x2e0] sm:$0xff] }
 0x1a7   : > { %v5308_v6 = vadd.f32 %v5307_v3, %v5306_v60  ;;  %v5371_v7 = vpop.f32.mrb[23].mxu1  ;;  %v6352_v59 = vld [vmem:[#allocation5 + $0x560] sm:$0xff]  }
 0x1a8   : > { %v7118_v10 = vadd.f32 %v5369_v0, %v5305_v58  ;;  %v5372_v11 = vadd.f32 %v5371_v7, %v5370_v2  ;;  %3784 = vmatmul.mubr.bf16.vlgmr.msra.gmra.mrb[128].mxu0 %v4871_v55  ;;  %v6349_v55 = vld [vmem:[#allocation5 + $0x518] sm:$0xff]   ;;  %v6354_v0 = vld [vmem:[#allocation5 + $0x5e0] sm:$0xff]  }
 0x1a9   : > { %3881 = vmatmul.mubr.bf16.vlgmr.msra.gmra.mrb[128].mxu1 %v4873_v61  ;;  %5898 = vmatpush3.bf16.msra.mxu0 %v6337_v62  ;;  %v6351_v58 = vld [vmem:[#allocation5 + $0x598] sm:$0xff]   ;;  %v4919_v62 = vcombine.low %v7123_v17, %v7126_v18  ;;  %v6355_v17 = vld [vmem:[#allocation5 + $0x5a0] sm:$0xff]   ;;  %v6356_v18 = vld [vmem:[#allocation5 + $0x568] sm:$0xff]  }
 0x1aa   : > { %v7120_v16 = vadd.f32 %v5372_v11, %v5308_v6  ;;  %5962 = vmatpush3.bf16.msra.mxu1 %v6339_v4  ;;  %3791 = vmatprep.mubr.bf16.mxu0 %v4896_v5  ;;  %v4921_v5 = vcombine.low %v7129_v21, %v7132_v23  ;;  %v4944_v6 = vcombine.high %v7143_v51, %v7148_v53  ;;  %v6358_v21 = vld [vmem:[#allocation5 + $0x5e8] sm:$0xff]   ;;  %v7167_v23 = vld [vmem:[%s6902_s9 + $0x340] sm:$0xff] }
 0x1ab   : > { %v5309_v20 = vpop.f32.mrb[24].mxu0  ;;  %3888 = vmatprep.mubr.bf16.mxu1 %v4898_v8  ;;  %5899 = vmatprep.subr.bf16.mxu0 %v6340_v9  ;;  %v4946_v11 = vcombine.high %v7151_v54, %v7154_v57 }
 0x1ac   : > { %v5373_v27 = vpop.f32.mrb[24].mxu1  ;;  %v5310_v28 = vpop.f32.mrb[25].mxu0  ;;  %5963 = vmatprep.subr.bf16.mxu1 %v6342_v12  ;;  %v6353_v12 = vld [vmem:[#allocation5 + $0x520] sm:$0xff]  }
 0x1ad   : > { %v5311_v30 = vadd.f32 %v5310_v28, %v5309_v20  ;;  %v5374_v31 = vpop.f32.mrb[25].mxu1  ;;  %v5312_v32 = vpop.f32.mrb[26].mxu0  ;;  %5900 = vmatpush3.bf16.msra.mxu0 %v6341_v13  ;;  %v7175_v28 = vld [vmem:[%s6902_s9 + $0x348] sm:$0xff] }
 0x1ae   : > { %v5375_v35 = vadd.f32 %v5374_v31, %v5373_v27  ;;  %v5376_v36 = vpop.f32.mrb[26].mxu1  ;;  %v5313_v37 = vpop.f32.mrb[27].mxu0  ;;  %5964 = vmatpush3.bf16.msra.mxu1 %v6343_v14  ;;  %5901 = vmatprep.subr.bf16.mxu0 %v6344_v19  ;;  %v7172_v27 = vld [vmem:[%s6902_s9 + $0x3a0] sm:$0xff]  ;;  %v7178_v31 = vld [vmem:[%s6902_s9 + $0x3a8] sm:$0xff] }
 0x1af   : > { %v5314_v40 = vadd.f32 %v5313_v37, %v5312_v32  ;;  %v5377_v42 = vpop.f32.mrb[27].mxu1  ;;  %5965 = vmatprep.subr.bf16.mxu1 %v6346_v26  ;;  %v6359_v32 = vld [vmem:[#allocation5 + $0x5a8] sm:$0xff]   ;;  %v6362_v37 = vld [vmem:[#allocation5 + $0x5f0] sm:$0xff]  }
 0x1b0   : > { %v7140_v46 = vadd.f32 %v5375_v35, %v5311_v30  ;;  %v5378_v48 = vadd.f32 %v5377_v42, %v5376_v36  ;;  %3792 = vmatmul.mubr.bf16.gmra.mrb[132].mxu0 %v4895_v29  ;;  %v6357_v29 = vld [vmem:[#allocation5 + $0x528] sm:$0xff]   ;;  %v4943_v36 = vcombine.low %v7143_v51, %v7148_v53  ;;  %v4945_v42 = vcombine.low %v7151_v54, %v7154_v57  ;;  %v6363_v54 = vld [vmem:[#allocation5 + $0x5b0] sm:$0xff]   ;;  %v6364_v57 = vld [vmem:[#allocation5 + $0x578] sm:$0xff]  }
 0x1b1   : > { %3889 = vmatmul.mubr.bf16.gmra.mrb[132].mxu1 %v4897_v33  ;;  %3799 = vmatprep.mubr.bf16.mxu0 %v4920_v34  ;;  %v6360_v33 = vld [vmem:[#allocation5 + $0x570] sm:$0xff]  }
 0x1b2   : > { %v7145_v52 = vadd.f32 %v5378_v48, %v5314_v40  ;;  %3896 = vmatprep.mubr.bf16.mxu1 %v4922_v38  ;;  %5902 = vmatpush3.bf16.msra.mxu0 %v6345_v39 }
 0x1b3   : > { %v5315_v56 = vpop.f32.mrb[28].mxu0  ;;  %5966 = vmatpush3.bf16.msra.mxu1 %v6347_v44  ;;  %5903 = vmatprep.subr.bf16.mxu0 %v6348_v45  ;;  %v4968_v44 = vcombine.high %v7167_v23, %v7172_v27 }
 0x1b4   : > { %v5379_v60 = vpop.f32.mrb[28].mxu1  ;;  %v5316_v61 = vpop.f32.mrb[29].mxu0  ;;  %5967 = vmatprep.subr.bf16.mxu1 %v6350_v50 }
 0x1b5   : > { %v5317_v2 = vadd.f32 %v5316_v61, %v5315_v56  ;;  %v5380_v3 = vpop.f32.mrb[29].mxu1  ;;  %v5318_v4 = vpop.f32.mrb[30].mxu0  ;;  %v6361_v56 = vld [vmem:[#allocation5 + $0x530] sm:$0xff]  }
 0x1b6   : > { %v5381_v7 = vadd.f32 %v5380_v3, %v5379_v60  ;;  %v5382_v8 = vpop.f32.mrb[30].mxu1  ;;  %v5319_v9 = vpop.f32.mrb[31].mxu0  ;;  %5904 = vmatpush3.bf16.msra.mxu0 %v6349_v55  ;;  %v4970_v55 = vcombine.high %v7175_v28, %v7178_v31  ;;  %v6366_v60 = vld [vmem:[#allocation5 + $0x5f8] sm:$0xff]  }
 0x1b7   : > { %v5320_v13 = vadd.f32 %v5319_v9, %v5318_v4  ;;  %v5383_v14 = vpop.f32.mrb[31].mxu1  ;;  %5968 = vmatpush3.bf16.msra.mxu1 %v6351_v58  ;;  %5905 = vmatprep.subr.bf16.mxu0 %v6352_v59 }
 0x1b8   : > { %v7164_v19 = vadd.f32 %v5381_v7, %v5317_v2  ;;  %v5384_v20 = vadd.f32 %v5383_v14, %v5382_v8  ;;  %3800 = vmatmul.mubr.bf16.gmra.mrb[136].mxu0 %v4919_v62  ;;  %5969 = vmatprep.subr.bf16.mxu1 %v6354_v0  ;;  %v427_v0 = vld [vmem:[%s6902_s9 + $0x460] sm:$0xff]  ;;  %v6365_v2 = vld [vmem:[#allocation5 + $0x538] sm:$0xff]   ;;  %v4969_v14 = vcombine.low %v7175_v28, %v7178_v31 }
 0x1b9   : > { %3897 = vmatmul.mubr.bf16.gmra.mrb[136].mxu1 %v4921_v5  ;;  %3807 = vmatprep.mubr.bf16.mxu0 %v4944_v6  ;;  %v416_v5 = vld [vmem:[%s6902_s9 + $0x408] sm:$0xff]  ;;  %v6367_v7 = vld [vmem:[#allocation5 + $0x5b8] sm:$0xff]   ;;  %v439_v31 = vld [vmem:[%s6902_s9 + $0x4c0] sm:$0xff] }
 0x1ba   : > { %v7169_v26 = vadd.f32 %v5384_v20, %v5320_v13  ;;  %3904 = vmatprep.mubr.bf16.mxu1 %v4946_v11  ;;  %5906 = vmatpush3.bf16.msra.mxu0 %v6353_v12  ;;  %v428_v6 = vld [vmem:[%s6902_s9 + $0x468] sm:$0xff] }
 0x1bb   : > { %v5401_v30 = vpop.f32.mrb[32].mxu0  ;;  %5970 = vmatpush3.bf16.msra.mxu1 %v6355_v17  ;;  %5907 = vmatprep.subr.bf16.mxu0 %v6356_v18 }
 0x1bc   : > { %v5465_v34 = vpop.f32.mrb[32].mxu1  ;;  %v5402_v35 = vpop.f32.mrb[33].mxu0  ;;  %5971 = vmatprep.subr.bf16.mxu1 %v6358_v21 }
 0x1bd   : > { %v5403_v38 = vadd.f32 %v5402_v35, %v5401_v30  ;;  %v5466_v39 = vpop.f32.mrb[33].mxu1  ;;  %v5404_v40 = vpop.f32.mrb[34].mxu0 }
 0x1be   : > { %v5467_v45 = vadd.f32 %v5466_v39, %v5465_v34  ;;  %v5468_v48 = vpop.f32.mrb[34].mxu1  ;;  %v5405_v50 = vpop.f32.mrb[35].mxu0  ;;  %5908 = vmatpush3.bf16.msra.mxu0 %v6357_v29  ;;  %v4994_v29 = vcombine.high %v416_v5, %v428_v6  ;;  %v451_v34 = vld [vmem:[%s6902_s9 + $0x520] sm:$0xff] }
 0x1bf   : > { %v3204_v51 = vadd.f32 %v5403_v38, %v7060_v15  ;;  %v5406_v53 = vadd.f32 %v5405_v50, %v5404_v40  ;;  %v5469_v58 = vpop.f32.mrb[35].mxu1  ;;  %5972 = vmatpush3.bf16.msra.mxu1 %v6359_v32  ;;  %5909 = vmatprep.subr.bf16.mxu0 %v6360_v33  ;;  %v415_v15 = vld [vmem:[%s6902_s9 + $0x400] sm:$0xff]  ;;  %v5016_v50 = vcombine.high %v439_v31, %v451_v34 }
 0x1c0   : > { %v5470_v59 = vadd.f32 %v5469_v58, %v5468_v48  ;;  %3808 = vmatmul.mubr.bf16.gmra.mrb[140].mxu0 %v4943_v36  ;;  %5973 = vmatprep.subr.bf16.mxu1 %v6362_v37  ;;  %v4992_v17 = vcombine.high %v415_v15, %v427_v0  ;;  %v440_v37 = vld [vmem:[%s6902_s9 + $0x4c8] sm:$0xff]  ;;  %v4991_v40 = vcombine.low %v415_v15, %v427_v0  ;;  %v475_v15 = vld [vmem:[%s6902_s9 + $0x5e0] sm:$0xff] }
 0x1c1   : > { %v7189_v61 = vadd.f32 %v5467_v45, %v3204_v51  ;;  %v3207_v62 = vadd.f32 %v5406_v53, %v7070_v24  ;;  %3905 = vmatmul.mubr.bf16.gmra.mrb[140].mxu1 %v4945_v42  ;;  %3815 = vmatprep.mubr.bf16.mxu0 %v4968_v44  ;;  %v4967_v24 = vcombine.low %v7167_v23, %v7172_v27 }
 0x1c2   : > { %3912 = vmatprep.mubr.bf16.mxu1 %v4970_v55  ;;  %5910 = vmatpush3.bf16.msra.mxu0 %v6361_v56  ;;  %v4993_v48 = vcombine.low %v416_v5, %v428_v6  ;;  %v476_v5 = vld [vmem:[%s6902_s9 + $0x5e8] sm:$0xff] }
 0x1c3   : > { %v7194_v3 = vadd.f32 %v5470_v59, %v3207_v62  ;;  %v5407_v4 = vpop.f32.mrb[36].mxu0  ;;  %5974 = vmatpush3.bf16.msra.mxu1 %v6363_v54  ;;  %5911 = vmatprep.subr.bf16.mxu0 %v6364_v57  ;;  %v463_v62 = vld [vmem:[%s6902_s9 + $0x580] sm:$0xff] }
 0x1c4   : > { %v5471_v8 = vpop.f32.mrb[36].mxu1  ;;  %v5408_v9 = vpop.f32.mrb[37].mxu0  ;;  %5975 = vmatprep.subr.bf16.mxu1 %v6366_v60 }
 0x1c5   : > { %v5409_v11 = vadd.f32 %v5408_v9, %v5407_v4  ;;  %v5472_v12 = vpop.f32.mrb[37].mxu1  ;;  %v5410_v13 = vpop.f32.mrb[38].mxu0  ;;  %v464_v4 = vld [vmem:[%s6902_s9 + $0x588] sm:$0xff] }
 0x1c6   : > { %v5473_v18 = vadd.f32 %v5472_v12, %v5471_v8  ;;  %v5474_v20 = vpop.f32.mrb[38].mxu1  ;;  %v5411_v21 = vpop.f32.mrb[39].mxu0  ;;  %5912 = vmatpush3.bf16.msra.mxu0 %v6365_v2  ;;  %v5040_v12 = vcombine.high %v463_v62, %v475_v15 }
 0x1c7   : > { %v3212_v30 = vadd.f32 %v5409_v11, %v7078_v41  ;;  %v5412_v23 = vadd.f32 %v5411_v21, %v5410_v13  ;;  %v5475_v27 = vpop.f32.mrb[39].mxu1  ;;  %5976 = vmatpush3.bf16.msra.mxu1 %v6367_v7  ;;  %v452_v41 = vld [vmem:[%s6902_s9 + $0x528] sm:$0xff]  ;;  %v5015_v7 = vcombine.low %v439_v31, %v451_v34  ;;  %v298_v34 = vld [vmem:[%s6902_s9 + $0x58] sm:$0xff] }
 0x1c8   : > { %v5476_v32 = vadd.f32 %v5475_v27, %v5474_v20  ;;  %3816 = vmatmul.mubr.bf16.gmra.mrb[144].mxu0 %v4967_v24  ;;  %v5018_v51 = vcombine.high %v440_v37, %v452_v41  ;;  %v5017_v11 = vcombine.low %v440_v37, %v452_v41  ;;  %v297_v27 = vld [vmem:[%s6902_s9 + $0x50] sm:$0xff]  ;;  %v5039_v41 = vcombine.low %v463_v62, %v475_v15  ;;  %v322_v15 = vld [vmem:[%s6902_s9 + $0x118] sm:$0xff] }
 0x1c9   : > { %v7203_v33 = vadd.f32 %v5473_v18, %v3212_v30  ;;  %v3215_v28 = vadd.f32 %v5412_v23, %v7080_v43  ;;  %3913 = vmatmul.mubr.bf16.gmra.mrb[144].mxu1 %v4969_v14  ;;  %3823 = vmatprep.mubr.bf16.mxu0 %v4992_v17  ;;  %v5042_v17 = vcombine.high %v464_v4, %v476_v5 }
 0x1ca   : > { %3920 = vmatprep.mubr.bf16.mxu1 %v4994_v29 }
 0x1cb   : > { %v7208_v35 = vadd.f32 %v5476_v32, %v3215_v28  ;;  %v5413_v36 = vpop.f32.mrb[40].mxu0  ;;  %v309_v32 = vld [vmem:[%s6902_s9 + $0xb0] sm:$0xff] }
 0x1cc   : > { %v5477_v38 = vpop.f32.mrb[40].mxu1  ;;  %v5414_v39 = vpop.f32.mrb[41].mxu0 }
 0x1cd   : > { %v5415_v42 = vadd.f32 %v5414_v39, %v5413_v36  ;;  %v5478_v44 = vpop.f32.mrb[41].mxu1  ;;  %v5416_v45 = vpop.f32.mrb[42].mxu0  ;;  %v310_v36 = vld [vmem:[%s6902_s9 + $0xb8] sm:$0xff] }
 0x1ce   : > { %v5479_v43 = vadd.f32 %v5478_v44, %v5477_v38  ;;  %v5480_v55 = vpop.f32.mrb[42].mxu1  ;;  %v5417_v56 = vpop.f32.mrb[43].mxu0  ;;  %v4876_v44 = vcombine.high %v297_v27, %v309_v32 }
 0x1cf   : > { %v3220_v53 = vadd.f32 %v5415_v42, %v7088_v63  ;;  %v5418_v58 = vadd.f32 %v5417_v56, %v5416_v45  ;;  %v5481_v54 = vpop.f32.mrb[43].mxu1  ;;  %v5041_v42 = vcombine.low %v464_v4, %v476_v5  ;;  %v4875_v5 = vcombine.low %v297_v27, %v309_v32  ;;  %v346_v32 = vld [vmem:[%s6902_s9 + $0x1d8] sm:$0xff] }
 0x1d0   : > { %v5482_v57 = vadd.f32 %v5481_v54, %v5480_v55  ;;  %3824 = vmatmul.mubr.bf16.gmra.mrb[148].mxu0 %v4991_v40  ;;  %v321_v54 = vld [vmem:[%s6902_s9 + $0x110] sm:$0xff] }
 0x1d1   : > { %v7213_v59 = vadd.f32 %v5479_v43, %v3220_v53  ;;  %v3223_v60 = vadd.f32 %v5418_v58, %v7090_v1  ;;  %3921 = vmatmul.mubr.bf16.gmra.mrb[148].mxu1 %v4993_v48  ;;  %3831 = vmatprep.mubr.bf16.mxu0 %v5016_v50  ;;  %v4878_v50 = vcombine.high %v298_v34, %v310_v36 }
 0x1d2   : > { %3928 = vmatprep.mubr.bf16.mxu1 %v5018_v51 }
 0x1d3   : > { %v7218_v0 = vadd.f32 %v5482_v57, %v3223_v60  ;;  %v5419_v2 = vpop.f32.mrb[44].mxu0  ;;  %v333_v57 = vld [vmem:[%s6902_s9 + $0x170] sm:$0xff] }
 0x1d4   : > { %v5483_v6 = vpop.f32.mrb[44].mxu1  ;;  %v5420_v63 = vpop.f32.mrb[45].mxu0 }
 0x1d5   : > { %v5421_v8 = vadd.f32 %v5420_v63, %v5419_v2  ;;  %v5484_v9 = vpop.f32.mrb[45].mxu1  ;;  %v5422_v24 = vpop.f32.mrb[46].mxu0  ;;  %v334_v2 = vld [vmem:[%s6902_s9 + $0x178] sm:$0xff] }
 0x1d6   : > { %v5485_v1 = vadd.f32 %v5484_v9, %v5483_v6  ;;  %v5486_v13 = vpop.f32.mrb[46].mxu1  ;;  %v5423_v14 = vpop.f32.mrb[47].mxu0  ;;  %v4900_v9 = vcombine.high %v321_v54, %v333_v57 }
 0x1d7   : > { %v3228_v18 = vadd.f32 %v5421_v8, %v7096_v22  ;;  %v5424_v20 = vadd.f32 %v5423_v14, %v5422_v24  ;;  %v5487_v21 = vpop.f32.mrb[47].mxu1  ;;  %v4877_v8 = vcombine.low %v298_v34, %v310_v36  ;;  %v4899_v36 = vcombine.low %v321_v54, %v333_v57  ;;  %v370_v57 = vld [vmem:[%s6902_s9 + $0x298] sm:$0xff] }
 0x1d8   : > { %v5488_v29 = vadd.f32 %v5487_v21, %v5486_v13  ;;  %3832 = vmatmul.mubr.bf16.gmra.mrb[152].mxu0 %v5015_v7  ;;  %v345_v21 = vld [vmem:[%s6902_s9 + $0x1d0] sm:$0xff] }
 0x1d9   : > { %v7223_v30 = vadd.f32 %v5485_v1, %v3228_v18  ;;  %v3231_v23 = vadd.f32 %v5424_v20, %v7098_v25  ;;  %3929 = vmatmul.mubr.bf16.gmra.mrb[152].mxu1 %v5017_v11  ;;  %3839 = vmatprep.mubr.bf16.mxu0 %v5040_v12  ;;  %v4902_v12 = vcombine.high %v322_v15, %v334_v2 }
 0x1da   : > { %3936 = vmatprep.mubr.bf16.mxu1 %v5042_v17 }
 0x1db   : > { %v7228_v28 = vadd.f32 %v5488_v29, %v3231_v23  ;;  %v5425_v31 = vpop.f32.mrb[48].mxu0  ;;  %v357_v29 = vld [vmem:[%s6902_s9 + $0x230] sm:$0xff] }
 0x1dc   : > { %v5489_v37 = vpop.f32.mrb[48].mxu1  ;;  %v5426_v22 = vpop.f32.mrb[49].mxu0 }
 0x1dd   : > { %v5427_v38 = vadd.f32 %v5426_v22, %v5425_v31  ;;  %v5490_v39 = vpop.f32.mrb[49].mxu1  ;;  %v5428_v40 = vpop.f32.mrb[50].mxu0  ;;  %v358_v31 = vld [vmem:[%s6902_s9 + $0x238] sm:$0xff] }
 0x1de   : > { %v5491_v25 = vadd.f32 %v5490_v39, %v5489_v37  ;;  %v5492_v45 = vpop.f32.mrb[50].mxu1  ;;  %v5429_v48 = vpop.f32.mrb[51].mxu0  ;;  %v4924_v39 = vcombine.high %v345_v21, %v357_v29 }
 0x1df   : > { %v3236_v43 = vadd.f32 %v5427_v38, %v7104_v47  ;;  %v5430_v55 = vadd.f32 %v5429_v48, %v5428_v40  ;;  %v5493_v56 = vpop.f32.mrb[51].mxu1  ;;  %v4901_v38 = vcombine.low %v322_v15, %v334_v2  ;;  %v4923_v2 = vcombine.low %v345_v21, %v357_v29  ;;  %v394_v29 = vld [vmem:[%s6902_s9 + $0x358] sm:$0xff] }
 0x1e0   : > { %v5494_v51 = vadd.f32 %v5493_v56, %v5492_v45  ;;  %3840 = vmatmul.mubr.bf16.gmra.mrb[156].mxu0 %v5039_v41  ;;  %v369_v56 = vld [vmem:[%s6902_s9 + $0x290] sm:$0xff] }
 0x1e1   : > { %v7233_v53 = vadd.f32 %v5491_v25, %v3236_v43  ;;  %v3239_v58 = vadd.f32 %v5430_v55, %v7106_v49  ;;  %3937 = vmatmul.mubr.bf16.gmra.mrb[156].mxu1 %v5041_v42  ;;  %3977 = vmatprep.mubr.bf16.mxu0 %v4876_v44  ;;  %v4926_v44 = vcombine.high %v346_v32, %v358_v31 }
 0x1e2   : > { %4074 = vmatprep.mubr.bf16.mxu1 %v4878_v50 }
 0x1e3   : > { %v7238_v60 = vadd.f32 %v5494_v51, %v3239_v58  ;;  %v5431_v62 = vpop.f32.mrb[52].mxu0  ;;  %v381_v51 = vld [vmem:[%s6902_s9 + $0x2f0] sm:$0xff] }
 0x1e4   : > { %v5495_v4 = vpop.f32.mrb[52].mxu1  ;;  %v5432_v47 = vpop.f32.mrb[53].mxu0 }
 0x1e5   : > { %v5433_v6 = vadd.f32 %v5432_v47, %v5431_v62  ;;  %v5496_v63 = vpop.f32.mrb[53].mxu1  ;;  %v5434_v7 = vpop.f32.mrb[54].mxu0  ;;  %v382_v62 = vld [vmem:[%s6902_s9 + $0x2f8] sm:$0xff] }
 0x1e6   : > { %v5497_v49 = vadd.f32 %v5496_v63, %v5495_v4  ;;  %v5498_v24 = vpop.f32.mrb[54].mxu1  ;;  %v5435_v11 = vpop.f32.mrb[55].mxu0  ;;  %v4948_v63 = vcombine.high %v369_v56, %v381_v51 }
 0x1e7   : > { %v3244_v1 = vadd.f32 %v5433_v6, %v7118_v10  ;;  %v5436_v13 = vadd.f32 %v5435_v11, %v5434_v7  ;;  %v5499_v14 = vpop.f32.mrb[55].mxu1  ;;  %v4925_v6 = vcombine.low %v346_v32, %v358_v31  ;;  %v4947_v31 = vcombine.low %v369_v56, %v381_v51  ;;  %v418_v51 = vld [vmem:[%s6902_s9 + $0x418] sm:$0xff] }
 0x1e8   : > { %v5500_v17 = vadd.f32 %v5499_v14, %v5498_v24  ;;  %3978 = vmatmul.mubr.bf16.vlgmr.msra.gmra.mrb[160].mxu0 %v4875_v5  ;;  %v393_v14 = vld [vmem:[%s6902_s9 + $0x350] sm:$0xff] }
 0x1e9   : > { %v7243_v18 = vadd.f32 %v5497_v49, %v3244_v1  ;;  %v3247_v20 = vadd.f32 %v5436_v13, %v7120_v16  ;;  %4075 = vmatmul.mubr.bf16.vlgmr.msra.gmra.mrb[160].mxu1 %v4877_v8  ;;  %3985 = vmatprep.mubr.bf16.mxu0 %v4900_v9  ;;  %v4950_v9 = vcombine.high %v370_v57, %v382_v62 }
 0x1ea   : > { %4082 = vmatprep.mubr.bf16.mxu1 %v4902_v12 }
 0x1eb   : > { %v7248_v23 = vadd.f32 %v5500_v17, %v3247_v20  ;;  %v5437_v27 = vpop.f32.mrb[56].mxu0  ;;  %v405_v17 = vld [vmem:[%s6902_s9 + $0x3b0] sm:$0xff] }
 0x1ec   : > { %v5501_v34 = vpop.f32.mrb[56].mxu1  ;;  %v5438_v10 = vpop.f32.mrb[57].mxu0 }
 0x1ed   : > { %v5439_v37 = vadd.f32 %v5438_v10, %v5437_v27  ;;  %v5502_v22 = vpop.f32.mrb[57].mxu1  ;;  %v5440_v41 = vpop.f32.mrb[58].mxu0  ;;  %v406_v27 = vld [vmem:[%s6902_s9 + $0x3b8] sm:$0xff] }
 0x1ee   : > { %v5503_v16 = vadd.f32 %v5502_v22, %v5501_v34  ;;  %v5504_v40 = vpop.f32.mrb[58].mxu1  ;;  %v5441_v42 = vpop.f32.mrb[59].mxu0  ;;  %v4972_v22 = vcombine.high %v393_v14, %v405_v17 }
 0x1ef   : > { %v3252_v25 = vadd.f32 %v5439_v37, %v7140_v46  ;;  %v5442_v45 = vadd.f32 %v5441_v42, %v5440_v41  ;;  %v5505_v48 = vpop.f32.mrb[59].mxu1  ;;  %v4949_v37 = vcombine.low %v370_v57, %v382_v62  ;;  %v4971_v62 = vcombine.low %v393_v14, %v405_v17  ;;  %v442_v17 = vld [vmem:[%s6902_s9 + $0x4d8] sm:$0xff] }
 0x1f0   : > { %v5506_v50 = vadd.f32 %v5505_v48, %v5504_v40  ;;  %3986 = vmatmul.mubr.bf16.gmra.mrb[164].mxu0 %v4899_v36  ;;  %v417_v48 = vld [vmem:[%s6902_s9 + $0x410] sm:$0xff] }
 0x1f1   : > { %v7253_v43 = vadd.f32 %v5503_v16, %v3252_v25  ;;  %v3255_v55 = vadd.f32 %v5442_v45, %v7145_v52  ;;  %4083 = vmatmul.mubr.bf16.gmra.mrb[164].mxu1 %v4901_v38  ;;  %3993 = vmatprep.mubr.bf16.mxu0 %v4924_v39  ;;  %v4974_v39 = vcombine.high %v394_v29, %v406_v27 }
 0x1f2   : > { %4090 = vmatprep.mubr.bf16.mxu1 %v4926_v44 }
 0x1f3   : > { %v7258_v58 = vadd.f32 %v5506_v50, %v3255_v55  ;;  %v5443_v54 = vpop.f32.mrb[60].mxu0  ;;  %v429_v50 = vld [vmem:[%s6902_s9 + $0x470] sm:$0xff] }
 0x1f4   : > { %v5507_v15 = vpop.f32.mrb[60].mxu1  ;;  %v5444_v46 = vpop.f32.mrb[61].mxu0 }
 0x1f5   : > { %v5445_v4 = vadd.f32 %v5444_v46, %v5443_v54  ;;  %v5508_v47 = vpop.f32.mrb[61].mxu1  ;;  %v5446_v5 = vpop.f32.mrb[62].mxu0  ;;  %v430_v54 = vld [vmem:[%s6902_s9 + $0x478] sm:$0xff] }
 0x1f6   : > { %v5509_v52 = vadd.f32 %v5508_v47, %v5507_v15  ;;  %v5510_v7 = vpop.f32.mrb[62].mxu1  ;;  %v5447_v8 = vpop.f32.mrb[63].mxu0  ;;  %v4996_v47 = vcombine.high %v417_v48, %v429_v50 }
 0x1f7   : > { %v3260_v49 = vadd.f32 %v5445_v4, %v7164_v19  ;;  %v5448_v24 = vadd.f32 %v5447_v8, %v5446_v5  ;;  %v5511_v11 = vpop.f32.mrb[63].mxu1  ;;  %v4973_v4 = vcombine.low %v394_v29, %v406_v27  ;;  %v4995_v27 = vcombine.low %v417_v48, %v429_v50  ;;  %v466_v50 = vld [vmem:[%s6902_s9 + $0x598] sm:$0xff] }
 0x1f8   : > { %v5512_v12 = vadd.f32 %v5511_v11, %v5510_v7  ;;  %3994 = vmatmul.mubr.bf16.gmra.mrb[168].mxu0 %v4923_v2  ;;  %v441_v11 = vld [vmem:[%s6902_s9 + $0x4d0] sm:$0xff] }
 0x1f9   : > { %v7263_v1 = vadd.f32 %v5509_v52, %v3260_v49  ;;  %v3263_v13 = vadd.f32 %v5448_v24, %v7169_v26  ;;  %4091 = vmatmul.mubr.bf16.gmra.mrb[168].mxu1 %v4925_v6  ;;  %4001 = vmatprep.mubr.bf16.mxu0 %v4948_v63  ;;  %v4998_v63 = vcombine.high %v418_v51, %v430_v54 }
 0x1fa   : > { %4098 = vmatprep.mubr.bf16.mxu1 %v4950_v9 }
 0x1fb   : > { %v7268_v20 = vadd.f32 %v5512_v12, %v3263_v13  ;;  %v5529_v21 = vpop.f32.mrb[64].mxu0  ;;  %v453_v12 = vld [vmem:[%s6902_s9 + $0x530] sm:$0xff] }
 0x1fc   : > { %v5593_v32 = vpop.f32.mrb[64].mxu1  ;;  %v5530_v19 = vpop.f32.mrb[65].mxu0 }
 0x1fd   : > { %v5531_v34 = vadd.f32 %v5530_v19, %v5529_v21  ;;  %v5594_v10 = vpop.f32.mrb[65].mxu1  ;;  %v5532_v36 = vpop.f32.mrb[66].mxu0  ;;  %v454_v21 = vld [vmem:[%s6902_s9 + $0x538] sm:$0xff] }
 0x1fe   : > { %v5595_v26 = vadd.f32 %v5594_v10, %v5593_v32  ;;  %v5596_v41 = vpop.f32.mrb[66].mxu1  ;;  %v5533_v38 = vpop.f32.mrb[67].mxu0  ;;  %v5020_v10 = vcombine.high %v441_v11, %v453_v12 }
 0x1ff   : > { %v3398_v16 = vadd.f32 %v5531_v34, %v7189_v61  ;;  %v5534_v40 = vadd.f32 %v5533_v38, %v5532_v36  ;;  %v5597_v42 = vpop.f32.mrb[67].mxu1  ;;  %v4997_v34 = vcombine.low %v418_v51, %v430_v54  ;;  %v5019_v54 = vcombine.low %v441_v11, %v453_v12 }
 0x200   : > { %v5598_v44 = vadd.f32 %v5597_v42, %v5596_v41  ;;  %4002 = vmatmul.mubr.bf16.gmra.mrb[172].mxu0 %v4947_v31  ;;  %v465_v42 = vld [vmem:[%s6902_s9 + $0x590] sm:$0xff] }
 0x201   : > { %v7273_v25 = vadd.f32 %v5595_v26, %v3398_v16  ;;  %v3401_v45 = vadd.f32 %v5534_v40, %v7194_v3  ;;  %4099 = vmatmul.mubr.bf16.gmra.mrb[172].mxu1 %v4949_v37  ;;  %4009 = vmatprep.mubr.bf16.mxu0 %v4972_v22  ;;  %v5022_v22 = vcombine.high %v442_v17, %v454_v21 }
 0x202   : > { %4106 = vmatprep.mubr.bf16.mxu1 %v4974_v39 }
 0x203   : > { %v7278_v55 = vadd.f32 %v5598_v44, %v3401_v45  ;;  %v5535_v56 = vpop.f32.mrb[68].mxu0  ;;  %v477_v44 = vld [vmem:[%s6902_s9 + $0x5f0] sm:$0xff] }
 0x204   : > { %v5599_v57 = vpop.f32.mrb[68].mxu1  ;;  %v5536_v61 = vpop.f32.mrb[69].mxu0  ;;  %v5043_v12 = vcombine.low %v465_v42, %v477_v44 }
 0x205   : > { %v5537_v15 = vadd.f32 %v5536_v61, %v5535_v56  ;;  %v5600_v46 = vpop.f32.mrb[69].mxu1  ;;  %v5538_v2 = vpop.f32.mrb[70].mxu0  ;;  %v478_v56 = vld [vmem:[%s6902_s9 + $0x5f8] sm:$0xff] }
 0x206   : > { %v5601_v3 = vadd.f32 %v5600_v46, %v5599_v57  ;;  %v5602_v5 = vpop.f32.mrb[70].mxu1  ;;  %v5539_v6 = vpop.f32.mrb[71].mxu0  ;;  %v5044_v46 = vcombine.high %v465_v42, %v477_v44 }
 0x207   : > { %v3406_v52 = vadd.f32 %v5537_v15, %v7203_v33  ;;  %v5540_v7 = vadd.f32 %v5539_v6, %v5538_v2  ;;  %v5603_v8 = vpop.f32.mrb[71].mxu1  ;;  %v5021_v15 = vcombine.low %v442_v17, %v454_v21  ;;  %v5045_v21 = vcombine.low %v466_v50, %v478_v56 }
 0x208   : > { %v5604_v9 = vadd.f32 %v5603_v8, %v5602_v5  ;;  %4010 = vmatmul.mubr.bf16.gmra.mrb[176].mxu0 %v4971_v62 }
 0x209   : > { %v7283_v49 = vadd.f32 %v5601_v3, %v3406_v52  ;;  %v3409_v24 = vadd.f32 %v5540_v7, %v7208_v35  ;;  %4107 = vmatmul.mubr.bf16.gmra.mrb[176].mxu1 %v4973_v4  ;;  %4017 = vmatprep.mubr.bf16.mxu0 %v4996_v47  ;;  %v5046_v47 = vcombine.high %v466_v50, %v478_v56 }
 0x20a   : > { %4114 = vmatprep.mubr.bf16.mxu1 %v4998_v63 }
 0x20b   : > { %v7288_v13 = vadd.f32 %v5604_v9, %v3409_v24  ;;  %v5541_v14 = vpop.f32.mrb[72].mxu0 }
 0x20c   : > { %v5605_v29 = vpop.f32.mrb[72].mxu1  ;;  %v5542_v33 = vpop.f32.mrb[73].mxu0 }
 0x20d   : > { %v5543_v32 = vadd.f32 %v5542_v33, %v5541_v14  ;;  %v5606_v19 = vpop.f32.mrb[73].mxu1  ;;  %v5544_v31 = vpop.f32.mrb[74].mxu0 }
 0x20e   : > { %v5607_v35 = vadd.f32 %v5606_v19, %v5605_v29  ;;  %v5608_v36 = vpop.f32.mrb[74].mxu1  ;;  %v5545_v37 = vpop.f32.mrb[75].mxu0 }
 0x20f   : > { %v3414_v26 = vadd.f32 %v5543_v32, %v7213_v59  ;;  %v5546_v41 = vadd.f32 %v5545_v37, %v5544_v31  ;;  %v5609_v38 = vpop.f32.mrb[75].mxu1 }
 0x210   : > { %v5610_v39 = vadd.f32 %v5609_v38, %v5608_v36  ;;  %4018 = vmatmul.mubr.bf16.gmra.mrb[180].mxu0 %v4995_v27 }
 0x211   : > { %v7293_v16 = vadd.f32 %v5607_v35, %v3414_v26  ;;  %v3417_v40 = vadd.f32 %v5546_v41, %v7218_v0  ;;  %4115 = vmatmul.mubr.bf16.gmra.mrb[180].mxu1 %v4997_v34  ;;  %4025 = vmatprep.mubr.bf16.mxu0 %v5020_v10 }
 0x212   : > { %4122 = vmatprep.mubr.bf16.mxu1 %v5022_v22 }
 0x213   : > { %v7298_v45 = vadd.f32 %v5610_v39, %v3417_v40  ;;  %v5547_v48 = vpop.f32.mrb[76].mxu0 }
 0x214   : > { %v5611_v51 = vpop.f32.mrb[76].mxu1  ;;  %v5548_v59 = vpop.f32.mrb[77].mxu0 }
 0x215   : > { %v5549_v57 = vadd.f32 %v5548_v59, %v5547_v48  ;;  %v5612_v61 = vpop.f32.mrb[77].mxu1  ;;  %v5550_v62 = vpop.f32.mrb[78].mxu0 }
 0x216   : > { %v5613_v2 = vadd.f32 %v5612_v61, %v5611_v51  ;;  %v5614_v0 = vpop.f32.mrb[78].mxu1  ;;  %v5551_v4 = vpop.f32.mrb[79].mxu0 }
 0x217   : > { %v3422_v3 = vadd.f32 %v5549_v57, %v7223_v30  ;;  %v5552_v5 = vadd.f32 %v5551_v4, %v5550_v62  ;;  %v5615_v6 = vpop.f32.mrb[79].mxu1 }
 0x218   : > { %v5616_v63 = vadd.f32 %v5615_v6, %v5614_v0  ;;  %4026 = vmatmul.mubr.bf16.gmra.mrb[184].mxu0 %v5019_v54 }
 0x219   : > { %v7303_v52 = vadd.f32 %v5613_v2, %v3422_v3  ;;  %v3425_v7 = vadd.f32 %v5552_v5, %v7228_v28  ;;  %4123 = vmatmul.mubr.bf16.gmra.mrb[184].mxu1 %v5021_v15  ;;  %4033 = vmatprep.mubr.bf16.mxu0 %v5044_v46 }
 0x21a   : > { %4130 = vmatprep.mubr.bf16.mxu1 %v5046_v47 }
 0x21b   : > { %v7306_v8 = vadd.f32 %v5616_v63, %v3425_v7  ;;  %v5553_v9 = vpop.f32.mrb[80].mxu0 }
 0x21c   : > { %v5617_v24 = vpop.f32.mrb[80].mxu1  ;;  %v5554_v11 = vpop.f32.mrb[81].mxu0 }
 0x21d   : > { %v5555_v14 = vadd.f32 %v5554_v11, %v5553_v9  ;;  %v5618_v17 = vpop.f32.mrb[81].mxu1  ;;  %v5556_v30 = vpop.f32.mrb[82].mxu0 }
 0x21e   : > { %v5619_v29 = vadd.f32 %v5618_v17, %v5617_v24  ;;  %v5620_v33 = vpop.f32.mrb[82].mxu1  ;;  %v5557_v27 = vpop.f32.mrb[83].mxu0 }
 0x21f   : > { %v3430_v32 = vadd.f32 %v5555_v14, %v7233_v53  ;;  %v5558_v19 = vadd.f32 %v5557_v27, %v5556_v30  ;;  %v5621_v28 = vpop.f32.mrb[83].mxu1 }
 0x220   : > { %v5622_v31 = vadd.f32 %v5621_v28, %v5620_v33  ;;  %4034 = vmatmul.mubr.bf16.gmra.mrb[188].mxu0 %v5043_v12 }
 0x221   : > { %v7309_v34 = vadd.f32 %v5619_v29, %v3430_v32  ;;  %v3433_v10 = vadd.f32 %v5558_v19, %v7238_v60  ;;  %4131 = vmatmul.mubr.bf16.gmra.mrb[188].mxu1 %v5045_v21 }
 0x223   : > { %v7312_v35 = vadd.f32 %v5622_v31, %v3433_v10  ;;  %v5559_v36 = vpop.f32.mrb[84].mxu0 }
 0x224   : > { %v5623_v37 = vpop.f32.mrb[84].mxu1  ;;  %v5560_v22 = vpop.f32.mrb[85].mxu0 }
 0x225   : > { %v5561_v26 = vadd.f32 %v5560_v22, %v5559_v36  ;;  %v5624_v41 = vpop.f32.mrb[85].mxu1  ;;  %v5562_v38 = vpop.f32.mrb[86].mxu0 }
 0x226   : > { %v5625_v39 = vadd.f32 %v5624_v41, %v5623_v37  ;;  %v5626_v40 = vpop.f32.mrb[86].mxu1  ;;  %v5563_v53 = vpop.f32.mrb[87].mxu0 }
 0x227   : > { %v3438_v42 = vadd.f32 %v5561_v26, %v7243_v18  ;;  %v5564_v44 = vadd.f32 %v5563_v53, %v5562_v38  ;;  %v5627_v48 = vpop.f32.mrb[87].mxu1 }
 0x228   : > { %v5628_v50 = vadd.f32 %v5627_v48, %v5626_v40 }
 0x229   : > { %v7315_v56 = vadd.f32 %v5625_v39, %v3438_v42  ;;  %v3441_v60 = vadd.f32 %v5564_v44, %v7248_v23 }
 0x22b   : > { %v7318_v51 = vadd.f32 %v5628_v50, %v3441_v60  ;;  %v5565_v59 = vpop.f32.mrb[88].mxu0 }
 0x22c   : > { %v5629_v54 = vpop.f32.mrb[88].mxu1  ;;  %v5566_v57 = vpop.f32.mrb[89].mxu0 }
 0x22d   : > { %v5567_v61 = vadd.f32 %v5566_v57, %v5565_v59  ;;  %v5630_v62 = vpop.f32.mrb[89].mxu1  ;;  %v5568_v15 = vpop.f32.mrb[90].mxu0 }
 0x22e   : > { %v5631_v46 = vadd.f32 %v5630_v62, %v5629_v54  ;;  %v5632_v2 = vpop.f32.mrb[90].mxu1  ;;  %v5569_v0 = vpop.f32.mrb[91].mxu0 }
 0x22f   : > { %v3446_v18 = vadd.f32 %v5567_v61, %v7253_v43  ;;  %v5570_v4 = vadd.f32 %v5569_v0, %v5568_v15  ;;  %v5633_v47 = vpop.f32.mrb[91].mxu1 }
 0x230   : > { %v5634_v3 = vadd.f32 %v5633_v47, %v5632_v2 }
 0x231   : > { %v7321_v5 = vadd.f32 %v5631_v46, %v3446_v18  ;;  %v3449_v23 = vadd.f32 %v5570_v4, %v7258_v58 }
 0x233   : > { %v7324_v6 = vadd.f32 %v5634_v3, %v3449_v23  ;;  %v5571_v63 = vpop.f32.mrb[92].mxu0 }
 0x234   : > { %v5635_v7 = vpop.f32.mrb[92].mxu1  ;;  %v5572_v9 = vpop.f32.mrb[93].mxu0 }
 0x235   : > { %v5573_v24 = vadd.f32 %v5572_v9, %v5571_v63  ;;  %v5636_v11 = vpop.f32.mrb[93].mxu1  ;;  %v5574_v12 = vpop.f32.mrb[94].mxu0 }
 0x236   : > { %v5637_v14 = vadd.f32 %v5636_v11, %v5635_v7  ;;  %v5638_v17 = vpop.f32.mrb[94].mxu1  ;;  %v5575_v30 = vpop.f32.mrb[95].mxu0 }
 0x237   : > { %v3454_v43 = vadd.f32 %v5573_v24, %v7263_v1  ;;  %v5576_v21 = vadd.f32 %v5575_v30, %v5574_v12  ;;  %v5639_v29 = vpop.f32.mrb[95].mxu1 }
 0x238   : > { %v5640_v33 = vadd.f32 %v5639_v29, %v5638_v17 }
 0x239   : > { %v7327_v27 = vadd.f32 %v5637_v14, %v3454_v43  ;;  %v3457_v58 = vadd.f32 %v5576_v21, %v7268_v20 }
 0x23b   : > { %v7330_v32 = vadd.f32 %v5640_v33, %v3457_v58  ;;  %v5657_v19 = vpop.f32.mrb[96].mxu0 }
 0x23c   : > { %v5721_v28 = vpop.f32.mrb[96].mxu1  ;;  %v5658_v31 = vpop.f32.mrb[97].mxu0 }
 0x23d   : > { %v5659_v10 = vadd.f32 %v5658_v31, %v5657_v19  ;;  %v5722_v36 = vpop.f32.mrb[97].mxu1  ;;  %v5660_v37 = vpop.f32.mrb[98].mxu0 }
 0x23e   : > { %v5723_v22 = vadd.f32 %v5722_v36, %v5721_v28  ;;  %v5724_v26 = vpop.f32.mrb[98].mxu1  ;;  %v5661_v41 = vpop.f32.mrb[99].mxu0 }
 0x23f   : > { %v3592_v1 = vadd.f32 %v5659_v10, %v7273_v25  ;;  %v5662_v38 = vadd.f32 %v5661_v41, %v5660_v37  ;;  %v5725_v39 = vpop.f32.mrb[99].mxu1 }
 0x240   : > { %v5726_v40 = vadd.f32 %v5725_v39, %v5724_v26 }
 0x241   : > { %v7333_v53 = vadd.f32 %v5723_v22, %v3592_v1  ;;  %v3595_v20 = vadd.f32 %v5662_v38, %v7278_v55 }
 0x243   : > { %v7336_v42 = vadd.f32 %v5726_v40, %v3595_v20  ;;  %v5663_v44 = vpop.f32.mrb[100].mxu0 }
 0x244   : > { %v5727_v48 = vpop.f32.mrb[100].mxu1  ;;  %v5664_v50 = vpop.f32.mrb[101].mxu0 }
 0x245   : > { %v5665_v60 = vadd.f32 %v5664_v50, %v5663_v44  ;;  %v5728_v59 = vpop.f32.mrb[101].mxu1  ;;  %v5666_v54 = vpop.f32.mrb[102].mxu0 }
 0x246   : > { %v5729_v57 = vadd.f32 %v5728_v59, %v5727_v48  ;;  %v5730_v61 = vpop.f32.mrb[102].mxu1  ;;  %v5667_v62 = vpop.f32.mrb[103].mxu0 }
 0x247   : > { %v3600_v25 = vadd.f32 %v5665_v60, %v7283_v49  ;;  %v5668_v15 = vadd.f32 %v5667_v62, %v5666_v54  ;;  %v5731_v46 = vpop.f32.mrb[103].mxu1 }
 0x248   : > { %v5732_v2 = vadd.f32 %v5731_v46, %v5730_v61 }
 0x249   : > { %v7339_v0 = vadd.f32 %v5729_v57, %v3600_v25  ;;  %v3603_v55 = vadd.f32 %v5668_v15, %v7288_v13 }
 0x24b   : > { %v7342_v18 = vadd.f32 %v5732_v2, %v3603_v55  ;;  %v5669_v4 = vpop.f32.mrb[104].mxu0 }
 0x24c   : > { %v5733_v47 = vpop.f32.mrb[104].mxu1  ;;  %v5670_v3 = vpop.f32.mrb[105].mxu0 }
 0x24d   : > { %v5671_v23 = vadd.f32 %v5670_v3, %v5669_v4  ;;  %v5734_v63 = vpop.f32.mrb[105].mxu1  ;;  %v5672_v7 = vpop.f32.mrb[106].mxu0 }
 0x24e   : > { %v5735_v9 = vadd.f32 %v5734_v63, %v5733_v47  ;;  %v5736_v24 = vpop.f32.mrb[106].mxu1  ;;  %v5673_v11 = vpop.f32.mrb[107].mxu0 }
 0x24f   : > { %v3608_v49 = vadd.f32 %v5671_v23, %v7293_v16  ;;  %v5674_v12 = vadd.f32 %v5673_v11, %v5672_v7  ;;  %v5737_v14 = vpop.f32.mrb[107].mxu1 }
 0x250   : > { %v5738_v17 = vadd.f32 %v5737_v14, %v5736_v24 }
 0x251   : > { %v7345_v30 = vadd.f32 %v5735_v9, %v3608_v49  ;;  %v3611_v13 = vadd.f32 %v5674_v12, %v7298_v45 }
 0x253   : > { %v7348_v43 = vadd.f32 %v5738_v17, %v3611_v13  ;;  %v5675_v21 = vpop.f32.mrb[108].mxu0 }
 0x254   : > { %v5739_v29 = vpop.f32.mrb[108].mxu1  ;;  %v5676_v33 = vpop.f32.mrb[109].mxu0 }
 0x255   : > { %v5677_v58 = vadd.f32 %v5676_v33, %v5675_v21  ;;  %v5740_v19 = vpop.f32.mrb[109].mxu1  ;;  %v5678_v28 = vpop.f32.mrb[110].mxu0 }
 0x256   : > { %v5741_v31 = vadd.f32 %v5740_v19, %v5739_v29  ;;  %v5742_v10 = vpop.f32.mrb[110].mxu1  ;;  %v5679_v36 = vpop.f32.mrb[111].mxu0 }
 0x257   : > { %v3616_v16 = vadd.f32 %v5677_v58, %v7303_v52  ;;  %v5680_v37 = vadd.f32 %v5679_v36, %v5678_v28  ;;  %v5743_v22 = vpop.f32.mrb[111].mxu1 }
 0x258   : > { %v5744_v26 = vadd.f32 %v5743_v22, %v5742_v10 }
 0x259   : > { %v7351_v41 = vadd.f32 %v5741_v31, %v3616_v16  ;;  %v3619_v45 = vadd.f32 %v5680_v37, %v7306_v8 }
 0x25b   : > { %v7354_v1 = vadd.f32 %v5744_v26, %v3619_v45  ;;  %v5681_v38 = vpop.f32.mrb[112].mxu0 }
 0x25c   : > { %v5745_v39 = vpop.f32.mrb[112].mxu1  ;;  %v5682_v40 = vpop.f32.mrb[113].mxu0 }
 0x25d   : > { %v5683_v20 = vadd.f32 %v5682_v40, %v5681_v38  ;;  %v5746_v44 = vpop.f32.mrb[113].mxu1  ;;  %v5684_v48 = vpop.f32.mrb[114].mxu0 }
 0x25e   : > { %v5747_v50 = vadd.f32 %v5746_v44, %v5745_v39  ;;  %v5748_v60 = vpop.f32.mrb[114].mxu1  ;;  %v5685_v59 = vpop.f32.mrb[115].mxu0 }
 0x25f   : > { %v3624_v52 = vadd.f32 %v5683_v20, %v7309_v34  ;;  %v5686_v54 = vadd.f32 %v5685_v59, %v5684_v48  ;;  %v5749_v57 = vpop.f32.mrb[115].mxu1 }
 0x260   : > { %v5750_v61 = vadd.f32 %v5749_v57, %v5748_v60 }
 0x261   : > { %v7357_v62 = vadd.f32 %v5747_v50, %v3624_v52  ;;  %v3627_v8 = vadd.f32 %v5686_v54, %v7312_v35 }
 0x263   : > { %v7360_v25 = vadd.f32 %v5750_v61, %v3627_v8  ;;  %v5687_v15 = vpop.f32.mrb[116].mxu0 }
 0x264   : > { %v5751_v46 = vpop.f32.mrb[116].mxu1  ;;  %v5688_v2 = vpop.f32.mrb[117].mxu0 }
 0x265   : > { %v5689_v55 = vadd.f32 %v5688_v2, %v5687_v15  ;;  %v5752_v4 = vpop.f32.mrb[117].mxu1  ;;  %v5690_v47 = vpop.f32.mrb[118].mxu0 }
 0x266   : > { %v5753_v3 = vadd.f32 %v5752_v4, %v5751_v46  ;;  %v5754_v23 = vpop.f32.mrb[118].mxu1  ;;  %v5691_v63 = vpop.f32.mrb[119].mxu0 }
 0x267   : > { %v3632_v34 = vadd.f32 %v5689_v55, %v7315_v56  ;;  %v5692_v7 = vadd.f32 %v5691_v63, %v5690_v47  ;;  %v5755_v9 = vpop.f32.mrb[119].mxu1 }
 0x268   : > { %v5756_v24 = vadd.f32 %v5755_v9, %v5754_v23 }
 0x269   : > { %v7363_v11 = vadd.f32 %v5753_v3, %v3632_v34  ;;  %v3635_v35 = vadd.f32 %v5692_v7, %v7318_v51 }
 0x26b   : > { %v7366_v49 = vadd.f32 %v5756_v24, %v3635_v35  ;;  %v5693_v12 = vpop.f32.mrb[120].mxu0 }
 0x26c   : > { %v5757_v14 = vpop.f32.mrb[120].mxu1  ;;  %v5694_v17 = vpop.f32.mrb[121].mxu0 }
 0x26d   : > { %v5695_v13 = vadd.f32 %v5694_v17, %v5693_v12  ;;  %v5758_v21 = vpop.f32.mrb[121].mxu1  ;;  %v5696_v29 = vpop.f32.mrb[122].mxu0 }
 0x26e   : > { %v5759_v33 = vadd.f32 %v5758_v21, %v5757_v14  ;;  %v5760_v58 = vpop.f32.mrb[122].mxu1  ;;  %v5697_v19 = vpop.f32.mrb[123].mxu0 }
 0x26f   : > { %v3640_v56 = vadd.f32 %v5695_v13, %v7321_v5  ;;  %v5698_v28 = vadd.f32 %v5697_v19, %v5696_v29  ;;  %v5761_v31 = vpop.f32.mrb[123].mxu1 }
 0x270   : > { %v5762_v10 = vadd.f32 %v5761_v31, %v5760_v58 }
 0x271   : > { %v7369_v36 = vadd.f32 %v5759_v33, %v3640_v56  ;;  %v3643_v51 = vadd.f32 %v5698_v28, %v7324_v6 }
 0x273   : > { %v7372_v16 = vadd.f32 %v5762_v10, %v3643_v51  ;;  %v5699_v37 = vpop.f32.mrb[124].mxu0 }
 0x274   : > { %v5763_v22 = vpop.f32.mrb[124].mxu1  ;;  %v5700_v26 = vpop.f32.mrb[125].mxu0 }
 0x275   : > { %v5701_v45 = vadd.f32 %v5700_v26, %v5699_v37  ;;  %v5764_v38 = vpop.f32.mrb[125].mxu1  ;;  %v5702_v39 = vpop.f32.mrb[126].mxu0 }
 0x276   : > { %v5765_v40 = vadd.f32 %v5764_v38, %v5763_v22  ;;  %v5766_v20 = vpop.f32.mrb[126].mxu1  ;;  %v5703_v44 = vpop.f32.mrb[127].mxu0 }
 0x277   : > { %v3648_v5 = vadd.f32 %v5701_v45, %v7327_v27  ;;  %v5704_v48 = vadd.f32 %v5703_v44, %v5702_v39  ;;  %v5767_v50 = vpop.f32.mrb[127].mxu1 }
 0x278   : > { %v5768_v60 = vadd.f32 %v5767_v50, %v5766_v20 }
 0x279   : > { %v7375_v59 = vadd.f32 %v5765_v40, %v3648_v5  ;;  %v3651_v6 = vadd.f32 %v5704_v48, %v7330_v32 }
 0x27b   : > { %v7378_v52 = vadd.f32 %v5768_v60, %v3651_v6  ;;  %v5785_v54 = vpop.f32.mrb[128].mxu0 }
 0x27c   : > { %v5849_v57 = vpop.f32.mrb[128].mxu1  ;;  %v5786_v61 = vpop.f32.mrb[129].mxu0 }
 0x27d   : > { %v5787_v8 = vadd.f32 %v5786_v61, %v5785_v54  ;;  %v5850_v15 = vpop.f32.mrb[129].mxu1  ;;  %v5788_v46 = vpop.f32.mrb[130].mxu0 }
 0x27e   : > { %v5851_v2 = vadd.f32 %v5850_v15, %v5849_v57  ;;  %v5852_v55 = vpop.f32.mrb[130].mxu1  ;;  %v5789_v4 = vpop.f32.mrb[131].mxu0 }
 0x27f   : > { %v3786_v27 = vadd.f32 %v5787_v8, %v7333_v53  ;;  %v5790_v47 = vadd.f32 %v5789_v4, %v5788_v46  ;;  %v5853_v3 = vpop.f32.mrb[131].mxu1 }
 0x280   : > { %v5854_v23 = vadd.f32 %v5853_v3, %v5852_v55 }
 0x281   : > { %v7381_v63 = vadd.f32 %v5851_v2, %v3786_v27  ;;  %v3789_v32 = vadd.f32 %v5790_v47, %v7336_v42 }
 0x283   : > { %v7384_v34 = vadd.f32 %v5854_v23, %v3789_v32  ;;  %v5791_v7 = vpop.f32.mrb[132].mxu0 }
 0x284   : > { %v5855_v9 = vpop.f32.mrb[132].mxu1  ;;  %v5792_v24 = vpop.f32.mrb[133].mxu0 }
 0x285   : > { %v5793_v35 = vadd.f32 %v5792_v24, %v5791_v7  ;;  %v5856_v12 = vpop.f32.mrb[133].mxu1  ;;  %v5794_v14 = vpop.f32.mrb[134].mxu0 }
 0x286   : > { %v5857_v17 = vadd.f32 %v5856_v12, %v5855_v9  ;;  %v5858_v13 = vpop.f32.mrb[134].mxu1  ;;  %v5795_v21 = vpop.f32.mrb[135].mxu0 }
 0x287   : > { %v3794_v53 = vadd.f32 %v5793_v35, %v7339_v0  ;;  %v5796_v29 = vadd.f32 %v5795_v21, %v5794_v14  ;;  %v5859_v33 = vpop.f32.mrb[135].mxu1 }
 0x288   : > { %v5860_v58 = vadd.f32 %v5859_v33, %v5858_v13 }
 0x289   : > { %v7387_v19 = vadd.f32 %v5857_v17, %v3794_v53  ;;  %v3797_v42 = vadd.f32 %v5796_v29, %v7342_v18 }
 0x28b   : > { %v7390_v56 = vadd.f32 %v5860_v58, %v3797_v42  ;;  %v5797_v28 = vpop.f32.mrb[136].mxu0 }
 0x28c   : > { %v5861_v31 = vpop.f32.mrb[136].mxu1  ;;  %v5798_v10 = vpop.f32.mrb[137].mxu0 }
 0x28d   : > { %v5799_v51 = vadd.f32 %v5798_v10, %v5797_v28  ;;  %v5862_v37 = vpop.f32.mrb[137].mxu1  ;;  %v5800_v22 = vpop.f32.mrb[138].mxu0 }
 0x28e   : > { %v5863_v26 = vadd.f32 %v5862_v37, %v5861_v31  ;;  %v5864_v45 = vpop.f32.mrb[138].mxu1  ;;  %v5801_v38 = vpop.f32.mrb[139].mxu0 }
 0x28f   : > { %v3802_v0 = vadd.f32 %v5799_v51, %v7345_v30  ;;  %v5802_v39 = vadd.f32 %v5801_v38, %v5800_v22  ;;  %v5865_v40 = vpop.f32.mrb[139].mxu1 }
 0x290   : > { %v5866_v20 = vadd.f32 %v5865_v40, %v5864_v45 }
 0x291   : > { %v7393_v44 = vadd.f32 %v5863_v26, %v3802_v0  ;;  %v3805_v18 = vadd.f32 %v5802_v39, %v7348_v43 }
 0x293   : > { %v7396_v5 = vadd.f32 %v5866_v20, %v3805_v18  ;;  %v5803_v48 = vpop.f32.mrb[140].mxu0 }
 0x294   : > { %v5867_v50 = vpop.f32.mrb[140].mxu1  ;;  %v5804_v60 = vpop.f32.mrb[141].mxu0 }
 0x295   : > { %v5805_v6 = vadd.f32 %v5804_v60, %v5803_v48  ;;  %v5868_v54 = vpop.f32.mrb[141].mxu1  ;;  %v5806_v57 = vpop.f32.mrb[142].mxu0 }
 0x296   : > { %v5869_v61 = vadd.f32 %v5868_v54, %v5867_v50  ;;  %v5870_v8 = vpop.f32.mrb[142].mxu1  ;;  %v5807_v15 = vpop.f32.mrb[143].mxu0 }
 0x297   : > { %v3810_v30 = vadd.f32 %v5805_v6, %v7351_v41  ;;  %v5808_v46 = vadd.f32 %v5807_v15, %v5806_v57  ;;  %v5871_v2 = vpop.f32.mrb[143].mxu1 }
 0x298   : > { %v5872_v55 = vadd.f32 %v5871_v2, %v5870_v8 }
 0x299   : > { %v7399_v4 = vadd.f32 %v5869_v61, %v3810_v30  ;;  %v3813_v43 = vadd.f32 %v5808_v46, %v7354_v1 }
 0x29b   : > { %v7402_v27 = vadd.f32 %v5872_v55, %v3813_v43  ;;  %v5809_v47 = vpop.f32.mrb[144].mxu0 }
 0x29c   : > { %v5873_v3 = vpop.f32.mrb[144].mxu1  ;;  %v5810_v23 = vpop.f32.mrb[145].mxu0 }
 0x29d   : > { %v5811_v32 = vadd.f32 %v5810_v23, %v5809_v47  ;;  %v5874_v7 = vpop.f32.mrb[145].mxu1  ;;  %v5812_v9 = vpop.f32.mrb[146].mxu0 }
 0x29e   : > { %v5875_v24 = vadd.f32 %v5874_v7, %v5873_v3  ;;  %v5876_v35 = vpop.f32.mrb[146].mxu1  ;;  %v5813_v12 = vpop.f32.mrb[147].mxu0 }
 0x29f   : > { %v3818_v41 = vadd.f32 %v5811_v32, %v7357_v62  ;;  %v5814_v14 = vadd.f32 %v5813_v12, %v5812_v9  ;;  %v5877_v17 = vpop.f32.mrb[147].mxu1 }
 0x2a0   : > { %v5878_v13 = vadd.f32 %v5877_v17, %v5876_v35 }
 0x2a1   : > { %v7405_v21 = vadd.f32 %v5875_v24, %v3818_v41  ;;  %v3821_v1 = vadd.f32 %v5814_v14, %v7360_v25 }
 0x2a3   : > { %v7408_v53 = vadd.f32 %v5878_v13, %v3821_v1  ;;  %v5815_v29 = vpop.f32.mrb[148].mxu0 }
 0x2a4   : > { %v5879_v33 = vpop.f32.mrb[148].mxu1  ;;  %v5816_v58 = vpop.f32.mrb[149].mxu0 }
 0x2a5   : > { %v5817_v42 = vadd.f32 %v5816_v58, %v5815_v29  ;;  %v5880_v28 = vpop.f32.mrb[149].mxu1  ;;  %v5818_v31 = vpop.f32.mrb[150].mxu0 }
 0x2a6   : > { %v5881_v10 = vadd.f32 %v5880_v28, %v5879_v33  ;;  %v5882_v51 = vpop.f32.mrb[150].mxu1  ;;  %v5819_v37 = vpop.f32.mrb[151].mxu0 }
 0x2a7   : > { %v3826_v62 = vadd.f32 %v5817_v42, %v7363_v11  ;;  %v5820_v22 = vadd.f32 %v5819_v37, %v5818_v31  ;;  %v5883_v26 = vpop.f32.mrb[151].mxu1 }
 0x2a8   : > { %v5884_v45 = vadd.f32 %v5883_v26, %v5882_v51 }
 0x2a9   : > { %v7411_v38 = vadd.f32 %v5881_v10, %v3826_v62  ;;  %v3829_v25 = vadd.f32 %v5820_v22, %v7366_v49 }
 0x2ab   : > { %v7414_v0 = vadd.f32 %v5884_v45, %v3829_v25  ;;  %v5821_v39 = vpop.f32.mrb[152].mxu0 }
 0x2ac   : > { %v5885_v40 = vpop.f32.mrb[152].mxu1  ;;  %v5822_v20 = vpop.f32.mrb[153].mxu0 }
 0x2ad   : > { %v5823_v18 = vadd.f32 %v5822_v20, %v5821_v39  ;;  %v5886_v48 = vpop.f32.mrb[153].mxu1  ;;  %v5824_v50 = vpop.f32.mrb[154].mxu0 }
 0x2ae   : > { %v5887_v60 = vadd.f32 %v5886_v48, %v5885_v40  ;;  %v5888_v6 = vpop.f32.mrb[154].mxu1  ;;  %v5825_v54 = vpop.f32.mrb[155].mxu0 }
 0x2af   : > { %v3834_v11 = vadd.f32 %v5823_v18, %v7369_v36  ;;  %v5826_v57 = vadd.f32 %v5825_v54, %v5824_v50  ;;  %v5889_v61 = vpop.f32.mrb[155].mxu1 }
 0x2b0   : > { %v5890_v8 = vadd.f32 %v5889_v61, %v5888_v6 }
 0x2b1   : > { %v7417_v15 = vadd.f32 %v5887_v60, %v3834_v11  ;;  %v3837_v49 = vadd.f32 %v5826_v57, %v7372_v16 }
 0x2b3   : > { %v7420_v30 = vadd.f32 %v5890_v8, %v3837_v49  ;;  %v5827_v46 = vpop.f32.mrb[156].mxu0 }
 0x2b4   : > { %v5891_v2 = vpop.f32.mrb[156].mxu1  ;;  %v5828_v55 = vpop.f32.mrb[157].mxu0 }
 0x2b5   : > { %v5829_v43 = vadd.f32 %v5828_v55, %v5827_v46  ;;  %v5892_v47 = vpop.f32.mrb[157].mxu1  ;;  %v5830_v3 = vpop.f32.mrb[158].mxu0 }
 0x2b6   : > { %v5893_v23 = vadd.f32 %v5892_v47, %v5891_v2  ;;  %v5894_v32 = vpop.f32.mrb[158].mxu1  ;;  %v5831_v7 = vpop.f32.mrb[159].mxu0 }
 0x2b7   : > { %v3842_v36 = vadd.f32 %v5829_v43, %v7375_v59  ;;  %v5832_v9 = vadd.f32 %v5831_v7, %v5830_v3  ;;  %v5895_v24 = vpop.f32.mrb[159].mxu1 }
 0x2b8   : > { %v5896_v35 = vadd.f32 %v5895_v24, %v5894_v32 }
 0x2b9   : > { %v7423_v12 = vadd.f32 %v5893_v23, %v3842_v36  ;;  %v3845_v16 = vadd.f32 %v5832_v9, %v7378_v52 }
 0x2bb   : > { %v7426_v41 = vadd.f32 %v5896_v35, %v3845_v16  ;;  %v5913_v14 = vpop.f32.mrb[160].mxu0 }
 0x2bc   : > { %v5977_v17 = vpop.f32.mrb[160].mxu1  ;;  %v5914_v13 = vpop.f32.mrb[161].mxu0 }
 0x2bd   : > { %v5915_v1 = vadd.f32 %v5914_v13, %v5913_v14  ;;  %v5978_v29 = vpop.f32.mrb[161].mxu1  ;;  %v5916_v33 = vpop.f32.mrb[162].mxu0 }
 0x2be   : > { %v5979_v58 = vadd.f32 %v5978_v29, %v5977_v17  ;;  %v5980_v42 = vpop.f32.mrb[162].mxu1  ;;  %v5917_v28 = vpop.f32.mrb[163].mxu0 }
 0x2bf   : > { %v3980_v59 = vadd.f32 %v5915_v1, %v7381_v63  ;;  %v5918_v31 = vadd.f32 %v5917_v28, %v5916_v33  ;;  %v5981_v10 = vpop.f32.mrb[163].mxu1 }
 0x2c0   : > { %v5982_v51 = vadd.f32 %v5981_v10, %v5980_v42 }
 0x2c1   : > { %v3983_v37 = vadd.f32 %v5918_v31, %v7384_v34  ;;  %v7430_v62 = vadd.f32 %v5979_v58, %v3980_v59 }
 0x2c3   : > { %v5919_v52 = vpop.f32.mrb[164].mxu0  ;;  %4139 = vadd.xlane.f32.xlu0 %v7430_v62  ;;  %v7433_v22 = vadd.f32 %v5982_v51, %v3983_v37 }
 0x2c4   : > { %v5983_v26 = vpop.f32.mrb[164].mxu1  ;;  %v5920_v45 = vpop.f32.mrb[165].mxu0 }
 0x2c5   : > { %v5921_v25 = vadd.f32 %v5920_v45, %v5919_v52  ;;  %v5984_v39 = vpop.f32.mrb[165].mxu1  ;;  %v5922_v40 = vpop.f32.mrb[166].mxu0 }
 0x2c6   : > { %v5985_v20 = vadd.f32 %v5984_v39, %v5983_v26  ;;  %v5986_v18 = vpop.f32.mrb[166].mxu1  ;;  %v5923_v63 = vpop.f32.mrb[167].mxu0 }
 0x2c7   : > { %v3988_v48 = vadd.f32 %v5921_v25, %v7387_v19  ;;  %v5924_v50 = vadd.f32 %v5923_v63, %v5922_v40  ;;  %v5987_v60 = vpop.f32.mrb[167].mxu1  ;;  %4141 = vadd.xlane.f32.xlu0 %v7433_v22 }
 0x2c8   : > { %v5988_v34 = vadd.f32 %v5987_v60, %v5986_v18 }
 0x2c9   : > { %v3991_v6 = vadd.f32 %v5924_v50, %v7390_v56  ;;  %v7438_v54 = vadd.f32 %v5985_v20, %v3988_v48 }
 0x2cb   : > { %v5925_v11 = vpop.f32.mrb[168].mxu0  ;;  %4143 = vadd.xlane.f32.xlu0 %v7438_v54  ;;  %v7441_v57 = vadd.f32 %v5988_v34, %v3991_v6 }
 0x2cc   : > { %v5989_v61 = vpop.f32.mrb[168].mxu1  ;;  %v5926_v8 = vpop.f32.mrb[169].mxu0 }
 0x2cd   : > { %v5927_v49 = vadd.f32 %v5926_v8, %v5925_v11  ;;  %v5990_v46 = vpop.f32.mrb[169].mxu1  ;;  %v5928_v2 = vpop.f32.mrb[170].mxu0  ;;  %4145 = vadd.xlane.f32.xlu1 %v7441_v57 }
 0x2ce   : > { %v5991_v19 = vadd.f32 %v5990_v46, %v5989_v61  ;;  %v5992_v55 = vpop.f32.mrb[170].mxu1  ;;  %v5929_v43 = vpop.f32.mrb[171].mxu0 }
 0x2cf   : > { %v3996_v47 = vadd.f32 %v5927_v49, %v7393_v44  ;;  %v5930_v56 = vadd.f32 %v5929_v43, %v5928_v2  ;;  %v5993_v3 = vpop.f32.mrb[171].mxu1 }
 0x2d0   : > { %v5994_v23 = vadd.f32 %v5993_v3, %v5992_v55 }
 0x2d1   : > { %v3999_v32 = vadd.f32 %v5930_v56, %v7396_v5  ;;  %v7446_v7 = vadd.f32 %v5991_v19, %v3996_v47 }
 0x2d3   : > { %v5931_v36 = vpop.f32.mrb[172].mxu0  ;;  %4147 = vadd.xlane.f32.xlu0 %v7446_v7  ;;  %v7449_v9 = vadd.f32 %v5994_v23, %v3999_v32 }
 0x2d4   : > { %v5995_v24 = vpop.f32.mrb[172].mxu1  ;;  %v5932_v35 = vpop.f32.mrb[173].mxu0 }
 0x2d5   : > { %v5933_v16 = vadd.f32 %v5932_v35, %v5931_v36  ;;  %v5996_v14 = vpop.f32.mrb[173].mxu1  ;;  %v5934_v17 = vpop.f32.mrb[174].mxu0  ;;  %4149 = vadd.xlane.f32.xlu1 %v7449_v9 }
 0x2d6   : > { %v5997_v44 = vadd.f32 %v5996_v14, %v5995_v24  ;;  %v5998_v13 = vpop.f32.mrb[174].mxu1  ;;  %v5935_v1 = vpop.f32.mrb[175].mxu0 }
 0x2d7   : > { %v4004_v29 = vadd.f32 %v5933_v16, %v7399_v4  ;;  %v5936_v5 = vadd.f32 %v5935_v1, %v5934_v17  ;;  %v5999_v33 = vpop.f32.mrb[175].mxu1 }
 0x2d8   : > { %v6000_v58 = vadd.f32 %v5999_v33, %v5998_v13 }
 0x2d9   : > { %v4007_v42 = vadd.f32 %v5936_v5, %v7402_v27  ;;  %v7454_v28 = vadd.f32 %v5997_v44, %v4004_v29 }
 0x2db   : > { %v5937_v59 = vpop.f32.mrb[176].mxu0  ;;  %4151 = vadd.xlane.f32.xlu0 %v7454_v28  ;;  %v7457_v31 = vadd.f32 %v6000_v58, %v4007_v42 }
 0x2dc   : > { %v6001_v10 = vpop.f32.mrb[176].mxu1  ;;  %v5938_v51 = vpop.f32.mrb[177].mxu0 }
 0x2dd   : > { %v5939_v37 = vadd.f32 %v5938_v51, %v5937_v59  ;;  %v6002_v52 = vpop.f32.mrb[177].mxu1  ;;  %v5940_v26 = vpop.f32.mrb[178].mxu0  ;;  %4153 = vadd.xlane.f32.xlu1 %v7457_v31 }
 0x2de   : > { %v6003_v4 = vadd.f32 %v6002_v52, %v6001_v10  ;;  %v6004_v45 = vpop.f32.mrb[178].mxu1  ;;  %v5941_v25 = vpop.f32.mrb[179].mxu0 }
 0x2df   : > { %v4012_v39 = vadd.f32 %v5939_v37, %v7405_v21  ;;  %v5942_v27 = vadd.f32 %v5941_v25, %v5940_v26  ;;  %v6005_v40 = vpop.f32.mrb[179].mxu1 }
 0x2e0   : > { %v6006_v20 = vadd.f32 %v6005_v40, %v6004_v45 }
 0x2e1   : > { %v4015_v18 = vadd.f32 %v5942_v27, %v7408_v53  ;;  %v7462_v63 = vadd.f32 %v6003_v4, %v4012_v39 }
 0x2e3   : > { %v5943_v48 = vpop.f32.mrb[180].mxu0  ;;  %4155 = vadd.xlane.f32.xlu1 %v7462_v63  ;;  %v7465_v50 = vadd.f32 %v6006_v20, %v4015_v18 }
 0x2e4   : > { %v6007_v60 = vpop.f32.mrb[180].mxu1  ;;  %v5944_v34 = vpop.f32.mrb[181].mxu0 }
 0x2e5   : > { %v5945_v6 = vadd.f32 %v5944_v34, %v5943_v48  ;;  %v6008_v11 = vpop.f32.mrb[181].mxu1  ;;  %v5946_v61 = vpop.f32.mrb[182].mxu0 }
 0x2e6   : > { %v6009_v8 = vadd.f32 %v6008_v11, %v6007_v60  ;;  %v6010_v49 = vpop.f32.mrb[182].mxu1  ;;  %v5947_v21 = vpop.f32.mrb[183].mxu0 }
 0x2e7   : > { %v4020_v46 = vadd.f32 %v5945_v6, %v7411_v38  ;;  %v5948_v2 = vadd.f32 %v5947_v21, %v5946_v61  ;;  %v6011_v19 = vpop.f32.mrb[183].mxu1  ;;  %4157 = vadd.xlane.f32.xlu1 %v7465_v50 }
 0x2e8   : > { %v6012_v53 = vadd.f32 %v6011_v19, %v6010_v49 }
 0x2e9   : > { %v4023_v55 = vadd.f32 %v5948_v2, %v7414_v0  ;;  %v7470_v43 = vadd.f32 %v6009_v8, %v4020_v46 }
 0x2eb   : > { %v5949_v47 = vpop.f32.mrb[184].mxu0  ;;  %4159 = vadd.xlane.f32.xlu0 %v7470_v43  ;;  %v7473_v56 = vadd.f32 %v6012_v53, %v4023_v55 }
 0x2ec   : > { %v6013_v3 = vpop.f32.mrb[184].mxu1  ;;  %v5950_v23 = vpop.f32.mrb[185].mxu0 }
 0x2ed   : > { %v5951_v32 = vadd.f32 %v5950_v23, %v5949_v47  ;;  %v6014_v36 = vpop.f32.mrb[185].mxu1  ;;  %v5952_v24 = vpop.f32.mrb[186].mxu0  ;;  %4161 = vadd.xlane.f32.xlu1 %v7473_v56 }
 0x2ee   : > { %v6015_v38 = vadd.f32 %v6014_v36, %v6013_v3  ;;  %v6016_v35 = vpop.f32.mrb[186].mxu1  ;;  %v5953_v16 = vpop.f32.mrb[187].mxu0 }
 0x2ef   : > { %v4028_v14 = vadd.f32 %v5951_v32, %v7417_v15  ;;  %v5954_v0 = vadd.f32 %v5953_v16, %v5952_v24  ;;  %v6017_v17 = vpop.f32.mrb[187].mxu1 }
 0x2f0   : > { %v6018_v44 = vadd.f32 %v6017_v17, %v6016_v35 }
 0x2f1   : > { %v4031_v13 = vadd.f32 %v5954_v0, %v7420_v30  ;;  %v7478_v1 = vadd.f32 %v6015_v38, %v4028_v14 }
 0x2f3   : > { %v5955_v29 = vpop.f32.mrb[188].mxu0  ;;  %4163 = vadd.xlane.f32.xlu0 %v7478_v1  ;;  %v7481_v5 = vadd.f32 %v6018_v44, %v4031_v13 }
 0x2f4   : > { %v6019_v33 = vpop.f32.mrb[188].mxu1  ;;  %v5956_v58 = vpop.f32.mrb[189].mxu0 }
 0x2f5   : > { %v5957_v42 = vadd.f32 %v5956_v58, %v5955_v29  ;;  %v6020_v59 = vpop.f32.mrb[189].mxu1  ;;  %v5958_v10 = vpop.f32.mrb[190].mxu0  ;;  %4165 = vadd.xlane.f32.xlu1 %v7481_v5 }
 0x2f6   : > { %v6021_v15 = vadd.f32 %v6020_v59, %v6019_v33  ;;  %v6022_v51 = vpop.f32.mrb[190].mxu1  ;;  %v5959_v37 = vpop.f32.mrb[191].mxu0 }
 0x2f7   : > { %v4036_v52 = vadd.f32 %v5957_v42, %v7423_v12  ;;  %v5960_v30 = vadd.f32 %v5959_v37, %v5958_v10  ;;  %v6023_v26 = vpop.f32.mrb[191].mxu1 }
 0x2f8   : > { %v6024_v4 = vadd.f32 %v6023_v26, %v6022_v51 }
 0x2f9   : > { %v4039_v45 = vadd.f32 %v5960_v30, %v7426_v41  ;;  %v7486_v25 = vadd.f32 %v6021_v15, %v4036_v52 }
 0x2fb   : > { %4167 = vadd.xlane.f32.xlu0 %v7486_v25  ;;  %v7489_v39 = vadd.f32 %v6024_v4, %v4039_v45 }
 0x2fd   : > { %4169 = vadd.xlane.f32.xlu1 %v7489_v39 }
 0x350   : > { %v4140_v27 = vpop.xlane.xlu0 %4139 }
 0x351   : > { %v4172_v40 = vmul.f32 0.0078125, %v4140_v27 }
 0x353   : > { %v7493_v20 = vsub.f32 %v7430_v62, %v4172_v40 }
 0x354   : > { %v4142_v18 = vpop.xlane.xlu0 %4141 }
 0x355   : > { %v4173_v12 = vmul.f32 0.0078125, %v4142_v18  ;;  %v4204_v48 = vmul.f32 %v7493_v20, %v7493_v20 }
 0x357   : > { %v7498_v41 = vsub.f32 %v7433_v22, %v4173_v12  ;;  %4220 = vadd.xlane.f32.xlu0 %v4204_v48 }
 0x358   : > { %v4144_v60 = vpop.xlane.xlu0 %4143 }
 0x359   : > { %v4174_v34 = vmul.f32 0.0078125, %v4144_v60  ;;  %v4205_v6 = vmul.f32 %v7498_v41, %v7498_v41 }
 0x35a   : > { %v4146_v11 = vpop.xlane.xlu1 %4145 }
 0x35b   : > { %v7503_v61 = vsub.f32 %v7438_v54, %v4174_v34  ;;  %v4175_v62 = vmul.f32 0.0078125, %v4146_v11  ;;  %4222 = vadd.xlane.f32.xlu1 %v4205_v6 }
 0x35d   : > { %v7506_v8 = vsub.f32 %v7441_v57, %v4175_v62  ;;  %v4206_v49 = vmul.f32 %v7503_v61, %v7503_v61 }
 0x35f   : > { %4224 = vadd.xlane.f32.xlu0 %v4206_v49  ;;  %v4207_v22 = vmul.f32 %v7506_v8, %v7506_v8 }
 0x360   : > { %v4148_v21 = vpop.xlane.xlu0 %4147 }
 0x361   : > { %v4176_v46 = vmul.f32 0.0078125, %v4148_v21  ;;  %4226 = vadd.xlane.f32.xlu1 %v4207_v22 }
 0x362   : > { %v4150_v2 = vpop.xlane.xlu1 %4149 }
 0x363   : > { %v7513_v19 = vsub.f32 %v7446_v7, %v4176_v46  ;;  %v4177_v54 = vmul.f32 0.0078125, %v4150_v2  ;;  %v7572_v46 = vld [vmem:[#allocation7] ss:$0 sm:$0xff] }
 0x365   : > { %v7516_v53 = vsub.f32 %v7449_v9, %v4177_v54  ;;  %v4208_v57 = vmul.f32 %v7513_v19, %v7513_v19 }
 0x367   : > { %4228 = vadd.xlane.f32.xlu0 %v4208_v57  ;;  %v4209_v55 = vmul.f32 %v7516_v53, %v7516_v53 }
 0x368   : > { %v4152_v47 = vpop.xlane.xlu0 %4151 }
 0x369   : > { %v4178_v3 = vmul.f32 0.0078125, %v4152_v47  ;;  %4230 = vadd.xlane.f32.xlu1 %v4209_v55  ;;  %v7575_v55 = vld [vmem:[#allocation8] ss:$0 sm:$0xff] }
 0x36a   : > { %v4154_v23 = vpop.xlane.xlu1 %4153 }
 0x36b   : > { %v7523_v32 = vsub.f32 %v7454_v28, %v4178_v3  ;;  %v4179_v7 = vmul.f32 0.0078125, %v4154_v23 }
 0x36d   : > { %v7526_v36 = vsub.f32 %v7457_v31, %v4179_v7  ;;  %v4210_v9 = vmul.f32 %v7523_v32, %v7523_v32 }
 0x36f   : > { %4232 = vadd.xlane.f32.xlu0 %v4210_v9  ;;  %v4211_v24 = vmul.f32 %v7526_v36, %v7526_v36 }
 0x370   : > { %v4156_v38 = vpop.xlane.xlu1 %4155 }
 0x371   : > { %v4180_v35 = vmul.f32 0.0078125, %v4156_v38  ;;  %4234 = vadd.xlane.f32.xlu1 %v4211_v24 }
 0x373   : > { %v7533_v16 = vsub.f32 %v7462_v63, %v4180_v35 }
 0x374   : > { %v4158_v14 = vpop.xlane.xlu1 %4157 }
 0x375   : > { %v4181_v28 = vmul.f32 0.0078125, %v4158_v14  ;;  %v4212_v0 = vmul.f32 %v7533_v16, %v7533_v16 }
 0x377   : > { %v7538_v31 = vsub.f32 %v7465_v50, %v4181_v28  ;;  %4236 = vadd.xlane.f32.xlu0 %v4212_v0 }
 0x378   : > { %v4160_v17 = vpop.xlane.xlu0 %4159 }
 0x379   : > { %v4182_v44 = vmul.f32 0.0078125, %v4160_v17  ;;  %v4213_v13 = vmul.f32 %v7538_v31, %v7538_v31 }
 0x37a   : > { %v4162_v29 = vpop.xlane.xlu1 %4161 }
 0x37b   : > { %v7543_v33 = vsub.f32 %v7470_v43, %v4182_v44  ;;  %v4183_v63 = vmul.f32 0.0078125, %v4162_v29  ;;  %4238 = vadd.xlane.f32.xlu1 %v4213_v13 }
 0x37d   : > { %v7546_v58 = vsub.f32 %v7473_v56, %v4183_v63  ;;  %v4214_v42 = vmul.f32 %v7543_v33, %v7543_v33 }
 0x37f   : > { %4240 = vadd.xlane.f32.xlu0 %v4214_v42  ;;  %v4215_v50 = vmul.f32 %v7546_v58, %v7546_v58 }
 0x380   : > { %v4164_v59 = vpop.xlane.xlu0 %4163 }
 0x381   : > { %v4184_v10 = vmul.f32 0.0078125, %v4164_v59  ;;  %4242 = vadd.xlane.f32.xlu1 %v4215_v50 }
 0x382   : > { %v4166_v15 = vpop.xlane.xlu1 %4165 }
 0x383   : > { %v7553_v51 = vsub.f32 %v7478_v1, %v4184_v10  ;;  %v4185_v43 = vmul.f32 0.0078125, %v4166_v15 }
 0x385   : > { %v7556_v37 = vsub.f32 %v7481_v5, %v4185_v43  ;;  %v4216_v56 = vmul.f32 %v7553_v51, %v7553_v51 }
 0x387   : > { %4244 = vadd.xlane.f32.xlu0 %v4216_v56  ;;  %v4217_v52 = vmul.f32 %v7556_v37, %v7556_v37 }
 0x388   : > { %v4168_v30 = vpop.xlane.xlu0 %4167 }
 0x389   : > { %v4186_v26 = vmul.f32 0.0078125, %v4168_v30  ;;  %4246 = vadd.xlane.f32.xlu1 %v4217_v52 }
 0x38a   : > { %v4170_v4 = vpop.xlane.xlu1 %4169 }
 0x38b   : > { %v7563_v45 = vsub.f32 %v7486_v25, %v4186_v26  ;;  %v4187_v1 = vmul.f32 0.0078125, %v4170_v4 }
 0x38d   : > { %v7566_v27 = vsub.f32 %v7489_v39, %v4187_v1  ;;  %v4218_v5 = vmul.f32 %v7563_v45, %v7563_v45 }
 0x38f   : > { %4248 = vadd.xlane.f32.xlu0 %v4218_v5  ;;  %v4219_v40 = vmul.f32 %v7566_v27, %v7566_v27 }
 0x391   : > { %4250 = vadd.xlane.f32.xlu1 %v4219_v40 }
 0x3e4   : > { %v4221_v18 = vpop.xlane.xlu0 %4220 }
 0x3e5   : > { %v4252_v12 = vmul.f32 0.0078125, %v4221_v18 }
 0x3e7   : > { %v4268_v48 = vadd.f32 1e-05, %v4252_v12 }
 0x3e8   : > { %v4223_v60 = vpop.xlane.xlu1 %4222 }
 0x3e9   : > { %6376 = vrsqrt.f32 %v4268_v48  ;;  %v4253_v34 = vmul.f32 0.0078125, %v4223_v60 }
 0x3eb   : > { %v4269_v25 = vadd.f32 1e-05, %v4253_v34 }
 0x3ec   : > { %v4225_v6 = vpop.xlane.xlu0 %4224 }
 0x3ed   : > { %6378 = vrsqrt.f32 %v4269_v25  ;;  %v4254_v11 = vmul.f32 0.0078125, %v4225_v6 }
 0x3ee   : > { %v4227_v39 = vpop.xlane.xlu1 %4226 }
 0x3ef   : > { %v4270_v62 = vadd.f32 1e-05, %v4254_v11  ;;  %v4255_v49 = vmul.f32 0.0078125, %v4227_v39 }
 0x3f1   : > { %6380 = vrsqrt.f32 %v4270_v62  ;;  %v4271_v22 = vadd.f32 1e-05, %v4255_v49 }
 0x3f3   : > { %v6377_v21 = vpop.eup %6376  ;;  %6382 = vrsqrt.f32 %v4271_v22 }
 0x3f4   : > { %v4229_v2 = vpop.xlane.xlu0 %4228  ;;  %v4300_v54 = vmul.f32 %v6377_v21, %v7493_v20 }
 0x3f5   : > { %v4256_v57 = vmul.f32 0.0078125, %v4229_v2 }
 0x3f6   : > { %v4231_v47 = vpop.xlane.xlu1 %4230  ;;  %v4323_v3 = vmul.f32 %v7572_v46, %v4300_v54 }
 0x3f7   : > { %v6379_v23 = vpop.eup %6378  ;;  %v4272_v7 = vadd.f32 1e-05, %v4256_v57  ;;  %v4257_v9 = vmul.f32 0.0078125, %v4231_v47 }
 0x3f8   : > { %v7579_v24 = vadd.f32 %v7575_v55, %v4323_v3  ;;  %v4301_v38 = vmul.f32 %v6379_v23, %v7498_v41 }
 0x3f9   : > { %6384 = vrsqrt.f32 %v4272_v7  ;;  %v4273_v35 = vadd.f32 1e-05, %v4257_v9 }
 0x3fa   : > { %4362 = vmax.xlane.f32.xlu0 %v7579_v24  ;;  %v4324_v20 = vmul.f32 %v7572_v46, %v4301_v38 }
 0x3fb   : > { %v6381_v14 = vpop.eup %6380  ;;  %6386 = vrsqrt.f32 %v4273_v35 }
 0x3fc   : > { %v4233_v28 = vpop.xlane.xlu0 %4232  ;;  %v7585_v0 = vadd.f32 %v7575_v55, %v4324_v20  ;;  %v4302_v17 = vmul.f32 %v6381_v14, %v7503_v61 }
 0x3fd   : > { %v6383_v44 = vpop.eup %6382  ;;  %v4258_v13 = vmul.f32 0.0078125, %v4233_v28 }
 0x3fe   : > { %4364 = vmax.xlane.f32.xlu1 %v7585_v0  ;;  %v4235_v29 = vpop.xlane.xlu1 %4234  ;;  %v4325_v41 = vmul.f32 %v7572_v46, %v4302_v17  ;;  %v4303_v63 = vmul.f32 %v6383_v44, %v7506_v8 }
 0x3ff   : > { %v4274_v42 = vadd.f32 1e-05, %v4258_v13  ;;  %v4259_v50 = vmul.f32 0.0078125, %v4235_v29 }
 0x400   : > { %v7592_v59 = vadd.f32 %v7575_v55, %v4325_v41  ;;  %v4326_v10 = vmul.f32 %v7572_v46, %v4303_v63 }
 0x401   : > { %6388 = vrsqrt.f32 %v4274_v42  ;;  %v4275_v15 = vadd.f32 1e-05, %v4259_v50 }
 0x402   : > { %4366 = vmax.xlane.f32.xlu0 %v7592_v59  ;;  %v7597_v61 = vadd.f32 %v7575_v55, %v4326_v10 }
 0x403   : > { %v6385_v43 = vpop.eup %6384  ;;  %6390 = vrsqrt.f32 %v4275_v15 }
 0x404   : > { %4368 = vmax.xlane.f32.xlu1 %v7597_v61  ;;  %v4237_v56 = vpop.xlane.xlu0 %4236  ;;  %v4304_v8 = vmul.f32 %v6385_v43, %v7513_v19 }
 0x405   : > { %v6387_v52 = vpop.eup %6386  ;;  %v4260_v30 = vmul.f32 0.0078125, %v4237_v56 }
 0x406   : > { %v4327_v26 = vmul.f32 %v7572_v46, %v4304_v8  ;;  %v4305_v4 = vmul.f32 %v6387_v52, %v7516_v53 }
 0x407   : > { %v4276_v1 = vadd.f32 1e-05, %v4260_v30 }
 0x408   : > { %v4239_v5 = vpop.xlane.xlu1 %4238  ;;  %v7604_v40 = vadd.f32 %v7575_v55, %v4327_v26  ;;  %v4328_v18 = vmul.f32 %v7572_v46, %v4305_v4 }
 0x409   : > { %6392 = vrsqrt.f32 %v4276_v1  ;;  %v4261_v12 = vmul.f32 0.0078125, %v4239_v5 }
 0x40a   : > { %4370 = vmax.xlane.f32.xlu0 %v7604_v40  ;;  %v7609_v48 = vadd.f32 %v7575_v55, %v4328_v18 }
 0x40b   : > { %v6389_v19 = vpop.eup %6388  ;;  %v4277_v60 = vadd.f32 1e-05, %v4261_v12 }
 0x40c   : > { %4372 = vmax.xlane.f32.xlu1 %v7609_v48  ;;  %v4241_v34 = vpop.xlane.xlu0 %4240  ;;  %v4306_v53 = vmul.f32 %v6389_v19, %v7523_v32 }
 0x40d   : > { %v6391_v25 = vpop.eup %6390  ;;  %6394 = vrsqrt.f32 %v4277_v60  ;;  %v4262_v6 = vmul.f32 0.0078125, %v4241_v34 }
 0x40e   : > { %v4243_v11 = vpop.xlane.xlu1 %4242  ;;  %v4329_v39 = vmul.f32 %v7572_v46, %v4306_v53  ;;  %v4307_v62 = vmul.f32 %v6391_v25, %v7526_v36 }
 0x40f   : > { %v4278_v49 = vadd.f32 1e-05, %v4262_v6  ;;  %v4263_v22 = vmul.f32 0.0078125, %v4243_v11 }
 0x410   : > { %v7616_v21 = vadd.f32 %v7575_v55, %v4329_v39  ;;  %v4330_v2 = vmul.f32 %v7572_v46, %v4307_v62 }
 0x411   : > { %6396 = vrsqrt.f32 %v4278_v49  ;;  %v4279_v54 = vadd.f32 1e-05, %v4263_v22 }
 0x412   : > { %4374 = vmax.xlane.f32.xlu0 %v7616_v21  ;;  %v7621_v32 = vadd.f32 %v7575_v55, %v4330_v2 }
 0x413   : > { %v6393_v57 = vpop.eup %6392  ;;  %6398 = vrsqrt.f32 %v4279_v54 }
 0x414   : > { %4376 = vmax.xlane.f32.xlu1 %v7621_v32  ;;  %v4245_v47 = vpop.xlane.xlu0 %4244  ;;  %v4308_v36 = vmul.f32 %v6393_v57, %v7533_v16 }
 0x415   : > { %v4264_v3 = vmul.f32 0.0078125, %v4245_v47 }
 0x416   : > { %v4247_v23 = vpop.xlane.xlu1 %4246  ;;  %v4331_v7 = vmul.f32 %v7572_v46, %v4308_v36 }
 0x417   : > { %v6395_v9 = vpop.eup %6394  ;;  %v4280_v38 = vadd.f32 1e-05, %v4264_v3  ;;  %v4265_v35 = vmul.f32 0.0078125, %v4247_v23 }
 0x418   : > { %v7627_v20 = vadd.f32 %v7575_v55, %v4331_v7  ;;  %v4309_v14 = vmul.f32 %v6395_v9, %v7538_v31 }
 0x419   : > { %6400 = vrsqrt.f32 %v4280_v38  ;;  %v4281_v28 = vadd.f32 1e-05, %v4265_v35 }
 0x41a   : > { %4378 = vmax.xlane.f32.xlu0 %v7627_v20  ;;  %v4332_v17 = vmul.f32 %v7572_v46, %v4309_v14 }
 0x41b   : > { %v6397_v44 = vpop.eup %6396  ;;  %6402 = vrsqrt.f32 %v4281_v28 }
 0x41c   : > { %v4249_v16 = vpop.xlane.xlu0 %4248  ;;  %v7633_v13 = vadd.f32 %v7575_v55, %v4332_v17  ;;  %v4310_v29 = vmul.f32 %v6397_v44, %v7543_v33  ;;  %v6370_v44 = vld [vmem:[%s7839_s4 + $0x10] sm:$0xff]  }
 0x41d   : > { %v6399_v41 = vpop.eup %6398  ;;  %v4266_v63 = vmul.f32 0.0078125, %v4249_v16 }
 0x41e   : > { %4380 = vmax.xlane.f32.xlu1 %v7633_v13  ;;  %v4251_v42 = vpop.xlane.xlu1 %4250  ;;  %v4333_v31 = vmul.f32 %v7572_v46, %v4310_v29  ;;  %v4311_v50 = vmul.f32 %v6399_v41, %v7546_v58 }
 0x41f   : > { %v4282_v10 = vadd.f32 1e-05, %v4266_v63  ;;  %v4267_v15 = vmul.f32 0.0078125, %v4251_v42 }
 0x420   : > { %v7640_v43 = vadd.f32 %v7575_v55, %v4333_v31  ;;  %v4334_v56 = vmul.f32 %v7572_v46, %v4311_v50 }
 0x421   : > { %6404 = vrsqrt.f32 %v4282_v10  ;;  %v4283_v8 = vadd.f32 1e-05, %v4267_v15 }
 0x422   : > { %4382 = vmax.xlane.f32.xlu0 %v7640_v43  ;;  %v7645_v33 = vadd.f32 %v7575_v55, %v4334_v56 }
 0x423   : > { %v6401_v52 = vpop.eup %6400  ;;  %6406 = vrsqrt.f32 %v4283_v8 }
 0x424   : > { %4384 = vmax.xlane.f32.xlu1 %v7645_v33  ;;  %v4312_v58 = vmul.f32 %v6401_v52, %v7553_v51  ;;  %v6373_v52 = vld [vmem:[%s7839_s4 + $0x28] sm:$0xff]  }
 0x425   : > { %v6403_v30 = vpop.eup %6402 }
 0x426   : > { %v4335_v26 = vmul.f32 %v7572_v46, %v4312_v58  ;;  %v4313_v4 = vmul.f32 %v6403_v30, %v7556_v37 }
 0x428   : > { %v7652_v1 = vadd.f32 %v7575_v55, %v4335_v26  ;;  %v4336_v5 = vmul.f32 %v7572_v46, %v4313_v4 }
 0x42a   : > { %4386 = vmax.xlane.f32.xlu0 %v7652_v1  ;;  %v7657_v18 = vadd.f32 %v7575_v55, %v4336_v5 }
 0x42b   : > { %v6405_v12 = vpop.eup %6404 }
 0x42c   : > { %4388 = vmax.xlane.f32.xlu1 %v7657_v18  ;;  %v4314_v51 = vmul.f32 %v6405_v12, %v7563_v45  ;;  %v6368_v45 = vld [vmem:[%s7839_s4] sm:$0xff]  }
 0x42d   : > { %v6407_v19 = vpop.eup %6406  ;;  %6041 = vmatprep.subr.bf16.mxu0 %v6368_v45  ;;  %6073 = vmatprep.subr.bf16.mxu1 %v6368_v45 }
 0x42e   : > { %v4337_v60 = vmul.f32 %v7572_v46, %v4314_v51  ;;  %v4315_v37 = vmul.f32 %v6407_v19, %v7566_v27  ;;  %v6369_v27 = vld [vmem:[%s7839_s4 + $0x8] sm:$0xff]   ;;  %6042 = vmatpush3.bf16.msra.mxu0 %v6368_v45  ;;  %6081 = vmatpush3.bf16.msra.mxu1 %v6368_v45  ;;  %v6375_v51 = vld [vmem:[%s7839_s4 + $0x38] sm:$0xff]  }
 0x42f   : > { %6043 = vmatprep.subr.bf16.mxu0 %v6369_v27  ;;  %6074 = vmatprep.subr.bf16.mxu1 %v6369_v27 }
 0x430   : > { %v7664_v34 = vadd.f32 %v7575_v55, %v4337_v60  ;;  %v4338_v53 = vmul.f32 %v7572_v46, %v4315_v37 }
 0x432   : > { %4390 = vmax.xlane.f32.xlu0 %v7664_v34  ;;  %v7669_v25 = vadd.f32 %v7575_v55, %v4338_v53  ;;  %6044 = vmatpush3.bf16.msra.mxu0 %v6369_v27 }
 0x433   : > { %6082 = vmatpush3.bf16.msra.mxu1 %v6369_v27  ;;  %6045 = vmatprep.subr.bf16.mxu0 %v6370_v44 }
 0x434   : > { %4392 = vmax.xlane.f32.xlu1 %v7669_v25  ;;  %6075 = vmatprep.subr.bf16.mxu1 %v6370_v44 }
 0x436   : > { %6046 = vmatpush3.bf16.msra.mxu0 %v6370_v44 }
 0x437   : > { %6083 = vmatpush3.bf16.msra.mxu1 %v6370_v44 }
 0x487   : > { %v4363_v46 = vpop.xlane.xlu0 %4362 }
 0x488   : > { %v4394_v55 = vsub.f32 %v7579_v24, %v4363_v46 }
 0x48a   : > { %v4410_v6 = vmul.f32 1.442695, %v4394_v55 }
 0x48b   : > { %v4365_v11 = vpop.xlane.xlu1 %4364 }
 0x48c   : > { %6408 = vpow2.f32 %v4410_v6  ;;  %v4395_v39 = vsub.f32 %v7585_v0, %v4365_v11 }
 0x48e   : > { %v4412_v62 = vmul.f32 1.442695, %v4395_v39 }
 0x48f   : > { %v4367_v49 = vpop.xlane.xlu0 %4366 }
 0x490   : > { %6410 = vpow2.f32 %v4412_v62  ;;  %v4396_v22 = vsub.f32 %v7592_v59, %v4367_v49 }
 0x491   : > { %v4369_v2 = vpop.xlane.xlu1 %4368 }
 0x492   : > { %v4414_v54 = vmul.f32 1.442695, %v4396_v22  ;;  %v4397_v57 = vsub.f32 %v7597_v61, %v4369_v2 }
 0x494   : > { %6412 = vpow2.f32 %v4414_v54  ;;  %v4416_v47 = vmul.f32 1.442695, %v4397_v57 }
 0x496   : > { %v7682_v36 = vpop.eup %6408  ;;  %6414 = vpow2.f32 %v4416_v47 }
 0x497   : > { %4442 = vadd.xlane.f32.xlu0 %v7682_v36  ;;  %v4371_v24 = vpop.xlane.xlu0 %4370 }
 0x498   : > { %v4398_v3 = vsub.f32 %v7604_v40, %v4371_v24 }
 0x499   : > { %v4373_v0 = vpop.xlane.xlu1 %4372 }
 0x49a   : > { %v7686_v23 = vpop.eup %6410  ;;  %v4418_v7 = vmul.f32 1.442695, %v4398_v3  ;;  %v4399_v59 = vsub.f32 %v7609_v48, %v4373_v0 }
 0x49b   : > { %4444 = vadd.xlane.f32.xlu1 %v7686_v23 }
 0x49c   : > { %6416 = vpow2.f32 %v4418_v7  ;;  %v4420_v61 = vmul.f32 1.442695, %v4399_v59 }
 0x49e   : > { %v7690_v9 = vpop.eup %6412  ;;  %6418 = vpow2.f32 %v4420_v61 }
 0x49f   : > { %4446 = vadd.xlane.f32.xlu0 %v7690_v9  ;;  %v4375_v38 = vpop.xlane.xlu0 %4374 }
 0x4a0   : > { %v7693_v35 = vpop.eup %6414  ;;  %v4400_v40 = vsub.f32 %v7616_v21, %v4375_v38 }
 0x4a1   : > { %4448 = vadd.xlane.f32.xlu1 %v7693_v35  ;;  %v4377_v14 = vpop.xlane.xlu1 %4376 }
 0x4a2   : > { %v4422_v28 = vmul.f32 1.442695, %v4400_v40  ;;  %v4401_v48 = vsub.f32 %v7621_v32, %v4377_v14  ;;  %v6371_v32 = vld [vmem:[%s7839_s4 + $0x18] sm:$0xff]  }
 0x4a3   : > { %6047 = vmatprep.subr.bf16.mxu0 %v6371_v32  ;;  %6076 = vmatprep.subr.bf16.mxu1 %v6371_v32 }
 0x4a4   : > { %6420 = vpow2.f32 %v4422_v28  ;;  %v4424_v17 = vmul.f32 1.442695, %v4401_v48  ;;  %6048 = vmatpush3.bf16.msra.mxu0 %v6371_v32  ;;  %6084 = vmatpush3.bf16.msra.mxu1 %v6371_v32 }
 0x4a6   : > { %v7701_v16 = vpop.eup %6416  ;;  %6422 = vpow2.f32 %v4424_v17 }
 0x4a7   : > { %4450 = vadd.xlane.f32.xlu0 %v7701_v16  ;;  %v4379_v29 = vpop.xlane.xlu0 %4378 }
 0x4a8   : > { %v7704_v21 = vpop.eup %6418  ;;  %v4402_v41 = vsub.f32 %v7627_v20, %v4379_v29  ;;  %v6372_v20 = vld [vmem:[%s7839_s4 + $0x20] sm:$0xff]  }
 0x4a9   : > { %4452 = vadd.xlane.f32.xlu1 %v7704_v21  ;;  %6049 = vmatprep.subr.bf16.mxu0 %v6372_v20 }
 0x4aa   : > { %v4426_v63 = vmul.f32 1.442695, %v4402_v41  ;;  %6050 = vmatpush3.bf16.msra.mxu0 %v6372_v20  ;;  %6077 = vmatprep.subr.bf16.mxu1 %v6372_v20 }
 0x4ab   : > { %v4381_v42 = vpop.xlane.xlu1 %4380  ;;  %6085 = vmatpush3.bf16.msra.mxu1 %v6372_v20  ;;  %6051 = vmatprep.subr.bf16.mxu0 %v6373_v52 }
 0x4ac   : > { %6424 = vpow2.f32 %v4426_v63  ;;  %v4403_v31 = vsub.f32 %v7633_v13, %v4381_v42  ;;  %6078 = vmatprep.subr.bf16.mxu1 %v6373_v52 }
 0x4ae   : > { %v7715_v50 = vpop.eup %6420  ;;  %v4428_v10 = vmul.f32 1.442695, %v4403_v31  ;;  %6052 = vmatpush3.bf16.msra.mxu0 %v6373_v52 }
 0x4af   : > { %4454 = vadd.xlane.f32.xlu0 %v7715_v50  ;;  %v4383_v15 = vpop.xlane.xlu0 %4382  ;;  %6086 = vmatpush3.bf16.msra.mxu1 %v6373_v52 }
 0x4b0   : > { %v7718_v56 = vpop.eup %6422  ;;  %6426 = vpow2.f32 %v4428_v10  ;;  %v4404_v8 = vsub.f32 %v7640_v43, %v4383_v15  ;;  %v6374_v43 = vld [vmem:[%s7839_s4 + $0x30] sm:$0xff]  }
 0x4b1   : > { %4456 = vadd.xlane.f32.xlu1 %v7718_v56  ;;  %v4385_v13 = vpop.xlane.xlu1 %4384  ;;  %6053 = vmatprep.subr.bf16.mxu0 %v6374_v43 }
 0x4b2   : > { %v4430_v58 = vmul.f32 1.442695, %v4404_v8  ;;  %v4405_v30 = vsub.f32 %v7645_v33, %v4385_v13  ;;  %6054 = vmatpush3.bf16.msra.mxu0 %v6374_v43  ;;  %6079 = vmatprep.subr.bf16.mxu1 %v6374_v43 }
 0x4b3   : > { %6087 = vmatpush3.bf16.msra.mxu1 %v6374_v43  ;;  %6055 = vmatprep.subr.bf16.mxu0 %v6375_v51 }
 0x4b4   : > { %6428 = vpow2.f32 %v4430_v58  ;;  %v4432_v26 = vmul.f32 1.442695, %v4405_v30  ;;  %6080 = vmatprep.subr.bf16.mxu1 %v6375_v51 }
 0x4b6   : > { %v7729_v4 = vpop.eup %6424  ;;  %6430 = vpow2.f32 %v4432_v26  ;;  %6056 = vmatpush3.bf16.msra.mxu0 %v6375_v51 }
 0x4b7   : > { %4458 = vadd.xlane.f32.xlu0 %v7729_v4  ;;  %v4387_v5 = vpop.xlane.xlu0 %4386  ;;  %6088 = vmatpush3.bf16.msra.mxu1 %v6375_v51 }
 0x4b8   : > { %v4406_v12 = vsub.f32 %v7652_v1, %v4387_v5 }
 0x4b9   : > { %v4389_v33 = vpop.xlane.xlu1 %4388 }
 0x4ba   : > { %v7736_v19 = vpop.eup %6426  ;;  %v4434_v60 = vmul.f32 1.442695, %v4406_v12  ;;  %v4407_v37 = vsub.f32 %v7657_v18, %v4389_v33 }
 0x4bb   : > { %4460 = vadd.xlane.f32.xlu1 %v7736_v19 }
 0x4bc   : > { %6432 = vpow2.f32 %v4434_v60  ;;  %v4436_v53 = vmul.f32 1.442695, %v4407_v37 }
 0x4be   : > { %v7740_v1 = vpop.eup %6428  ;;  %6434 = vpow2.f32 %v4436_v53 }
 0x4bf   : > { %4462 = vadd.xlane.f32.xlu0 %v7740_v1  ;;  %v4391_v45 = vpop.xlane.xlu0 %4390 }
 0x4c0   : > { %v7743_v27 = vpop.eup %6430  ;;  %v4408_v46 = vsub.f32 %v7664_v34, %v4391_v45 }
 0x4c1   : > { %4464 = vadd.xlane.f32.xlu1 %v7743_v27  ;;  %v4393_v18 = vpop.xlane.xlu1 %4392 }
 0x4c2   : > { %v4438_v55 = vmul.f32 1.442695, %v4408_v46  ;;  %v4409_v6 = vsub.f32 %v7669_v25, %v4393_v18 }
 0x4c4   : > { %6436 = vpow2.f32 %v4438_v55  ;;  %v4440_v11 = vmul.f32 1.442695, %v4409_v6 }
 0x4c6   : > { %v7748_v39 = vpop.eup %6432  ;;  %6438 = vpow2.f32 %v4440_v11 }
 0x4c7   : > { %4466 = vadd.xlane.f32.xlu0 %v7748_v39 }
 0x4c8   : > { %v7751_v62 = vpop.eup %6434 }
 0x4c9   : > { %4468 = vadd.xlane.f32.xlu1 %v7751_v62 }
 0x4ce   : > { %v7754_v49 = vpop.eup %6436 }
 0x4cf   : > { %4470 = vadd.xlane.f32.xlu0 %v7754_v49 }
 0x4d0   : > { %v7757_v34 = vpop.eup %6438 }
 0x4d1   : > { %4472 = vadd.xlane.f32.xlu1 %v7757_v34 }
 0x524   : > { %v4443_v25 = vpop.xlane.xlu0 %4442 }
 0x525   : > { %6440 = vrcp.f32 %v4443_v25 }
 0x528   : > { %v4445_v22 = vpop.xlane.xlu1 %4444 }
 0x529   : > { %6442 = vrcp.f32 %v4445_v22 }
 0x52c   : > { %v4447_v2 = vpop.xlane.xlu0 %4446 }
 0x52d   : > { %6444 = vrcp.f32 %v4447_v2 }
 0x52e   : > { %v4449_v54 = vpop.xlane.xlu1 %4448 }
 0x52f   : > { %6446 = vrcp.f32 %v4449_v54  ;;  %v6441_v57 = vpop.eup %6440 }
 0x530   : > { %v4490_v3 = vmul.f32 %v6441_v57, %v7682_v36 }
 0x533   : > { %v6443_v47 = vpop.eup %6442 }
 0x534   : > { %v4451_v24 = vpop.xlane.xlu0 %4450  ;;  %v4491_v0 = vmul.f32 %v6443_v47, %v7686_v23 }
 0x535   : > { %6448 = vrcp.f32 %v4451_v24 }
 0x536   : > { %v4453_v7 = vpop.xlane.xlu1 %4452  ;;  %v4506_v59 = vpack.c.bf16 %v4491_v0, %v4490_v3 }
 0x537   : > { %v6445_v61 = vpop.eup %6444  ;;  %6450 = vrcp.f32 %v4453_v7 }
 0x538   : > { %6057 = vmatprep.mubr.bf16.mxu0 %v4506_v59  ;;  %v4492_v40 = vmul.f32 %v6445_v61, %v7690_v9 }
 0x539   : > { %v6447_v38 = vpop.eup %6446 }
 0x53a   : > { %v4493_v14 = vmul.f32 %v6447_v38, %v7693_v35 }
 0x53c   : > { %v4455_v28 = vpop.xlane.xlu0 %4454  ;;  %v4507_v48 = vpack.c.bf16 %v4493_v14, %v4492_v40 }
 0x53d   : > { %6452 = vrcp.f32 %v4455_v28 }
 0x53e   : > { %v4457_v17 = vpop.xlane.xlu1 %4456  ;;  %6058 = vmatmul.mubr.bf16.vlgmr.msra.gmra.mrb[192].mxu0 %v4507_v48 }
 0x53f   : > { %v6449_v44 = vpop.eup %6448  ;;  %6454 = vrcp.f32 %v4457_v17 }
 0x540   : > { %v4494_v23 = vmul.f32 %v6449_v44, %v7701_v16 }
 0x541   : > { %v6451_v36 = vpop.eup %6450 }
 0x542   : > { %v4495_v29 = vmul.f32 %v6451_v36, %v7704_v21 }
 0x544   : > { %v4459_v41 = vpop.xlane.xlu0 %4458  ;;  %v4508_v32 = vpack.c.bf16 %v4495_v29, %v4494_v23 }
 0x545   : > { %6456 = vrcp.f32 %v4459_v41 }
 0x546   : > { %6061 = vmatprep.mubr.bf16.mxu0 %v4508_v32 }
 0x547   : > { %v6453_v63 = vpop.eup %6452 }
 0x548   : > { %v4461_v9 = vpop.xlane.xlu1 %4460  ;;  %v4496_v35 = vmul.f32 %v6453_v63, %v7715_v50 }
 0x549   : > { %v6455_v42 = vpop.eup %6454  ;;  %6458 = vrcp.f32 %v4461_v9 }
 0x54a   : > { %v4497_v31 = vmul.f32 %v6455_v42, %v7718_v56 }
 0x54c   : > { %v4463_v20 = vpop.xlane.xlu0 %4462  ;;  %v4509_v10 = vpack.c.bf16 %v4497_v31, %v4496_v35 }
 0x54d   : > { %6460 = vrcp.f32 %v4463_v20 }
 0x54e   : > { %v4465_v15 = vpop.xlane.xlu1 %4464  ;;  %6062 = vmatmul.mubr.bf16.gmra.mrb[196].mxu0 %v4509_v10 }
 0x54f   : > { %6462 = vrcp.f32 %v4465_v15  ;;  %v6457_v16 = vpop.eup %6456 }
 0x550   : > { %v4498_v13 = vmul.f32 %v6457_v16, %v7729_v4 }
 0x553   : > { %v6459_v21 = vpop.eup %6458 }
 0x554   : > { %v4467_v8 = vpop.xlane.xlu0 %4466  ;;  %v4499_v52 = vmul.f32 %v6459_v21, %v7736_v19 }
 0x555   : > { %6464 = vrcp.f32 %v4467_v8 }
 0x556   : > { %v4469_v58 = vpop.xlane.xlu1 %4468  ;;  %v4510_v30 = vpack.c.bf16 %v4499_v52, %v4498_v13 }
 0x557   : > { %v6461_v26 = vpop.eup %6460  ;;  %6466 = vrcp.f32 %v4469_v58 }
 0x558   : > { %6065 = vmatprep.mubr.bf16.mxu1 %v4510_v30  ;;  %v4500_v56 = vmul.f32 %v6461_v26, %v7740_v1 }
 0x559   : > { %v6463_v50 = vpop.eup %6462 }
 0x55a   : > { %v4501_v43 = vmul.f32 %v6463_v50, %v7743_v27 }
 0x55c   : > { %v4471_v5 = vpop.xlane.xlu0 %4470  ;;  %v4511_v12 = vpack.c.bf16 %v4501_v43, %v4500_v56 }
 0x55d   : > { %6468 = vrcp.f32 %v4471_v5 }
 0x55e   : > { %v4473_v33 = vpop.xlane.xlu1 %4472  ;;  %6066 = vmatmul.mubr.bf16.vlgmr.msra.gmra.mrb[192].mxu1 %v4511_v12 }
 0x55f   : > { %v6465_v51 = vpop.eup %6464  ;;  %6470 = vrcp.f32 %v4473_v33 }
 0x560   : > { %v4502_v19 = vmul.f32 %v6465_v51, %v7748_v39 }
 0x561   : > { %v6467_v4 = vpop.eup %6466 }
 0x562   : > { %v4503_v60 = vmul.f32 %v6467_v4, %v7751_v62 }
 0x564   : > { %v4512_v37 = vpack.c.bf16 %v4503_v60, %v4502_v19 }
 0x566   : > { %6069 = vmatprep.mubr.bf16.mxu1 %v4512_v37 }
 0x567   : > { %v6469_v53 = vpop.eup %6468 }
 0x568   : > { %v4504_v1 = vmul.f32 %v6469_v53, %v7754_v49 }
 0x569   : > { %v6471_v45 = vpop.eup %6470 }
 0x56a   : > { %v4505_v27 = vmul.f32 %v6471_v45, %v7757_v34 }
 0x56c   : > { %v4513_v46 = vpack.c.bf16 %v4505_v27, %v4504_v1 }
 0x56e   : > { %6070 = vmatmul.mubr.bf16.gmra.mrb[196].mxu1 %v4513_v46 }
 0x611   : > { %v6059_v18 = vpop.f32.mrb[192].mxu0 }
 0x612   : > { %v4612_v55 = vpop.f32.mrb[193].mxu0 }
 0x613   : > { %v6060_v6 = vpop.f32.mrb[194].mxu0 }
 0x614   : > { %v4615_v11 = vpop.f32.mrb[195].mxu0 }
 0x621   : > { %v6063_v25 = vpop.f32.mrb[196].mxu0 }
 0x622   : > { %4683 = vrot.lane.b32.xlu1 %v6063_v25, %s6670_s26  ;;  %v4628_v39 = vpop.f32.mrb[197].mxu0 }
 0x623   : > { %4679 = vrot.lane.b32.xlu0 %v4628_v39, %s6670_s26  ;;  %v6064_v62 = vpop.f32.mrb[198].mxu0 }
 0x624   : > { %v4631_v22 = vpop.f32.mrb[199].mxu0 }
 0x626   : > { %4685 = vrot.lane.b32.xlu1 %v6064_v62, %s6670_s26 }
 0x62a   : > { %4681 = vrot.lane.b32.xlu1 %v4631_v22, %s6670_s26 }
 0x631   : > { %v6067_v2 = vpop.f32.mrb[192].mxu1 }
 0x632   : > { %v4644_v49 = vpop.f32.mrb[193].mxu1 }
 0x633   : > { %v6068_v54 = vpop.f32.mrb[194].mxu1 }
 0x634   : > { %v4647_v34 = vpop.f32.mrb[195].mxu1 }
 0x641   : > { %v6071_v57 = vpop.f32.mrb[196].mxu1 }
 0x642   : > { %v4660_v47 = vpop.f32.mrb[197].mxu1 }
 0x643   : > { %4695 = vrot.lane.b32.xlu0 %v4660_v47, %s6670_s26  ;;  %v6072_v24 = vpop.f32.mrb[198].mxu1 }
 0x644   : > { %v4663_v3 = vpop.f32.mrb[199].mxu1 }
 0x645   : > { %4697 = vrot.lane.b32.xlu1 %v4663_v3, %s6670_s26 }
 0x647   : > { %4699 = vrot.lane.b32.xlu0 %v6071_v57, %s6670_s26 }
 0x649   : > { %4701 = vrot.lane.b32.xlu1 %v6072_v24, %s6670_s26 }
 0x694   : > { %v4684_v0 = vpop.permute.xlu1 %4683 }
 0x695   : > { %v4710_v7 = vsel %vm4707_vm0, %v6059_v18, %v4684_v0  ;;  %v4680_v59 = vpop.permute.xlu0 %4679 }
 0x696   : > { %4720 = vst [vmem:[%s283_s12 + $0x20] sm:$0xff] %v4710_v7  ;;  %v4708_v61 = vsel %vm4707_vm0, %v4612_v55, %v4680_v59 }
 0x697   : > { %4716 = vst [vmem:[%s283_s12] sm:$0xff] %v4708_v61 }
 0x698   : > { %v4686_v38 = vpop.permute.xlu1 %4685 }
 0x699   : > { %v4711_v40 = vsel %vm4707_vm0, %v6060_v6, %v4686_v38 }
 0x69a   : > { %4722 = vst [vmem:[%s283_s12 + $0x30] sm:$0xff] %v4711_v40 }
 0x69c   : > { %v4682_v14 = vpop.permute.xlu1 %4681 }
 0x69d   : > { %v4709_v28 = vsel %vm4707_vm0, %v4615_v11, %v4682_v14 }
 0x69e   : > { %4718 = vst [vmem:[%s283_s12 + $0x10] sm:$0xff] %v4709_v28 }
 0x6b5   : > { %v4696_v48 = vpop.permute.xlu0 %4695 }
 0x6b6   : > { %v4712_v17 = vsel %vm4707_vm0, %v4644_v49, %v4696_v48 }
 0x6b7   : > { %4717 = vst [vmem:[%s283_s12 + $0x8] sm:$0xff] %v4712_v17  ;;  %v4698_v44 = vpop.permute.xlu1 %4697 }
 0x6b8   : > { %v4713_v36 = vsel %vm4707_vm0, %v4647_v34, %v4698_v44 }
 0x6b9   : > { %4719 = vst [vmem:[%s283_s12 + $0x18] sm:$0xff] %v4713_v36  ;;  %v4700_v23 = vpop.permute.xlu0 %4699 }
 0x6ba   : > { %v4714_v29 = vsel %vm4707_vm0, %v6067_v2, %v4700_v23 }
 0x6bb   : > { %4721 = vst [vmem:[%s283_s12 + $0x28] sm:$0xff] %v4714_v29  ;;  %v4702_v41 = vpop.permute.xlu1 %4701 }
 0x6bc   : > { %v4715_v32 = vsel %vm4707_vm0, %v6068_v54, %v4702_v41 }
 0x6bd   : > { %4723 = vst [vmem:[%s283_s12 + $0x38] sm:$0xff] %v4715_v32 }
 0x6be   : > { %6599 = shalt.err (!%p6596_p4)
}
 0x6bf   : > { %s6600_s7 = scalar_lea.hbm %s7790_s10, 1024  ;;  %s6604_s26 = scalar_lea.hbm %s7840_s5, 2048 }
 0x6c0   : > { %p6601_p9 = scmp.ne.s32.totalorder %s7790_s10, %s6600_s7  ;;  %p6605_p8 = scmp.lt.u32.totalorder %s7790_s10, %s7840_s5 }
 0x6c1   : > { %p6606_p13 = scmp.lt.u32.totalorder %s6604_s26, %s6600_s7  ;;  %p6608_p10 = scmp.lt.u32.totalorder %s6600_s7, %s7790_s10 }
 0x6c2   : > { %p6602_p0 = pnand %p6601_p9, %p6850_p5 }
 0x6c3   : > { %p6607_p6 = por %p6606_p13, %p6605_p8 }
 0x6c4   : > { %p6603_p11 = pneg %p6602_p0 }
 0x6c5   : > { %p6609_p3 = por %p6608_p10, %p6607_p6 }
 0x6c7   : > { %p6610_p7 = pnand %p6609_p3, %p6603_p11 }
 0x6c9   : > { %6613 = shalt.err (!%p6610_p7)
}
 0x6ca   : > { %s6672_s6 = smov 256   ;;  %s6673_s30 = smov 16  }
 0x6cb   : > { %6106 = dma.vmem_to_hbm [thread:$0]  (%p6850_p5), %s7784_s15, 1024, %s7790_s10, %s4725_s22, %s6672_s6, %s6672_s6, %s6673_s30  }
 0x6cc PF: > { %s4754_s8 = sand.u32 1, %s6648_s18   ;;  %p7858_p12 = scmp.ne.s32.totalorder %s7845_s25, 0 }
 0x6cd   : > { %p7859_p2 = scmp.ge.s32.totalorder %s6660_s21, 2  ;;  %s4755_s13 = scalar_lea.sflag [#allocation4], %s4754_s8 }
 0x6cf   : > { %p6123_p1 = pnand %p7859_p2, %p7858_p12 }
 0x6d1   : > { %6643 = dma.done.wait (!%p6123_p1), %s4755_s13, 1024  }
 0x6d2   : > { %6645 = vsyncadd (!%p6123_p1), %s4755_s13, 4294966272  ;;  %p20_p4 = scmp.ge.s32.totalorder %s6836_s14, 4   ;;  %s7860_s18 = smov %s6652_s19 }
 0x6d3   : > { %s7861_s19 = smov %s6656_s20  ;;  %s7862_s20 = smov %s6846_s23 }
 0x6d4   : > { %s7863_s21 = smov %s6836_s14  ;;  %22 = sbr.rel (!%p20_p4) target bundleno = 7 (0x7), region = 97 }
 0x6db   :  { %4760 = vsyncpa [#allocation3], 1 }
 0x6dc   :  { %4762 = vsyncpa [#allocation3 + $0x1], 1 }
 0x6dd   :  { %4763 = vsyncpa [#allocation6], 1 }
 0x6de   :  { %4764 = vsyncpa [#allocation9], 1 }
 0x6df   :  { %4765 = vsyncpa [#allocation4], 1 }
 0x6e0   :  { %4767 = vsyncpa [#allocation4 + $0x1], 1 }

</bundles_post_ra>
